<compile_context>
chip_gen: v7x
topology: tpu7x:2x2x1
jax: 0.10.0
libtpu: 0.0.40
codegen_flags: <defaults>
</compile_context>

<pallas_src>
import math
import numpy as np

import jax
import jax.numpy as jnp
from jax import lax
from jax.experimental import pallas as pl
from jax.experimental.pallas import tpu as pltpu


WINDOW_SIZES = (5, 10, 15, 20)
NWROW = 16          # padded per-size output rows (max nw is 12 for W=5, T=60)


# --------------------------------------------------------------------------
# Single merged kernel: all 4 window sizes in one invocation (no grid)
# --------------------------------------------------------------------------
def _build_kernel(cfg):
    d_in, H, d_out = cfg["d_in"], cfg["H"], cfg["d_out"]
    P = cfg["P"]
    sizes = cfg["sizes"]
    FC_ROWS, OW_ROWS = cfg["fc_rows"], cfg["ow_rows"]
    off = cfg["offsets"]
    RO_FC1, RO_FC2, RO_FC3, RO_PM, RO_FB = (
        off["fc1"], off["fc2"], off["fc3"], off["pm"], off["fb"])
    RO_R, RO_O1, RO_O2, RO_O3, RO_O4, RO_OB = (
        off["R"], off["o1"], off["o2"], off["o3"], off["o4"], off["ob"])

    f32 = jnp.float32
    mm = lambda x, w: jnp.dot(x, w, preferred_element_type=f32)
    relu = lambda v: jnp.maximum(v, 0.0)
    leaky = lambda v: jnp.where(v > 0, v, 0.01 * v)

    def softmax(sv):
        m = jnp.max(sv, axis=-1, keepdims=True)
        p = jnp.exp(sv - m)                 # masked entries underflow to exactly 0
        return p / jnp.sum(p, axis=-1, keepdims=True)

    def kernel(xab_ref, shared_ref, mask_ref, fc_ref, ow_ref, out_ref):
        # ---- shared embedding + fused (pre-scaled) Q/K projection, ONCE ----
        emb_wt = shared_ref[0:d_in, 0:H]
        wqk = shared_ref[d_in:d_in + H, 0:2 * H]
        emb_b = shared_ref[d_in + H:d_in + H + 1, 0:H]
        qk_b = shared_ref[d_in + H + 1:d_in + H + 2, 0:2 * H]

        e = leaky(mm(xab_ref[...], emb_wt) + emb_b)                  # (2P, H)
        qk = mm(e, wqk) + qk_b                                       # (2P, 2H)

        q_a = qk[0:P, 0:H]
        k_a = qk[0:P, H:2 * H]
        q_b = qk[P:2 * P, 0:H]
        k_b = qk[P:2 * P, H:2 * H]

        dn = (((1,), (1,)), ((), ()))                                # x @ y.T
        s_ab = lax.dot_general(q_a, k_b, dn, preferred_element_type=f32)   # (P,P)
        s_ba = lax.dot_general(q_b, k_a, dn, preferred_element_type=f32)   # (P,P)

        # ---- per window size (fully static python loop; shapes differ) ----
        for s, W in enumerate(sizes):
            F1, F2, F3 = 4 * W, 2 * W, W * d_out
            fb = s * FC_ROWS
            ob = s * OW_ROWS

            mb = mask_ref[s * P:(s + 1) * P, :]                      # (P, P)
            a_ab = softmax(s_ab + mb)
            a_ba = softmax(s_ba + mb)

            h = relu(mm(a_ab, fc_ref[fb + RO_FC1:fb + RO_FC1 + P, 0:F1])
                     + mm(a_ba, fc_ref[fb + RO_FC1 + P:fb + RO_FC1 + 2 * P, 0:F1])
                     + fc_ref[fb + RO_FB:fb + RO_FB + 1, 0:F1])              # (P, 4W)
            h = relu(mm(h, fc_ref[fb + RO_FC2:fb + RO_FC2 + F1, 0:F2])
                     + fc_ref[fb + RO_FB + 1:fb + RO_FB + 2, 0:F2])          # (P, 2W)
            h = relu(mm(h, fc_ref[fb + RO_FC3:fb + RO_FC3 + F2, 0:F3])
                     + fc_ref[fb + RO_FB + 2:fb + RO_FB + 3, 0:F3])          # (P, W*d_out), lane-tiled
            h = h * fc_ref[fb + RO_PM:fb + RO_PM + P, 0:F3]                  # row-wise Kronecker layout

            # window flatten = ONE selection matmul: (16, P) @ (P, W*d_out)
            f = mm(ow_ref[ob + RO_R:ob + RO_R + NWROW, 0:P], h)              # (16, W*d_out)

            g = relu(mm(f, ow_ref[ob + RO_O1:ob + RO_O1 + F3, 0:128])
                     + ow_ref[ob + RO_OB:ob + RO_OB + 1, 0:128])             # (16, 128)
            g = relu(mm(g, ow_ref[ob + RO_O2:ob + RO_O2 + 128, 0:64])
                     + ow_ref[ob + RO_OB + 1:ob + RO_OB + 2, 0:64])          # (16, 64)
            g = relu(mm(g, ow_ref[ob + RO_O3:ob + RO_O3 + 64, 0:32])
                     + ow_ref[ob + RO_OB + 2:ob + RO_OB + 3, 0:32])          # (16, 32)
            sc = (mm(g, ow_ref[ob + RO_O4:ob + RO_O4 + 32, 0:128])
                  + ow_ref[ob + RO_OB + 3:ob + RO_OB + 4, 0:128])            # (16, 128)

            out_ref[NWROW * s:NWROW * (s + 1), :] = sc               # aligned full-lane store

    return kernel


# --------------------------------------------------------------------------
# One-time host-side parameter packing (transpose / fuse / tile / mask)
# --------------------------------------------------------------------------
def prepare_params(shared, per_window, T, input_dim, hidden_dim, output_dim,
                   window_sizes=WINDOW_SIZES):
    d_in, H, d_out = input_dim, hidden_dim, output_dim
    P = ((T + 7) // 8) * 8
    Wmax = max(window_sizes)
    F1m, F2m, F3m = 4 * Wmax, 2 * Wmax, Wmax * d_out
    nS = len(window_sizes)
    scale = 1.0 / math.sqrt(H)
    np_ = lambda a: np.asarray(a, dtype=np.float32)

    # shared pack: embedding weight, fused (scaled) Q/K weight, their biases
    shared_pack = np.zeros((d_in + H + 2, 2 * H), np.float32)
    shared_pack[0:d_in, 0:H] = np_(shared["emb_w"]).T
    shared_pack[d_in:d_in + H, 0:H] = np_(shared["wq"]).T * scale
    shared_pack[d_in:d_in + H, H:2 * H] = np_(shared["wk"]).T
    shared_pack[d_in + H, 0:H] = np_(shared["emb_b"])
    shared_pack[d_in + H + 1, 0:H] = np_(shared["bq"]) * scale
    shared_pack[d_in + H + 1, H:2 * H] = np_(shared["bk"])

    # fc-slab row offsets (all 8-aligned)
    RO_FC1 = 0
    RO_FC2 = RO_FC1 + 2 * P
    RO_FC3 = RO_FC2 + F1m
    RO_PM = RO_FC3 + F2m
    RO_FB = RO_PM + P
    FC_ROWS = ((RO_FB + 3 + 7) // 8) * 8

    # output-slab row offsets (all 8-aligned)
    RO_R = 0
    RO_O1 = RO_R + NWROW
    RO_O2 = RO_O1 + F3m
    RO_O3 = RO_O2 + 128
    RO_O4 = RO_O3 + 64
    RO_OB = RO_O4 + 32
    OW_ROWS = ((RO_OB + 4 + 7) // 8) * 8

    masks = np.zeros((nS * P, P), np.float32)
    fc_pack = np.zeros((nS * FC_ROWS, F3m), np.float32)
    ow_pack = np.zeros((nS * OW_ROWS, 128), np.float32)
    nws = []

    for s, W in enumerate(window_sizes):
        d = per_window[W]
        nw = T // W
        N = nw * W
        nws.append(nw)
        F1, F2, F3 = 4 * W, 2 * W, W * d_out
        fb = s * FC_ROWS
        ob = s * OW_ROWS

        # score-mask bias: 0 for same-window valid pairs, -1e9 otherwise
        idx = np.arange(P)
        valid = idx < N
        win = idx // W
        same = (win[:, None] == win[None, :]) & valid[:, None] & valid[None, :]
        masks[s * P:(s + 1) * P, :] = np.where(same, 0.0, -1e9).astype(np.float32)

        fc1_wt = np_(d["fc1_w"]).T                                   # (2W, 4W)
        for c in range(N):
            fc_pack[fb + RO_FC1 + c, 0:F1] = fc1_wt[c % W]           # a_ab half
            fc_pack[fb + RO_FC1 + P + c, 0:F1] = fc1_wt[W + c % W]   # a_ba half
        fc_pack[fb + RO_FC2:fb + RO_FC2 + F1, 0:F2] = np_(d["fc2_w"]).T
        fc_pack[fb + RO_FC3:fb + RO_FC3 + F2, 0:F3] = np.tile(np_(d["fc3_w"]).T, (1, W))
        for r in range(N):                                           # position mask
            p = r % W
            fc_pack[fb + RO_PM + r, p * d_out:(p + 1) * d_out] = 1.0
        fc_pack[fb + RO_FB, 0:F1] = np_(d["fc1_b"])
        fc_pack[fb + RO_FB + 1, 0:F2] = np_(d["fc2_b"])
        fc_pack[fb + RO_FB + 2, 0:F3] = np.tile(np_(d["fc3_b"]), W)

        for i in range(nw):                                          # window selector
            ow_pack[ob + RO_R + i, i * W:(i + 1) * W] = 1.0
        ow_pack[ob + RO_O1:ob + RO_O1 + F3, 0:128] = np_(d["o1_w"]).T
        ow_pack[ob + RO_O2:ob + RO_O2 + 128, 0:64] = np_(d["o2_w"]).T
        ow_pack[ob + RO_O3:ob + RO_O3 + 64, 0:32] = np_(d["o3_w"]).T
        ow_pack[ob + RO_O4:ob + RO_O4 + 32, 0] = np_(d["o4_w"])[0]
        ow_pack[ob + RO_OB, 0:128] = np_(d["o1_b"])
        ow_pack[ob + RO_OB + 1, 0:64] = np_(d["o2_b"])
        ow_pack[ob + RO_OB + 2, 0:32] = np_(d["o3_b"])
        ow_pack[ob + RO_OB + 3, 0] = np_(d["o4_b"])[0]

    cfg = dict(d_in=d_in, H=H, d_out=d_out, P=P, T=T,
               sizes=tuple(window_sizes), nws=tuple(nws),
               fc_rows=FC_ROWS, ow_rows=OW_ROWS,
               offsets=dict(fc1=RO_FC1, fc2=RO_FC2, fc3=RO_FC3, pm=RO_PM, fb=RO_FB,
                            R=RO_R, o1=RO_O1, o2=RO_O2, o3=RO_O3, o4=RO_O4, ob=RO_OB))
    arrays = dict(shared_pack=jnp.asarray(shared_pack),
                  masks=jnp.asarray(masks),
                  fc_pack=jnp.asarray(fc_pack),
                  ow_pack=jnp.asarray(ow_pack))
    return arrays, cfg


# --------------------------------------------------------------------------
# Wrapper: single pallas_call, everything resident in VMEM
# --------------------------------------------------------------------------
def caculatenet_forward(traj_1, traj_2, arrays, cfg):
    T, _ = traj_1.shape
    P = cfg["P"]
    pad = P - T
    xab = jnp.concatenate(
        [jnp.pad(traj_1.astype(jnp.float32), ((0, pad), (0, 0))),
         jnp.pad(traj_2.astype(jnp.float32), ((0, pad), (0, 0)))], axis=0)   # (2P, d_in)

    vmem = pl.BlockSpec(memory_space=pltpu.MemorySpace.VMEM)
    out = pl.pallas_call(
        _build_kernel(cfg),
        out_shape=jax.ShapeDtypeStruct((NWROW * len(cfg["sizes"]), 128), jnp.float32),
        in_specs=[vmem] * 5,
        out_specs=vmem,
    )(xab, arrays["shared_pack"], arrays["masks"], arrays["fc_pack"], arrays["ow_pack"])

    # same return order as the torch module: (W=5, 10, 15, 20)
    return tuple(out[NWROW * s:NWROW * s + nw, 0]
                 for s, nw in enumerate(cfg["nws"]))


# --------------------------------------------------------------------------
# Deterministic parameter construction (PyTorch Linear layout: (out, in), (out,))
# --------------------------------------------------------------------------
def make_params(key, input_dim, hidden_dim, output_dim, window_sizes):
    keys = iter(jax.random.split(key, 64))

    def lin(in_d, out_d, scale):
        w = jax.random.normal(next(keys), (out_d, in_d), jnp.float32) * scale
        b = jax.random.normal(next(keys), (out_d,), jnp.float32) * 0.05
        return w, b

    shared = {}
    shared["emb_w"], shared["emb_b"] = lin(input_dim, hidden_dim, 0.3)
    shared["wq"], shared["bq"] = lin(hidden_dim, hidden_dim, 0.2)
    shared["wk"], shared["bk"] = lin(hidden_dim, hidden_dim, 0.2)
    # W_v of similarity_Attention is never used in the forward pass -> omitted.

    per_window = {}
    for W in window_sizes:
        d = {}
        d["fc1_w"], d["fc1_b"] = lin(2 * W, 4 * W, 0.3)
        d["fc2_w"], d["fc2_b"] = lin(4 * W, 2 * W, 0.3)
        d["fc3_w"], d["fc3_b"] = lin(2 * W, output_dim, 0.3)
        d["o1_w"], d["o1_b"] = lin(output_dim * W, 128, 0.2)
        d["o2_w"], d["o2_b"] = lin(128, 64, 0.2)
        d["o3_w"], d["o3_b"] = lin(64, 32, 0.2)
        d["o4_w"], d["o4_b"] = lin(32, 1, 0.2)
        per_window[W] = d
    return shared, per_window


# --------------------------------------------------------------------------
# Pure-JAX reference (mirrors the torch forward) for correctness checking
# --------------------------------------------------------------------------
def reference_similarity(traj_1, traj_2, W, shared, d):
    nw = traj_1.shape[0] // W
    lin = lambda x, w, b: x @ w.T + b
    hidden_dim = shared["wq"].shape[0]
    scores = []
    for i in range(nw):
        a = traj_1[i * W:(i + 1) * W]
        b = traj_2[i * W:(i + 1) * W]
        ea = jax.nn.leaky_relu(lin(a, shared["emb_w"], shared["emb_b"]), 0.01)
        eb = jax.nn.leaky_relu(lin(b, shared["emb_w"], shared["emb_b"]), 0.01)

        def attn(q, k):
            Q = lin(q, shared["wq"], shared["bq"])
            K = lin(k, shared["wk"], shared["bk"])
            s = (Q @ K.T) / math.sqrt(hidden_dim)
            return jax.nn.softmax(s, axis=-1)

        feat = jnp.concatenate([attn(ea, eb), attn(eb, ea)], axis=-1)
        h = jax.nn.relu(lin(feat, d["fc1_w"], d["fc1_b"]))
        h = jax.nn.relu(lin(h, d["fc2_w"], d["fc2_b"]))
        h = jax.nn.relu(lin(h, d["fc3_w"], d["fc3_b"]))
        f = h.reshape(-1)
        g = jax.nn.relu(f @ d["o1_w"].T + d["o1_b"])
        g = jax.nn.relu(g @ d["o2_w"].T + d["o2_b"])
        g = jax.nn.relu(g @ d["o3_w"].T + d["o3_b"])
        g = g @ d["o4_w"].T + d["o4_b"]
        scores.append(g)
    return jnp.concatenate(scores)


if __name__ == "__main__":
    key = jax.random.PRNGKey(0)
    k1, k2, kp = jax.random.split(key, 3)

    T, input_dim, hidden_dim, output_dim = 60, 4, 32, 8
    window_sizes = WINDOW_SIZES

    traj_1 = jax.random.normal(k1, (T, input_dim), jnp.float32)
    traj_2 = jax.random.normal(k2, (T, input_dim), jnp.float32)
    shared, per_window = make_params(kp, input_dim, hidden_dim, output_dim, window_sizes)

    # one-time weight preprocessing (transpose / fuse / tile / pack / masks)
    arrays, cfg = prepare_params(shared, per_window, T, input_dim, hidden_dim,
                                 output_dim, window_sizes)

    forward = jax.jit(lambda a, b: caculatenet_forward(a, b, arrays, cfg))
    outs = jax.block_until_ready(forward(traj_1, traj_2))

    for W, o in zip(window_sizes, outs):
        assert o.shape == (T // W,)
        ref = reference_similarity(traj_1, traj_2, W, shared, per_window[W])
        np.testing.assert_allclose(np.asarray(o), np.asarray(ref), rtol=1e-3, atol=1e-3)

    print("KERNEL_OK")
</pallas_src>

<mosaic_0001>
module attributes {stable_mosaic.version = 11 : i64} {
  func.func @kernel(%arg0: memref<128x4xf32, #tpu.memory_space<vmem>>, %arg1: memref<38x64xf32, #tpu.memory_space<vmem>>, %arg2: memref<256x64xf32, #tpu.memory_space<vmem>>, %arg3: memref<1280x160xf32, #tpu.memory_space<vmem>>, %arg4: memref<1632x128xf32, #tpu.memory_space<vmem>>, %arg5: memref<64x128xf32, #tpu.memory_space<vmem>>) attributes {dimension_semantics = [], scalar_prefetch = 0 : i64, scratch_operands = 0 : i64, tpu.core_type = #tpu.core_type<tc>} {
    %c0 = arith.constant 0 : index
    %c0_0 = arith.constant 0 : index
    %0 = vector.load %arg1[%c0, %c0_0] : memref<38x64xf32, #tpu.memory_space<vmem>>, vector<4x32xf32>
    %c4 = arith.constant 4 : index
    %c0_1 = arith.constant 0 : index
    %1 = vector.load %arg1[%c4, %c0_1] : memref<38x64xf32, #tpu.memory_space<vmem>>, vector<32x64xf32>
    %c36 = arith.constant 36 : index
    %c0_2 = arith.constant 0 : index
    %2 = vector.load %arg1[%c36, %c0_2] : memref<38x64xf32, #tpu.memory_space<vmem>>, vector<1x32xf32>
    %c37 = arith.constant 37 : index
    %c0_3 = arith.constant 0 : index
    %3 = vector.load %arg1[%c37, %c0_3] : memref<38x64xf32, #tpu.memory_space<vmem>>, vector<1x64xf32>
    %c0_4 = arith.constant 0 : index
    %c0_5 = arith.constant 0 : index
    %4 = vector.load %arg0[%c0_4, %c0_5] : memref<128x4xf32, #tpu.memory_space<vmem>>, vector<128x4xf32>
    %cst = arith.constant dense<0.000000e+00> : vector<128x32xf32>
    %5 = tpu.matmul %4, %0, %cst {dimension_numbers = #tpu.dot_dimension_numbers<[1], [0], [0], [1], [0, 0, 1, 1], [], []>} : vector<128x4xf32>, vector<4x32xf32>, vector<128x32xf32> -> vector<128x32xf32>
    %6 = vector.broadcast %2 : vector<1x32xf32> to vector<128x32xf32>
    %7 = arith.addf %5, %6 : vector<128x32xf32>
    %cst_6 = arith.constant 0.000000e+00 : f32
    %8 = vector.broadcast %cst_6 : f32 to vector<128x32xf32>
    %9 = arith.cmpf ogt, %7, %8 : vector<128x32xf32>
    %cst_7 = arith.constant 0.00999999977 : f32
    %10 = vector.broadcast %cst_7 : f32 to vector<128x32xf32>
    %11 = arith.mulf %10, %7 : vector<128x32xf32>
    %12 = arith.select %9, %7, %11 : vector<128x32xi1>, vector<128x32xf32>
    %cst_8 = arith.constant dense<0.000000e+00> : vector<128x64xf32>
    %13 = tpu.matmul %12, %1, %cst_8 {dimension_numbers = #tpu.dot_dimension_numbers<[1], [0], [0], [1], [0, 0, 1, 1], [], []>} : vector<128x32xf32>, vector<32x64xf32>, vector<128x64xf32> -> vector<128x64xf32>
    %14 = vector.broadcast %3 : vector<1x64xf32> to vector<128x64xf32>
    %15 = arith.addf %13, %14 : vector<128x64xf32>
    %16 = vector.extract_strided_slice %15 {offsets = [0, 0], sizes = [64, 32], strides = [1, 1]} : vector<128x64xf32> to vector<64x32xf32>
    %17 = vector.extract_strided_slice %15 {offsets = [0, 32], sizes = [64, 32], strides = [1, 1]} : vector<128x64xf32> to vector<64x32xf32>
    %18 = vector.extract_strided_slice %15 {offsets = [64, 0], sizes = [64, 32], strides = [1, 1]} : vector<128x64xf32> to vector<64x32xf32>
    %19 = vector.extract_strided_slice %15 {offsets = [64, 32], sizes = [64, 32], strides = [1, 1]} : vector<128x64xf32> to vector<64x32xf32>
    %cst_9 = arith.constant dense<0.000000e+00> : vector<64x64xf32>
    %20 = tpu.matmul %16, %19, %cst_9 {dimension_numbers = #tpu.dot_dimension_numbers<[1], [1], [0], [0], [0, 0, 1, 0], [], []>} : vector<64x32xf32>, vector<64x32xf32>, vector<64x64xf32> -> vector<64x64xf32>
    %cst_10 = arith.constant dense<0.000000e+00> : vector<64x64xf32>
    %21 = tpu.matmul %18, %17, %cst_10 {dimension_numbers = #tpu.dot_dimension_numbers<[1], [1], [0], [0], [0, 0, 1, 0], [], []>} : vector<64x32xf32>, vector<64x32xf32>, vector<64x64xf32> -> vector<64x64xf32>
    %c0_11 = arith.constant 0 : index
    %c0_12 = arith.constant 0 : index
    %22 = vector.load %arg2[%c0_11, %c0_12] : memref<256x64xf32, #tpu.memory_space<vmem>>, vector<64x64xf32>
    %23 = arith.addf %20, %22 : vector<64x64xf32>
    %cst_13 = arith.constant dense<0xFF800000> : vector<64xf32>
    %24 = vector.multi_reduction <maximumf>, %23, %cst_13 [1] : vector<64x64xf32> to vector<64xf32>
    %25 = vector.shape_cast %24 : vector<64xf32> to vector<64x1xf32>
    %26 = vector.broadcast %25 : vector<64x1xf32> to vector<64x64xf32>
    %27 = arith.subf %23, %26 : vector<64x64xf32>
    %28 = math.exp %27 : vector<64x64xf32>
    %cst_14 = arith.constant dense<0.000000e+00> : vector<64xf32>
    %29 = vector.multi_reduction <add>, %28, %cst_14 [1] : vector<64x64xf32> to vector<64xf32>
    %30 = vector.shape_cast %29 : vector<64xf32> to vector<64x1xf32>
    %31 = vector.broadcast %30 : vector<64x1xf32> to vector<64x64xf32>
    %32 = arith.divf %28, %31 : vector<64x64xf32>
    %33 = arith.addf %21, %22 : vector<64x64xf32>
    %cst_15 = arith.constant dense<0xFF800000> : vector<64xf32>
    %34 = vector.multi_reduction <maximumf>, %33, %cst_15 [1] : vector<64x64xf32> to vector<64xf32>
    %35 = vector.shape_cast %34 : vector<64xf32> to vector<64x1xf32>
    %36 = vector.broadcast %35 : vector<64x1xf32> to vector<64x64xf32>
    %37 = arith.subf %33, %36 : vector<64x64xf32>
    %38 = math.exp %37 : vector<64x64xf32>
    %cst_16 = arith.constant dense<0.000000e+00> : vector<64xf32>
    %39 = vector.multi_reduction <add>, %38, %cst_16 [1] : vector<64x64xf32> to vector<64xf32>
    %40 = vector.shape_cast %39 : vector<64xf32> to vector<64x1xf32>
    %41 = vector.broadcast %40 : vector<64x1xf32> to vector<64x64xf32>
    %42 = arith.divf %38, %41 : vector<64x64xf32>
    %c0_17 = arith.constant 0 : index
    %c0_18 = arith.constant 0 : index
    %43 = vector.load %arg3[%c0_17, %c0_18] : memref<1280x160xf32, #tpu.memory_space<vmem>>, vector<64x20xf32>
    %cst_19 = arith.constant dense<0.000000e+00> : vector<64x20xf32>
    %44 = tpu.matmul %32, %43, %cst_19 {dimension_numbers = #tpu.dot_dimension_numbers<[1], [0], [0], [1], [0, 0, 1, 1], [], []>} : vector<64x64xf32>, vector<64x20xf32>, vector<64x20xf32> -> vector<64x20xf32>
    %c64 = arith.constant 64 : index
    %c0_20 = arith.constant 0 : index
    %45 = vector.load %arg3[%c64, %c0_20] : memref<1280x160xf32, #tpu.memory_space<vmem>>, vector<64x20xf32>
    %cst_21 = arith.constant dense<0.000000e+00> : vector<64x20xf32>
    %46 = tpu.matmul %42, %45, %cst_21 {dimension_numbers = #tpu.dot_dimension_numbers<[1], [0], [0], [1], [0, 0, 1, 1], [], []>} : vector<64x64xf32>, vector<64x20xf32>, vector<64x20xf32> -> vector<64x20xf32>
    %47 = arith.addf %44, %46 : vector<64x20xf32>
    %c312 = arith.constant 312 : index
    %c0_22 = arith.constant 0 : index
    %48 = vector.load %arg3[%c312, %c0_22] : memref<1280x160xf32, #tpu.memory_space<vmem>>, vector<1x20xf32>
    %49 = vector.broadcast %48 : vector<1x20xf32> to vector<64x20xf32>
    %50 = arith.addf %47, %49 : vector<64x20xf32>
    %cst_23 = arith.constant 0.000000e+00 : f32
    %51 = vector.broadcast %cst_23 : f32 to vector<64x20xf32>
    %52 = arith.maximumf %50, %51 : vector<64x20xf32>
    %c128 = arith.constant 128 : index
    %c0_24 = arith.constant 0 : index
    %53 = vector.load %arg3[%c128, %c0_24] : memref<1280x160xf32, #tpu.memory_space<vmem>>, vector<20x10xf32>
    %cst_25 = arith.constant dense<0.000000e+00> : vector<64x10xf32>
    %54 = tpu.matmul %52, %53, %cst_25 {dimension_numbers = #tpu.dot_dimension_numbers<[1], [0], [0], [1], [0, 0, 1, 1], [], []>} : vector<64x20xf32>, vector<20x10xf32>, vector<64x10xf32> -> vector<64x10xf32>
    %c313 = arith.constant 313 : index
    %c0_26 = arith.constant 0 : index
    %55 = vector.load %arg3[%c313, %c0_26] : memref<1280x160xf32, #tpu.memory_space<vmem>>, vector<1x10xf32>
    %56 = vector.broadcast %55 : vector<1x10xf32> to vector<64x10xf32>
    %57 = arith.addf %54, %56 : vector<64x10xf32>
    %cst_27 = arith.constant 0.000000e+00 : f32
    %58 = vector.broadcast %cst_27 : f32 to vector<64x10xf32>
    %59 = arith.maximumf %57, %58 : vector<64x10xf32>
    %c208 = arith.constant 208 : index
    %c0_28 = arith.constant 0 : index
    %60 = vector.load %arg3[%c208, %c0_28] : memref<1280x160xf32, #tpu.memory_space<vmem>>, vector<10x40xf32>
    %cst_29 = arith.constant dense<0.000000e+00> : vector<64x40xf32>
    %61 = tpu.matmul %59, %60, %cst_29 {dimension_numbers = #tpu.dot_dimension_numbers<[1], [0], [0], [1], [0, 0, 1, 1], [], []>} : vector<64x10xf32>, vector<10x40xf32>, vector<64x40xf32> -> vector<64x40xf32>
    %c314 = arith.constant 314 : index
    %c0_30 = arith.constant 0 : index
    %62 = vector.load %arg3[%c314, %c0_30] : memref<1280x160xf32, #tpu.memory_space<vmem>>, vector<1x40xf32>
    %63 = vector.broadcast %62 : vector<1x40xf32> to vector<64x40xf32>
    %64 = arith.addf %61, %63 : vector<64x40xf32>
    %cst_31 = arith.constant 0.000000e+00 : f32
    %65 = vector.broadcast %cst_31 : f32 to vector<64x40xf32>
    %66 = arith.maximumf %64, %65 : vector<64x40xf32>
    %c248 = arith.constant 248 : index
    %c0_32 = arith.constant 0 : index
    %67 = vector.load %arg3[%c248, %c0_32] : memref<1280x160xf32, #tpu.memory_space<vmem>>, vector<64x40xf32>
    %68 = arith.mulf %66, %67 : vector<64x40xf32>
    %c0_33 = arith.constant 0 : index
    %c0_34 = arith.constant 0 : index
    %69 = vector.load %arg4[%c0_33, %c0_34] : memref<1632x128xf32, #tpu.memory_space<vmem>>, vector<16x64xf32>
    %cst_35 = arith.constant dense<0.000000e+00> : vector<16x40xf32>
    %70 = tpu.matmul %69, %68, %cst_35 {dimension_numbers = #tpu.dot_dimension_numbers<[1], [0], [0], [1], [0, 0, 1, 1], [], []>} : vector<16x64xf32>, vector<64x40xf32>, vector<16x40xf32> -> vector<16x40xf32>
    %c16 = arith.constant 16 : index
    %c0_36 = arith.constant 0 : index
    %71 = vector.load %arg4[%c16, %c0_36] : memref<1632x128xf32, #tpu.memory_space<vmem>>, vector<40x128xf32>
    %cst_37 = arith.constant dense<0.000000e+00> : vector<16x128xf32>
    %72 = tpu.matmul %70, %71, %cst_37 {dimension_numbers = #tpu.dot_dimension_numbers<[1], [0], [0], [1], [0, 0, 1, 1], [], []>} : vector<16x40xf32>, vector<40x128xf32>, vector<16x128xf32> -> vector<16x128xf32>
    %c400 = arith.constant 400 : index
    %c0_38 = arith.constant 0 : index
    %73 = vector.load %arg4[%c400, %c0_38] : memref<1632x128xf32, #tpu.memory_space<vmem>>, vector<1x128xf32>
    %74 = vector.broadcast %73 : vector<1x128xf32> to vector<16x128xf32>
    %75 = arith.addf %72, %74 : vector<16x128xf32>
    %cst_39 = arith.constant 0.000000e+00 : f32
    %76 = vector.broadcast %cst_39 : f32 to vector<16x128xf32>
    %77 = arith.maximumf %75, %76 : vector<16x128xf32>
    %c176 = arith.constant 176 : index
    %c0_40 = arith.constant 0 : index
    %78 = vector.load %arg4[%c176, %c0_40] : memref<1632x128xf32, #tpu.memory_space<vmem>>, vector<128x64xf32>
    %cst_41 = arith.constant dense<0.000000e+00> : vector<16x64xf32>
    %79 = tpu.matmul %77, %78, %cst_41 {dimension_numbers = #tpu.dot_dimension_numbers<[1], [0], [0], [1], [0, 0, 1, 1], [], []>} : vector<16x128xf32>, vector<128x64xf32>, vector<16x64xf32> -> vector<16x64xf32>
    %c401 = arith.constant 401 : index
    %c0_42 = arith.constant 0 : index
    %80 = vector.load %arg4[%c401, %c0_42] : memref<1632x128xf32, #tpu.memory_space<vmem>>, vector<1x64xf32>
    %81 = vector.broadcast %80 : vector<1x64xf32> to vector<16x64xf32>
    %82 = arith.addf %79, %81 : vector<16x64xf32>
    %cst_43 = arith.constant 0.000000e+00 : f32
    %83 = vector.broadcast %cst_43 : f32 to vector<16x64xf32>
    %84 = arith.maximumf %82, %83 : vector<16x64xf32>
    %c304 = arith.constant 304 : index
    %c0_44 = arith.constant 0 : index
    %85 = vector.load %arg4[%c304, %c0_44] : memref<1632x128xf32, #tpu.memory_space<vmem>>, vector<64x32xf32>
    %cst_45 = arith.constant dense<0.000000e+00> : vector<16x32xf32>
    %86 = tpu.matmul %84, %85, %cst_45 {dimension_numbers = #tpu.dot_dimension_numbers<[1], [0], [0], [1], [0, 0, 1, 1], [], []>} : vector<16x64xf32>, vector<64x32xf32>, vector<16x32xf32> -> vector<16x32xf32>
    %c402 = arith.constant 402 : index
    %c0_46 = arith.constant 0 : index
    %87 = vector.load %arg4[%c402, %c0_46] : memref<1632x128xf32, #tpu.memory_space<vmem>>, vector<1x32xf32>
    %88 = vector.broadcast %87 : vector<1x32xf32> to vector<16x32xf32>
    %89 = arith.addf %86, %88 : vector<16x32xf32>
    %cst_47 = arith.constant 0.000000e+00 : f32
    %90 = vector.broadcast %cst_47 : f32 to vector<16x32xf32>
    %91 = arith.maximumf %89, %90 : vector<16x32xf32>
    %c368 = arith.constant 368 : index
    %c0_48 = arith.constant 0 : index
    %92 = vector.load %arg4[%c368, %c0_48] : memref<1632x128xf32, #tpu.memory_space<vmem>>, vector<32x128xf32>
    %cst_49 = arith.constant dense<0.000000e+00> : vector<16x128xf32>
    %93 = tpu.matmul %91, %92, %cst_49 {dimension_numbers = #tpu.dot_dimension_numbers<[1], [0], [0], [1], [0, 0, 1, 1], [], []>} : vector<16x32xf32>, vector<32x128xf32>, vector<16x128xf32> -> vector<16x128xf32>
    %c403 = arith.constant 403 : index
    %c0_50 = arith.constant 0 : index
    %94 = vector.load %arg4[%c403, %c0_50] : memref<1632x128xf32, #tpu.memory_space<vmem>>, vector<1x128xf32>
    %95 = vector.broadcast %94 : vector<1x128xf32> to vector<16x128xf32>
    %96 = arith.addf %93, %95 : vector<16x128xf32>
    %c0_51 = arith.constant 0 : index
    %c0_52 = arith.constant 0 : index
    %97 = vector.load %arg5[%c0_51, %c0_52] : memref<64x128xf32, #tpu.memory_space<vmem>>, vector<16x128xf32>
    tpu.vector_store %arg5[%c0_51, %c0_52], %96 {strides = array<i32>} : memref<64x128xf32, #tpu.memory_space<vmem>>, vector<16x128xf32>,
    %c64_53 = arith.constant 64 : index
    %c0_54 = arith.constant 0 : index
    %98 = vector.load %arg2[%c64_53, %c0_54] : memref<256x64xf32, #tpu.memory_space<vmem>>, vector<64x64xf32>
    %99 = arith.addf %20, %98 : vector<64x64xf32>
    %cst_55 = arith.constant dense<0xFF800000> : vector<64xf32>
    %100 = vector.multi_reduction <maximumf>, %99, %cst_55 [1] : vector<64x64xf32> to vector<64xf32>
    %101 = vector.shape_cast %100 : vector<64xf32> to vector<64x1xf32>
    %102 = vector.broadcast %101 : vector<64x1xf32> to vector<64x64xf32>
    %103 = arith.subf %99, %102 : vector<64x64xf32>
    %104 = math.exp %103 : vector<64x64xf32>
    %cst_56 = arith.constant dense<0.000000e+00> : vector<64xf32>
    %105 = vector.multi_reduction <add>, %104, %cst_56 [1] : vector<64x64xf32> to vector<64xf32>
    %106 = vector.shape_cast %105 : vector<64xf32> to vector<64x1xf32>
    %107 = vector.broadcast %106 : vector<64x1xf32> to vector<64x64xf32>
    %108 = arith.divf %104, %107 : vector<64x64xf32>
    %109 = arith.addf %21, %98 : vector<64x64xf32>
    %cst_57 = arith.constant dense<0xFF800000> : vector<64xf32>
    %110 = vector.multi_reduction <maximumf>, %109, %cst_57 [1] : vector<64x64xf32> to vector<64xf32>
    %111 = vector.shape_cast %110 : vector<64xf32> to vector<64x1xf32>
    %112 = vector.broadcast %111 : vector<64x1xf32> to vector<64x64xf32>
    %113 = arith.subf %109, %112 : vector<64x64xf32>
    %114 = math.exp %113 : vector<64x64xf32>
    %cst_58 = arith.constant dense<0.000000e+00> : vector<64xf32>
    %115 = vector.multi_reduction <add>, %114, %cst_58 [1] : vector<64x64xf32> to vector<64xf32>
    %116 = vector.shape_cast %115 : vector<64xf32> to vector<64x1xf32>
    %117 = vector.broadcast %116 : vector<64x1xf32> to vector<64x64xf32>
    %118 = arith.divf %114, %117 : vector<64x64xf32>
    %c320 = arith.constant 320 : index
    %c0_59 = arith.constant 0 : index
    %119 = vector.load %arg3[%c320, %c0_59] : memref<1280x160xf32, #tpu.memory_space<vmem>>, vector<64x40xf32>
    %cst_60 = arith.constant dense<0.000000e+00> : vector<64x40xf32>
    %120 = tpu.matmul %108, %119, %cst_60 {dimension_numbers = #tpu.dot_dimension_numbers<[1], [0], [0], [1], [0, 0, 1, 1], [], []>} : vector<64x64xf32>, vector<64x40xf32>, vector<64x40xf32> -> vector<64x40xf32>
    %c384 = arith.constant 384 : index
    %c0_61 = arith.constant 0 : index
    %121 = vector.load %arg3[%c384, %c0_61] : memref<1280x160xf32, #tpu.memory_space<vmem>>, vector<64x40xf32>
    %cst_62 = arith.constant dense<0.000000e+00> : vector<64x40xf32>
    %122 = tpu.matmul %118, %121, %cst_62 {dimension_numbers = #tpu.dot_dimension_numbers<[1], [0], [0], [1], [0, 0, 1, 1], [], []>} : vector<64x64xf32>, vector<64x40xf32>, vector<64x40xf32> -> vector<64x40xf32>
    %123 = arith.addf %120, %122 : vector<64x40xf32>
    %c632 = arith.constant 632 : index
    %c0_63 = arith.constant 0 : index
    %124 = vector.load %arg3[%c632, %c0_63] : memref<1280x160xf32, #tpu.memory_space<vmem>>, vector<1x40xf32>
    %125 = vector.broadcast %124 : vector<1x40xf32> to vector<64x40xf32>
    %126 = arith.addf %123, %125 : vector<64x40xf32>
    %cst_64 = arith.constant 0.000000e+00 : f32
    %127 = vector.broadcast %cst_64 : f32 to vector<64x40xf32>
    %128 = arith.maximumf %126, %127 : vector<64x40xf32>
    %c448 = arith.constant 448 : index
    %c0_65 = arith.constant 0 : index
    %129 = vector.load %arg3[%c448, %c0_65] : memref<1280x160xf32, #tpu.memory_space<vmem>>, vector<40x20xf32>
    %cst_66 = arith.constant dense<0.000000e+00> : vector<64x20xf32>
    %130 = tpu.matmul %128, %129, %cst_66 {dimension_numbers = #tpu.dot_dimension_numbers<[1], [0], [0], [1], [0, 0, 1, 1], [], []>} : vector<64x40xf32>, vector<40x20xf32>, vector<64x20xf32> -> vector<64x20xf32>
    %c633 = arith.constant 633 : index
    %c0_67 = arith.constant 0 : index
    %131 = vector.load %arg3[%c633, %c0_67] : memref<1280x160xf32, #tpu.memory_space<vmem>>, vector<1x20xf32>
    %132 = vector.broadcast %131 : vector<1x20xf32> to vector<64x20xf32>
    %133 = arith.addf %130, %132 : vector<64x20xf32>
    %cst_68 = arith.constant 0.000000e+00 : f32
    %134 = vector.broadcast %cst_68 : f32 to vector<64x20xf32>
    %135 = arith.maximumf %133, %134 : vector<64x20xf32>
    %c528 = arith.constant 528 : index
    %c0_69 = arith.constant 0 : index
    %136 = vector.load %arg3[%c528, %c0_69] : memref<1280x160xf32, #tpu.memory_space<vmem>>, vector<20x80xf32>
    %cst_70 = arith.constant dense<0.000000e+00> : vector<64x80xf32>
    %137 = tpu.matmul %135, %136, %cst_70 {dimension_numbers = #tpu.dot_dimension_numbers<[1], [0], [0], [1], [0, 0, 1, 1], [], []>} : vector<64x20xf32>, vector<20x80xf32>, vector<64x80xf32> -> vector<64x80xf32>
    %c634 = arith.constant 634 : index
    %c0_71 = arith.constant 0 : index
    %138 = vector.load %arg3[%c634, %c0_71] : memref<1280x160xf32, #tpu.memory_space<vmem>>, vector<1x80xf32>
    %139 = vector.broadcast %138 : vector<1x80xf32> to vector<64x80xf32>
    %140 = arith.addf %137, %139 : vector<64x80xf32>
    %cst_72 = arith.constant 0.000000e+00 : f32
    %141 = vector.broadcast %cst_72 : f32 to vector<64x80xf32>
    %142 = arith.maximumf %140, %141 : vector<64x80xf32>
    %c568 = arith.constant 568 : index
    %c0_73 = arith.constant 0 : index
    %143 = vector.load %arg3[%c568, %c0_73] : memref<1280x160xf32, #tpu.memory_space<vmem>>, vector<64x80xf32>
    %144 = arith.mulf %142, %143 : vector<64x80xf32>
    %c408 = arith.constant 408 : index
    %c0_74 = arith.constant 0 : index
    %145 = vector.load %arg4[%c408, %c0_74] : memref<1632x128xf32, #tpu.memory_space<vmem>>, vector<16x64xf32>
    %cst_75 = arith.constant dense<0.000000e+00> : vector<16x80xf32>
    %146 = tpu.matmul %145, %144, %cst_75 {dimension_numbers = #tpu.dot_dimension_numbers<[1], [0], [0], [1], [0, 0, 1, 1], [], []>} : vector<16x64xf32>, vector<64x80xf32>, vector<16x80xf32> -> vector<16x80xf32>
    %c424 = arith.constant 424 : index
    %c0_76 = arith.constant 0 : index
    %147 = vector.load %arg4[%c424, %c0_76] : memref<1632x128xf32, #tpu.memory_space<vmem>>, vector<80x128xf32>
    %cst_77 = arith.constant dense<0.000000e+00> : vector<16x128xf32>
    %148 = tpu.matmul %146, %147, %cst_77 {dimension_numbers = #tpu.dot_dimension_numbers<[1], [0], [0], [1], [0, 0, 1, 1], [], []>} : vector<16x80xf32>, vector<80x128xf32>, vector<16x128xf32> -> vector<16x128xf32>
    %c808 = arith.constant 808 : index
    %c0_78 = arith.constant 0 : index
    %149 = vector.load %arg4[%c808, %c0_78] : memref<1632x128xf32, #tpu.memory_space<vmem>>, vector<1x128xf32>
    %150 = vector.broadcast %149 : vector<1x128xf32> to vector<16x128xf32>
    %151 = arith.addf %148, %150 : vector<16x128xf32>
    %cst_79 = arith.constant 0.000000e+00 : f32
    %152 = vector.broadcast %cst_79 : f32 to vector<16x128xf32>
    %153 = arith.maximumf %151, %152 : vector<16x128xf32>
    %c584 = arith.constant 584 : index
    %c0_80 = arith.constant 0 : index
    %154 = vector.load %arg4[%c584, %c0_80] : memref<1632x128xf32, #tpu.memory_space<vmem>>, vector<128x64xf32>
    %cst_81 = arith.constant dense<0.000000e+00> : vector<16x64xf32>
    %155 = tpu.matmul %153, %154, %cst_81 {dimension_numbers = #tpu.dot_dimension_numbers<[1], [0], [0], [1], [0, 0, 1, 1], [], []>} : vector<16x128xf32>, vector<128x64xf32>, vector<16x64xf32> -> vector<16x64xf32>
    %c809 = arith.constant 809 : index
    %c0_82 = arith.constant 0 : index
    %156 = vector.load %arg4[%c809, %c0_82] : memref<1632x128xf32, #tpu.memory_space<vmem>>, vector<1x64xf32>
    %157 = vector.broadcast %156 : vector<1x64xf32> to vector<16x64xf32>
    %158 = arith.addf %155, %157 : vector<16x64xf32>
    %cst_83 = arith.constant 0.000000e+00 : f32
    %159 = vector.broadcast %cst_83 : f32 to vector<16x64xf32>
    %160 = arith.maximumf %158, %159 : vector<16x64xf32>
    %c712 = arith.constant 712 : index
    %c0_84 = arith.constant 0 : index
    %161 = vector.load %arg4[%c712, %c0_84] : memref<1632x128xf32, #tpu.memory_space<vmem>>, vector<64x32xf32>
    %cst_85 = arith.constant dense<0.000000e+00> : vector<16x32xf32>
    %162 = tpu.matmul %160, %161, %cst_85 {dimension_numbers = #tpu.dot_dimension_numbers<[1], [0], [0], [1], [0, 0, 1, 1], [], []>} : vector<16x64xf32>, vector<64x32xf32>, vector<16x32xf32> -> vector<16x32xf32>
    %c810 = arith.constant 810 : index
    %c0_86 = arith.constant 0 : index
    %163 = vector.load %arg4[%c810, %c0_86] : memref<1632x128xf32, #tpu.memory_space<vmem>>, vector<1x32xf32>
    %164 = vector.broadcast %163 : vector<1x32xf32> to vector<16x32xf32>
    %165 = arith.addf %162, %164 : vector<16x32xf32>
    %cst_87 = arith.constant 0.000000e+00 : f32
    %166 = vector.broadcast %cst_87 : f32 to vector<16x32xf32>
    %167 = arith.maximumf %165, %166 : vector<16x32xf32>
    %c776 = arith.constant 776 : index
    %c0_88 = arith.constant 0 : index
    %168 = vector.load %arg4[%c776, %c0_88] : memref<1632x128xf32, #tpu.memory_space<vmem>>, vector<32x128xf32>
    %cst_89 = arith.constant dense<0.000000e+00> : vector<16x128xf32>
    %169 = tpu.matmul %167, %168, %cst_89 {dimension_numbers = #tpu.dot_dimension_numbers<[1], [0], [0], [1], [0, 0, 1, 1], [], []>} : vector<16x32xf32>, vector<32x128xf32>, vector<16x128xf32> -> vector<16x128xf32>
    %c811 = arith.constant 811 : index
    %c0_90 = arith.constant 0 : index
    %170 = vector.load %arg4[%c811, %c0_90] : memref<1632x128xf32, #tpu.memory_space<vmem>>, vector<1x128xf32>
    %171 = vector.broadcast %170 : vector<1x128xf32> to vector<16x128xf32>
    %172 = arith.addf %169, %171 : vector<16x128xf32>
    %c16_91 = arith.constant 16 : index
    %c0_92 = arith.constant 0 : index
    %173 = vector.load %arg5[%c16_91, %c0_92] : memref<64x128xf32, #tpu.memory_space<vmem>>, vector<16x128xf32>
    tpu.vector_store %arg5[%c16_91, %c0_92], %172 {strides = array<i32>} : memref<64x128xf32, #tpu.memory_space<vmem>>, vector<16x128xf32>,
    %c128_93 = arith.constant 128 : index
    %c0_94 = arith.constant 0 : index
    %174 = vector.load %arg2[%c128_93, %c0_94] : memref<256x64xf32, #tpu.memory_space<vmem>>, vector<64x64xf32>
    %175 = arith.addf %20, %174 : vector<64x64xf32>
    %cst_95 = arith.constant dense<0xFF800000> : vector<64xf32>
    %176 = vector.multi_reduction <maximumf>, %175, %cst_95 [1] : vector<64x64xf32> to vector<64xf32>
    %177 = vector.shape_cast %176 : vector<64xf32> to vector<64x1xf32>
    %178 = vector.broadcast %177 : vector<64x1xf32> to vector<64x64xf32>
    %179 = arith.subf %175, %178 : vector<64x64xf32>
    %180 = math.exp %179 : vector<64x64xf32>
    %cst_96 = arith.constant dense<0.000000e+00> : vector<64xf32>
    %181 = vector.multi_reduction <add>, %180, %cst_96 [1] : vector<64x64xf32> to vector<64xf32>
    %182 = vector.shape_cast %181 : vector<64xf32> to vector<64x1xf32>
    %183 = vector.broadcast %182 : vector<64x1xf32> to vector<64x64xf32>
    %184 = arith.divf %180, %183 : vector<64x64xf32>
    %185 = arith.addf %21, %174 : vector<64x64xf32>
    %cst_97 = arith.constant dense<0xFF800000> : vector<64xf32>
    %186 = vector.multi_reduction <maximumf>, %185, %cst_97 [1] : vector<64x64xf32> to vector<64xf32>
    %187 = vector.shape_cast %186 : vector<64xf32> to vector<64x1xf32>
    %188 = vector.broadcast %187 : vector<64x1xf32> to vector<64x64xf32>
    %189 = arith.subf %185, %188 : vector<64x64xf32>
    %190 = math.exp %189 : vector<64x64xf32>
    %cst_98 = arith.constant dense<0.000000e+00> : vector<64xf32>
    %191 = vector.multi_reduction <add>, %190, %cst_98 [1] : vector<64x64xf32> to vector<64xf32>
    %192 = vector.shape_cast %191 : vector<64xf32> to vector<64x1xf32>
    %193 = vector.broadcast %192 : vector<64x1xf32> to vector<64x64xf32>
    %194 = arith.divf %190, %193 : vector<64x64xf32>
    %c640 = arith.constant 640 : index
    %c0_99 = arith.constant 0 : index
    %195 = vector.load %arg3[%c640, %c0_99] : memref<1280x160xf32, #tpu.memory_space<vmem>>, vector<64x60xf32>
    %cst_100 = arith.constant dense<0.000000e+00> : vector<64x60xf32>
    %196 = tpu.matmul %184, %195, %cst_100 {dimension_numbers = #tpu.dot_dimension_numbers<[1], [0], [0], [1], [0, 0, 1, 1], [], []>} : vector<64x64xf32>, vector<64x60xf32>, vector<64x60xf32> -> vector<64x60xf32>
    %c704 = arith.constant 704 : index
    %c0_101 = arith.constant 0 : index
    %197 = vector.load %arg3[%c704, %c0_101] : memref<1280x160xf32, #tpu.memory_space<vmem>>, vector<64x60xf32>
    %cst_102 = arith.constant dense<0.000000e+00> : vector<64x60xf32>
    %198 = tpu.matmul %194, %197, %cst_102 {dimension_numbers = #tpu.dot_dimension_numbers<[1], [0], [0], [1], [0, 0, 1, 1], [], []>} : vector<64x64xf32>, vector<64x60xf32>, vector<64x60xf32> -> vector<64x60xf32>
    %199 = arith.addf %196, %198 : vector<64x60xf32>
    %c952 = arith.constant 952 : index
    %c0_103 = arith.constant 0 : index
    %200 = vector.load %arg3[%c952, %c0_103] : memref<1280x160xf32, #tpu.memory_space<vmem>>, vector<1x60xf32>
    %201 = vector.broadcast %200 : vector<1x60xf32> to vector<64x60xf32>
    %202 = arith.addf %199, %201 : vector<64x60xf32>
    %cst_104 = arith.constant 0.000000e+00 : f32
    %203 = vector.broadcast %cst_104 : f32 to vector<64x60xf32>
    %204 = arith.maximumf %202, %203 : vector<64x60xf32>
    %c768 = arith.constant 768 : index
    %c0_105 = arith.constant 0 : index
    %205 = vector.load %arg3[%c768, %c0_105] : memref<1280x160xf32, #tpu.memory_space<vmem>>, vector<60x30xf32>
    %cst_106 = arith.constant dense<0.000000e+00> : vector<64x30xf32>
    %206 = tpu.matmul %204, %205, %cst_106 {dimension_numbers = #tpu.dot_dimension_numbers<[1], [0], [0], [1], [0, 0, 1, 1], [], []>} : vector<64x60xf32>, vector<60x30xf32>, vector<64x30xf32> -> vector<64x30xf32>
    %c953 = arith.constant 953 : index
    %c0_107 = arith.constant 0 : index
    %207 = vector.load %arg3[%c953, %c0_107] : memref<1280x160xf32, #tpu.memory_space<vmem>>, vector<1x30xf32>
    %208 = vector.broadcast %207 : vector<1x30xf32> to vector<64x30xf32>
    %209 = arith.addf %206, %208 : vector<64x30xf32>
    %cst_108 = arith.constant 0.000000e+00 : f32
    %210 = vector.broadcast %cst_108 : f32 to vector<64x30xf32>
    %211 = arith.maximumf %209, %210 : vector<64x30xf32>
    %c848 = arith.constant 848 : index
    %c0_109 = arith.constant 0 : index
    %212 = vector.load %arg3[%c848, %c0_109] : memref<1280x160xf32, #tpu.memory_space<vmem>>, vector<30x120xf32>
    %cst_110 = arith.constant dense<0.000000e+00> : vector<64x120xf32>
    %213 = tpu.matmul %211, %212, %cst_110 {dimension_numbers = #tpu.dot_dimension_numbers<[1], [0], [0], [1], [0, 0, 1, 1], [], []>} : vector<64x30xf32>, vector<30x120xf32>, vector<64x120xf32> -> vector<64x120xf32>
    %c954 = arith.constant 954 : index
    %c0_111 = arith.constant 0 : index
    %214 = vector.load %arg3[%c954, %c0_111] : memref<1280x160xf32, #tpu.memory_space<vmem>>, vector<1x120xf32>
    %215 = vector.broadcast %214 : vector<1x120xf32> to vector<64x120xf32>
    %216 = arith.addf %213, %215 : vector<64x120xf32>
    %cst_112 = arith.constant 0.000000e+00 : f32
    %217 = vector.broadcast %cst_112 : f32 to vector<64x120xf32>
    %218 = arith.maximumf %216, %217 : vector<64x120xf32>
    %c888 = arith.constant 888 : index
    %c0_113 = arith.constant 0 : index
    %219 = vector.load %arg3[%c888, %c0_113] : memref<1280x160xf32, #tpu.memory_space<vmem>>, vector<64x120xf32>
    %220 = arith.mulf %218, %219 : vector<64x120xf32>
    %c816 = arith.constant 816 : index
    %c0_114 = arith.constant 0 : index
    %221 = vector.load %arg4[%c816, %c0_114] : memref<1632x128xf32, #tpu.memory_space<vmem>>, vector<16x64xf32>
    %cst_115 = arith.constant dense<0.000000e+00> : vector<16x120xf32>
    %222 = tpu.matmul %221, %220, %cst_115 {dimension_numbers = #tpu.dot_dimension_numbers<[1], [0], [0], [1], [0, 0, 1, 1], [], []>} : vector<16x64xf32>, vector<64x120xf32>, vector<16x120xf32> -> vector<16x120xf32>
    %c832 = arith.constant 832 : index
    %c0_116 = arith.constant 0 : index
    %223 = vector.load %arg4[%c832, %c0_116] : memref<1632x128xf32, #tpu.memory_space<vmem>>, vector<120x128xf32>
    %cst_117 = arith.constant dense<0.000000e+00> : vector<16x128xf32>
    %224 = tpu.matmul %222, %223, %cst_117 {dimension_numbers = #tpu.dot_dimension_numbers<[1], [0], [0], [1], [0, 0, 1, 1], [], []>} : vector<16x120xf32>, vector<120x128xf32>, vector<16x128xf32> -> vector<16x128xf32>
    %c1216 = arith.constant 1216 : index
    %c0_118 = arith.constant 0 : index
    %225 = vector.load %arg4[%c1216, %c0_118] : memref<1632x128xf32, #tpu.memory_space<vmem>>, vector<1x128xf32>
    %226 = vector.broadcast %225 : vector<1x128xf32> to vector<16x128xf32>
    %227 = arith.addf %224, %226 : vector<16x128xf32>
    %cst_119 = arith.constant 0.000000e+00 : f32
    %228 = vector.broadcast %cst_119 : f32 to vector<16x128xf32>
    %229 = arith.maximumf %227, %228 : vector<16x128xf32>
    %c992 = arith.constant 992 : index
    %c0_120 = arith.constant 0 : index
    %230 = vector.load %arg4[%c992, %c0_120] : memref<1632x128xf32, #tpu.memory_space<vmem>>, vector<128x64xf32>
    %cst_121 = arith.constant dense<0.000000e+00> : vector<16x64xf32>
    %231 = tpu.matmul %229, %230, %cst_121 {dimension_numbers = #tpu.dot_dimension_numbers<[1], [0], [0], [1], [0, 0, 1, 1], [], []>} : vector<16x128xf32>, vector<128x64xf32>, vector<16x64xf32> -> vector<16x64xf32>
    %c1217 = arith.constant 1217 : index
    %c0_122 = arith.constant 0 : index
    %232 = vector.load %arg4[%c1217, %c0_122] : memref<1632x128xf32, #tpu.memory_space<vmem>>, vector<1x64xf32>
    %233 = vector.broadcast %232 : vector<1x64xf32> to vector<16x64xf32>
    %234 = arith.addf %231, %233 : vector<16x64xf32>
    %cst_123 = arith.constant 0.000000e+00 : f32
    %235 = vector.broadcast %cst_123 : f32 to vector<16x64xf32>
    %236 = arith.maximumf %234, %235 : vector<16x64xf32>
    %c1120 = arith.constant 1120 : index
    %c0_124 = arith.constant 0 : index
    %237 = vector.load %arg4[%c1120, %c0_124] : memref<1632x128xf32, #tpu.memory_space<vmem>>, vector<64x32xf32>
    %cst_125 = arith.constant dense<0.000000e+00> : vector<16x32xf32>
    %238 = tpu.matmul %236, %237, %cst_125 {dimension_numbers = #tpu.dot_dimension_numbers<[1], [0], [0], [1], [0, 0, 1, 1], [], []>} : vector<16x64xf32>, vector<64x32xf32>, vector<16x32xf32> -> vector<16x32xf32>
    %c1218 = arith.constant 1218 : index
    %c0_126 = arith.constant 0 : index
    %239 = vector.load %arg4[%c1218, %c0_126] : memref<1632x128xf32, #tpu.memory_space<vmem>>, vector<1x32xf32>
    %240 = vector.broadcast %239 : vector<1x32xf32> to vector<16x32xf32>
    %241 = arith.addf %238, %240 : vector<16x32xf32>
    %cst_127 = arith.constant 0.000000e+00 : f32
    %242 = vector.broadcast %cst_127 : f32 to vector<16x32xf32>
    %243 = arith.maximumf %241, %242 : vector<16x32xf32>
    %c1184 = arith.constant 1184 : index
    %c0_128 = arith.constant 0 : index
    %244 = vector.load %arg4[%c1184, %c0_128] : memref<1632x128xf32, #tpu.memory_space<vmem>>, vector<32x128xf32>
    %cst_129 = arith.constant dense<0.000000e+00> : vector<16x128xf32>
    %245 = tpu.matmul %243, %244, %cst_129 {dimension_numbers = #tpu.dot_dimension_numbers<[1], [0], [0], [1], [0, 0, 1, 1], [], []>} : vector<16x32xf32>, vector<32x128xf32>, vector<16x128xf32> -> vector<16x128xf32>
    %c1219 = arith.constant 1219 : index
    %c0_130 = arith.constant 0 : index
    %246 = vector.load %arg4[%c1219, %c0_130] : memref<1632x128xf32, #tpu.memory_space<vmem>>, vector<1x128xf32>
    %247 = vector.broadcast %246 : vector<1x128xf32> to vector<16x128xf32>
    %248 = arith.addf %245, %247 : vector<16x128xf32>
    %c32 = arith.constant 32 : index
    %c0_131 = arith.constant 0 : index
    %249 = vector.load %arg5[%c32, %c0_131] : memref<64x128xf32, #tpu.memory_space<vmem>>, vector<16x128xf32>
    tpu.vector_store %arg5[%c32, %c0_131], %248 {strides = array<i32>} : memref<64x128xf32, #tpu.memory_space<vmem>>, vector<16x128xf32>,
    %c192 = arith.constant 192 : index
    %c0_132 = arith.constant 0 : index
    %250 = vector.load %arg2[%c192, %c0_132] : memref<256x64xf32, #tpu.memory_space<vmem>>, vector<64x64xf32>
    %251 = arith.addf %20, %250 : vector<64x64xf32>
    %cst_133 = arith.constant dense<0xFF800000> : vector<64xf32>
    %252 = vector.multi_reduction <maximumf>, %251, %cst_133 [1] : vector<64x64xf32> to vector<64xf32>
    %253 = vector.shape_cast %252 : vector<64xf32> to vector<64x1xf32>
    %254 = vector.broadcast %253 : vector<64x1xf32> to vector<64x64xf32>
    %255 = arith.subf %251, %254 : vector<64x64xf32>
    %256 = math.exp %255 : vector<64x64xf32>
    %cst_134 = arith.constant dense<0.000000e+00> : vector<64xf32>
    %257 = vector.multi_reduction <add>, %256, %cst_134 [1] : vector<64x64xf32> to vector<64xf32>
    %258 = vector.shape_cast %257 : vector<64xf32> to vector<64x1xf32>
    %259 = vector.broadcast %258 : vector<64x1xf32> to vector<64x64xf32>
    %260 = arith.divf %256, %259 : vector<64x64xf32>
    %261 = arith.addf %21, %250 : vector<64x64xf32>
    %cst_135 = arith.constant dense<0xFF800000> : vector<64xf32>
    %262 = vector.multi_reduction <maximumf>, %261, %cst_135 [1] : vector<64x64xf32> to vector<64xf32>
    %263 = vector.shape_cast %262 : vector<64xf32> to vector<64x1xf32>
    %264 = vector.broadcast %263 : vector<64x1xf32> to vector<64x64xf32>
    %265 = arith.subf %261, %264 : vector<64x64xf32>
    %266 = math.exp %265 : vector<64x64xf32>
    %cst_136 = arith.constant dense<0.000000e+00> : vector<64xf32>
    %267 = vector.multi_reduction <add>, %266, %cst_136 [1] : vector<64x64xf32> to vector<64xf32>
    %268 = vector.shape_cast %267 : vector<64xf32> to vector<64x1xf32>
    %269 = vector.broadcast %268 : vector<64x1xf32> to vector<64x64xf32>
    %270 = arith.divf %266, %269 : vector<64x64xf32>
    %c960 = arith.constant 960 : index
    %c0_137 = arith.constant 0 : index
    %271 = vector.load %arg3[%c960, %c0_137] : memref<1280x160xf32, #tpu.memory_space<vmem>>, vector<64x80xf32>
    %cst_138 = arith.constant dense<0.000000e+00> : vector<64x80xf32>
    %272 = tpu.matmul %260, %271, %cst_138 {dimension_numbers = #tpu.dot_dimension_numbers<[1], [0], [0], [1], [0, 0, 1, 1], [], []>} : vector<64x64xf32>, vector<64x80xf32>, vector<64x80xf32> -> vector<64x80xf32>
    %c1024 = arith.constant 1024 : index
    %c0_139 = arith.constant 0 : index
    %273 = vector.load %arg3[%c1024, %c0_139] : memref<1280x160xf32, #tpu.memory_space<vmem>>, vector<64x80xf32>
    %cst_140 = arith.constant dense<0.000000e+00> : vector<64x80xf32>
    %274 = tpu.matmul %270, %273, %cst_140 {dimension_numbers = #tpu.dot_dimension_numbers<[1], [0], [0], [1], [0, 0, 1, 1], [], []>} : vector<64x64xf32>, vector<64x80xf32>, vector<64x80xf32> -> vector<64x80xf32>
    %275 = arith.addf %272, %274 : vector<64x80xf32>
    %c1272 = arith.constant 1272 : index
    %c0_141 = arith.constant 0 : index
    %276 = vector.load %arg3[%c1272, %c0_141] : memref<1280x160xf32, #tpu.memory_space<vmem>>, vector<1x80xf32>
    %277 = vector.broadcast %276 : vector<1x80xf32> to vector<64x80xf32>
    %278 = arith.addf %275, %277 : vector<64x80xf32>
    %cst_142 = arith.constant 0.000000e+00 : f32
    %279 = vector.broadcast %cst_142 : f32 to vector<64x80xf32>
    %280 = arith.maximumf %278, %279 : vector<64x80xf32>
    %c1088 = arith.constant 1088 : index
    %c0_143 = arith.constant 0 : index
    %281 = vector.load %arg3[%c1088, %c0_143] : memref<1280x160xf32, #tpu.memory_space<vmem>>, vector<80x40xf32>
    %cst_144 = arith.constant dense<0.000000e+00> : vector<64x40xf32>
    %282 = tpu.matmul %280, %281, %cst_144 {dimension_numbers = #tpu.dot_dimension_numbers<[1], [0], [0], [1], [0, 0, 1, 1], [], []>} : vector<64x80xf32>, vector<80x40xf32>, vector<64x40xf32> -> vector<64x40xf32>
    %c1273 = arith.constant 1273 : index
    %c0_145 = arith.constant 0 : index
    %283 = vector.load %arg3[%c1273, %c0_145] : memref<1280x160xf32, #tpu.memory_space<vmem>>, vector<1x40xf32>
    %284 = vector.broadcast %283 : vector<1x40xf32> to vector<64x40xf32>
    %285 = arith.addf %282, %284 : vector<64x40xf32>
    %cst_146 = arith.constant 0.000000e+00 : f32
    %286 = vector.broadcast %cst_146 : f32 to vector<64x40xf32>
    %287 = arith.maximumf %285, %286 : vector<64x40xf32>
    %c1168 = arith.constant 1168 : index
    %c0_147 = arith.constant 0 : index
    %288 = vector.load %arg3[%c1168, %c0_147] : memref<1280x160xf32, #tpu.memory_space<vmem>>, vector<40x160xf32>
    %cst_148 = arith.constant dense<0.000000e+00> : vector<64x160xf32>
    %289 = tpu.matmul %287, %288, %cst_148 {dimension_numbers = #tpu.dot_dimension_numbers<[1], [0], [0], [1], [0, 0, 1, 1], [], []>} : vector<64x40xf32>, vector<40x160xf32>, vector<64x160xf32> -> vector<64x160xf32>
    %c1274 = arith.constant 1274 : index
    %c0_149 = arith.constant 0 : index
    %290 = vector.load %arg3[%c1274, %c0_149] : memref<1280x160xf32, #tpu.memory_space<vmem>>, vector<1x160xf32>
    %291 = vector.broadcast %290 : vector<1x160xf32> to vector<64x160xf32>
    %292 = arith.addf %289, %291 : vector<64x160xf32>
    %cst_150 = arith.constant 0.000000e+00 : f32
    %293 = vector.broadcast %cst_150 : f32 to vector<64x160xf32>
    %294 = arith.maximumf %292, %293 : vector<64x160xf32>
    %c1208 = arith.constant 1208 : index
    %c0_151 = arith.constant 0 : index
    %295 = vector.load %arg3[%c1208, %c0_151] : memref<1280x160xf32, #tpu.memory_space<vmem>>, vector<64x160xf32>
    %296 = arith.mulf %294, %295 : vector<64x160xf32>
    %c1224 = arith.constant 1224 : index
    %c0_152 = arith.constant 0 : index
    %297 = vector.load %arg4[%c1224, %c0_152] : memref<1632x128xf32, #tpu.memory_space<vmem>>, vector<16x64xf32>
    %cst_153 = arith.constant dense<0.000000e+00> : vector<16x160xf32>
    %298 = tpu.matmul %297, %296, %cst_153 {dimension_numbers = #tpu.dot_dimension_numbers<[1], [0], [0], [1], [0, 0, 1, 1], [], []>} : vector<16x64xf32>, vector<64x160xf32>, vector<16x160xf32> -> vector<16x160xf32>
    %c1240 = arith.constant 1240 : index
    %c0_154 = arith.constant 0 : index
    %299 = vector.load %arg4[%c1240, %c0_154] : memref<1632x128xf32, #tpu.memory_space<vmem>>, vector<160x128xf32>
    %cst_155 = arith.constant dense<0.000000e+00> : vector<16x128xf32>
    %300 = tpu.matmul %298, %299, %cst_155 {dimension_numbers = #tpu.dot_dimension_numbers<[1], [0], [0], [1], [0, 0, 1, 1], [], []>} : vector<16x160xf32>, vector<160x128xf32>, vector<16x128xf32> -> vector<16x128xf32>
    %c1624 = arith.constant 1624 : index
    %c0_156 = arith.constant 0 : index
    %301 = vector.load %arg4[%c1624, %c0_156] : memref<1632x128xf32, #tpu.memory_space<vmem>>, vector<1x128xf32>
    %302 = vector.broadcast %301 : vector<1x128xf32> to vector<16x128xf32>
    %303 = arith.addf %300, %302 : vector<16x128xf32>
    %cst_157 = arith.constant 0.000000e+00 : f32
    %304 = vector.broadcast %cst_157 : f32 to vector<16x128xf32>
    %305 = arith.maximumf %303, %304 : vector<16x128xf32>
    %c1400 = arith.constant 1400 : index
    %c0_158 = arith.constant 0 : index
    %306 = vector.load %arg4[%c1400, %c0_158] : memref<1632x128xf32, #tpu.memory_space<vmem>>, vector<128x64xf32>
    %cst_159 = arith.constant dense<0.000000e+00> : vector<16x64xf32>
    %307 = tpu.matmul %305, %306, %cst_159 {dimension_numbers = #tpu.dot_dimension_numbers<[1], [0], [0], [1], [0, 0, 1, 1], [], []>} : vector<16x128xf32>, vector<128x64xf32>, vector<16x64xf32> -> vector<16x64xf32>
    %c1625 = arith.constant 1625 : index
    %c0_160 = arith.constant 0 : index
    %308 = vector.load %arg4[%c1625, %c0_160] : memref<1632x128xf32, #tpu.memory_space<vmem>>, vector<1x64xf32>
    %309 = vector.broadcast %308 : vector<1x64xf32> to vector<16x64xf32>
    %310 = arith.addf %307, %309 : vector<16x64xf32>
    %cst_161 = arith.constant 0.000000e+00 : f32
    %311 = vector.broadcast %cst_161 : f32 to vector<16x64xf32>
    %312 = arith.maximumf %310, %311 : vector<16x64xf32>
    %c1528 = arith.constant 1528 : index
    %c0_162 = arith.constant 0 : index
    %313 = vector.load %arg4[%c1528, %c0_162] : memref<1632x128xf32, #tpu.memory_space<vmem>>, vector<64x32xf32>
    %cst_163 = arith.constant dense<0.000000e+00> : vector<16x32xf32>
    %314 = tpu.matmul %312, %313, %cst_163 {dimension_numbers = #tpu.dot_dimension_numbers<[1], [0], [0], [1], [0, 0, 1, 1], [], []>} : vector<16x64xf32>, vector<64x32xf32>, vector<16x32xf32> -> vector<16x32xf32>
    %c1626 = arith.constant 1626 : index
    %c0_164 = arith.constant 0 : index
    %315 = vector.load %arg4[%c1626, %c0_164] : memref<1632x128xf32, #tpu.memory_space<vmem>>, vector<1x32xf32>
    %316 = vector.broadcast %315 : vector<1x32xf32> to vector<16x32xf32>
    %317 = arith.addf %314, %316 : vector<16x32xf32>
    %cst_165 = arith.constant 0.000000e+00 : f32
    %318 = vector.broadcast %cst_165 : f32 to vector<16x32xf32>
    %319 = arith.maximumf %317, %318 : vector<16x32xf32>
    %c1592 = arith.constant 1592 : index
    %c0_166 = arith.constant 0 : index
    %320 = vector.load %arg4[%c1592, %c0_166] : memref<1632x128xf32, #tpu.memory_space<vmem>>, vector<32x128xf32>
    %cst_167 = arith.constant dense<0.000000e+00> : vector<16x128xf32>
    %321 = tpu.matmul %319, %320, %cst_167 {dimension_numbers = #tpu.dot_dimension_numbers<[1], [0], [0], [1], [0, 0, 1, 1], [], []>} : vector<16x32xf32>, vector<32x128xf32>, vector<16x128xf32> -> vector<16x128xf32>
    %c1627 = arith.constant 1627 : index
    %c0_168 = arith.constant 0 : index
    %322 = vector.load %arg4[%c1627, %c0_168] : memref<1632x128xf32, #tpu.memory_space<vmem>>, vector<1x128xf32>
    %323 = vector.broadcast %322 : vector<1x128xf32> to vector<16x128xf32>
    %324 = arith.addf %321, %323 : vector<16x128xf32>
    %c48 = arith.constant 48 : index
    %c0_169 = arith.constant 0 : index
    %325 = vector.load %arg5[%c48, %c0_169] : memref<64x128xf32, #tpu.memory_space<vmem>>, vector<16x128xf32>
    tpu.vector_store %arg5[%c48, %c0_169], %324 {strides = array<i32>} : memref<64x128xf32, #tpu.memory_space<vmem>>, vector<16x128xf32>,
    return
  }
}

</mosaic_0001>

<bundles_post_ra>
// kernel: _lambda_.1
= control target key start
LH: loop header
LB: loop body
LE: loop exit
PB: predicated region body
PF: predicated region fallthrough
CT: control target
= control target key end

     0   :  { %10 = vsyncpa [#allocation3], 0  ;;  %s10073_s0 = inlined_call_operand.vmem [shape: f32[128,4], index: 0, kind: input, shape index: {}]   ;;  %s10074_s1 = inlined_call_operand.hbm [shape: f32[38,64], index: 1, kind: input, shape index: {}]   ;;  %s10075_s2 = inlined_call_operand.hbm [shape: f32[256,64], index: 2, kind: input, shape index: {}]   ;;  %s10076_s3 = inlined_call_operand.hbm [shape: f32[1280,160], index: 3, kind: input, shape index: {}]   ;;  %s10077_s4 = inlined_call_operand.hbm [shape: f32[1632,128], index: 4, kind: input, shape index: {}]   ;;  %s10078_s5 = inlined_call_operand.vmem [shape: f32[64,128], index: 5, kind: output, shape index: {}]  }
   0x1   :  { %11 = vsyncpa [#allocation5], 0 }
   0x2   :  { %12 = vsyncpa [#allocation8], 0  ;;  %s8687_s18 = smov [#allocation4]   ;;  %s8688_s20 = smov [#allocation2]  }
   0x3   :  { %s32_s19 = sshll.u32 %s8687_s18, 4  ;;  %s20_s21 = sshll.u32 %s8688_s20, 4  ;;  %s33_s19 = int_to_ptr.vmem [resolvable:$true] %s32_s19  ;;  %s8729_s21 = int_to_ptr.vmem [resolvable:$true] %s20_s21 }
   0x4   :  { %s8593_s24 = scalar_lea.hbm %s10075_s2, 4096 }
   0x5   :  { %p8594_p0 = scmp.ne.s32.totalorder %s10075_s2, %s8593_s24  ;;  %p8597_p1 = scmp.lt.u32.totalorder %s8593_s24, %s10075_s2 }
   0x7   :  { %p8599_p2 = pnand %p8597_p1, %p8594_p0 }
   0x9   :  { %8602 = shalt.err (!%p8599_p2)
}
   0xa   :  { %s8603_s29 = scalar_lea.vmem %s33_s19, 4096  ;;  %p8608_p4 = scmp.lt.s32.totalorder %s33_s19, %s33_s19 }
   0xb   :  { %p8604_p3 = scmp.ne.s32.totalorder %s33_s19, %s8603_s29  ;;  %p8609_p5 = scmp.lt.s32.totalorder %s8603_s29, %s8603_s29 }
   0xd   :  { %p8610_p6 = por %p8609_p5, %p8608_p4 }
   0xf   :  { %p8611_p7 = pnand %p8610_p6, %p8604_p3 }
  0x11   :  { %8614 = shalt.err (!%p8611_p7)
}
  0x12   :  { %s8689_s30 = smov 128   ;;  %s8690_s6 = smov 8  }
  0x13   :  { %38 = dma.hbm_to_vmem [thread:$0]  %s10075_s2, 4096, %s33_s19, [#allocation5], %s8689_s30, %s8689_s30, %s8690_s6  }
  0x14   :  { %s8615_s11 = scalar_lea.hbm %s10074_s1, 640 }
  0x15   :  { %p8616_p8 = scmp.ne.s32.totalorder %s10074_s1, %s8615_s11  ;;  %p8619_p9 = scmp.lt.u32.totalorder %s8615_s11, %s10074_s1 }
  0x17   :  { %p8621_p10 = pnand %p8619_p9, %p8616_p8 }
  0x19   :  { %8624 = shalt.err (!%p8621_p10)
}
  0x1a   :  { %s8625_s16 = scalar_lea.vmem %s8729_s21, 640  ;;  %p8630_p12 = scmp.lt.s32.totalorder %s8729_s21, %s8729_s21 }
  0x1b   :  { %p8626_p11 = scmp.ne.s32.totalorder %s8729_s21, %s8625_s16  ;;  %p8631_p13 = scmp.lt.s32.totalorder %s8625_s16, %s8625_s16 }
  0x1d   :  { %p8632_p0 = por %p8631_p13, %p8630_p12 }
  0x1f   :  { %p8633_p1 = pnand %p8632_p0, %p8626_p11 }
  0x21   :  { %8636 = shalt.err (!%p8633_p1)
}
  0x22   :  { %26 = dma.hbm_to_vmem [thread:$0]  %s10074_s1, 640, %s8729_s21, [#allocation3], %s8689_s30, %s8689_s30, %s8690_s6  }
  0x23   :  { %s8691_s18 = smov [#allocation6]   ;;  %s8637_s23 = scalar_lea.hbm %s10076_s3, 40960 }
  0x24   :  { %s44_s19 = sshll.u32 %s8691_s18, 4  ;;  %p8638_p2 = scmp.ne.s32.totalorder %s10076_s3, %s8637_s23  ;;  %s45_s19 = int_to_ptr.vmem [resolvable:$true] %s44_s19 }
  0x25   :  { %p8641_p3 = scmp.lt.u32.totalorder %s8637_s23, %s10076_s3 }
  0x27   :  { %p8643_p4 = pnand %p8641_p3, %p8638_p2 }
  0x29   :  { %8646 = shalt.err (!%p8643_p4)
}
  0x2a   :  { %s8647_s28 = scalar_lea.vmem %s45_s19, 40960  ;;  %p8652_p6 = scmp.lt.s32.totalorder %s45_s19, %s45_s19 }
  0x2b   :  { %p8648_p5 = scmp.ne.s32.totalorder %s45_s19, %s8647_s28  ;;  %p8653_p7 = scmp.lt.s32.totalorder %s8647_s28, %s8647_s28 }
  0x2d   :  { %p8654_p8 = por %p8653_p7, %p8652_p6 }
  0x2f   :  { %p8655_p9 = pnand %p8654_p8, %p8648_p5 }
  0x31   :  { %8658 = shalt.err (!%p8655_p9)
}
  0x32   :  { %s8692_s1 = smov 256   ;;  %s8693_s21 = smov 16  }
  0x33   :  { %50 = dma.hbm_to_vmem [thread:$0]  %s10076_s3, 40960, %s45_s19, [#allocation5], %s8692_s1, %s8692_s1, %s8693_s21  }
  0x34   :  { %s8694_s8 = smov [#allocation7]   ;;  %s8659_s12 = scalar_lea.hbm %s10077_s4, 26112 }
  0x35   :  { %s56_s9 = sshll.u32 %s8694_s8, 4  ;;  %p8660_p10 = scmp.ne.s32.totalorder %s10077_s4, %s8659_s12  ;;  %s57_s9 = int_to_ptr.vmem [resolvable:$true] %s56_s9 }
  0x36   :  { %p8663_p11 = scmp.lt.u32.totalorder %s8659_s12, %s10077_s4 }
  0x38   :  { %p8665_p12 = pnand %p8663_p11, %p8660_p10 }
  0x3a   :  { %8668 = shalt.err (!%p8665_p12)
}
  0x3b   :  { %s8669_s2 = scalar_lea.vmem %s57_s9, 26112  ;;  %p8674_p0 = scmp.lt.s32.totalorder %s57_s9, %s57_s9 }
  0x3c   :  { %p8670_p13 = scmp.ne.s32.totalorder %s57_s9, %s8669_s2  ;;  %p8675_p1 = scmp.lt.s32.totalorder %s8669_s2, %s8669_s2 }
  0x3e   :  { %p8676_p2 = por %p8675_p1, %p8674_p0 }
  0x40   :  { %p8677_p3 = pnand %p8676_p2, %p8670_p13 }
  0x42   :  { %8680 = shalt.err (!%p8677_p3)
}
  0x43   :  { %62 = dma.hbm_to_vmem [thread:$0]  %s10077_s4, 26112, %s57_s9, [#allocation8], %s8689_s30, %s8689_s30, %s8690_s6  }
  0x44   :  { %8681 = dma.done.wait [#allocation3], 640  }
  0x45   :  { %8682 = vsyncadd [#allocation3], 4294966656 }
  0x46   :  { %8683 = dma.done.wait [#allocation5], 45056  }
  0x47   :  { %8684 = vsyncadd [#allocation5], 4294922240 }
  0x48   :  { %8685 = dma.done.wait [#allocation8], 26112  }
  0x49   :  { %8686 = vsyncadd [#allocation8], 4294941184  ;;  %vm151_vm0 = vcmask 1043456   ;;  %vm102_vm1 = vcmask 31744   ;;  %v75_v0 = vld [vmem:[#allocation2] sm:$0xf] }
  0x4a   :  { %v82_v1 = vld [vmem:[%s10073_s0] sm:$0xff]  ;;  %v83_v2 = vld [vmem:[%s10073_s0 + $0x8] sm:$0xff]  ;;  %6739 = vmatprep.subr.msk.mxu0 %vm151_vm0, %v75_v0  ;;  %v84_v3 = vld [vmem:[%s10073_s0 + $0x10] sm:$0xff]  ;;  %vm352_vm4 = vcmask 261120  }
  0x4b   :  { %6741 = vmatprep.mubr.msk.f32.mxu0 %vm102_vm1, %v82_v1  ;;  %6740 = vmatpush3.msk.msra.mxu0 %vm151_vm0, %v75_v0  ;;  %v85_v4 = vld [vmem:[%s10073_s0 + $0x18] sm:$0xff]  ;;  %v86_v5 = vld [vmem:[%s10073_s0 + $0x20] sm:$0xff]  ;;  %v87_v6 = vld [vmem:[%s10073_s0 + $0x28] sm:$0xff] }
  0x4c   :  { %6742 = vmatmul.mubr.msk.f32.vlgmr.msra.gmra.mrb[0].mxu0 %vm102_vm1, %v83_v2  ;;  %v88_v7 = vld [vmem:[%s10073_s0 + $0x30] sm:$0xff]  ;;  %v89_v8 = vld [vmem:[%s10073_s0 + $0x38] sm:$0xff]  ;;  %v90_v9 = vld [vmem:[%s10073_s0 + $0x40] sm:$0xff] }
  0x4d   :  { %6744 = vmatprep.mubr.msk.f32.mxu0 %vm102_vm1, %v84_v3  ;;  %v91_v10 = vld [vmem:[%s10073_s0 + $0x48] sm:$0xff]  ;;  %v92_v11 = vld [vmem:[%s10073_s0 + $0x50] sm:$0xff]  ;;  %v93_v12 = vld [vmem:[%s10073_s0 + $0x58] sm:$0xff] }
  0x4e   :  { %v94_v13 = vld [vmem:[%s10073_s0 + $0x60] sm:$0xff]  ;;  %v95_v14 = vld [vmem:[%s10073_s0 + $0x68] sm:$0xff]  ;;  %v96_v15 = vld [vmem:[%s10073_s0 + $0x70] sm:$0xff] }
  0x4f   :  { %v97_v16 = vld [vmem:[%s10073_s0 + $0x78] sm:$0xff]  ;;  %v76_v17 = vld [vmem:[#allocation2 + $0x4] sm:$0xff]  ;;  %v77_v18 = vld [vmem:[#allocation2 + $0xc] sm:$0xff]  ;;  %s8695_s0 = smov 96  }
  0x50   :  { %6745 = vmatmul.mubr.msk.f32.gmra.mrb[2].mxu0 %vm102_vm1, %v85_v4  ;;  %v7617_v19 = vpack.c.bf16 %v77_v18, %v76_v17  ;;  %v78_v20 = vld [vmem:[#allocation2 + $0x14] sm:$0xff]  ;;  %v79_v21 = vld [vmem:[#allocation2 + $0x1c] sm:$0xff]  ;;  %v8859_v23 = vld [vmem:[#allocation2 + $0x24] ss:$0 sm:$0xff] }
  0x51   :  { %6747 = vmatprep.mubr.msk.f32.mxu0 %vm102_vm1, %v86_v5  ;;  %v7621_v22 = vpack.c.bf16 %v79_v21, %v78_v20 }
  0x52   :  { %7618 = vmatprep.subr.bf16.mxu1 %v7617_v19 }
  0x53   :  { %7620 = vmatpush3.bf16.msra.mxu1 %v7617_v19 }
  0x54   :  { %6748 = vmatmul.mubr.msk.f32.gmra.mrb[4].mxu0 %vm102_vm1, %v87_v6  ;;  %7622 = vmatprep.subr.bf16.mxu1 %v7621_v22 }
  0x55   :  { %6750 = vmatprep.mubr.msk.f32.mxu0 %vm102_vm1, %v88_v7 }
  0x57   :  { %7624 = vmatpush3.bf16.msra.mxu1 %v7621_v22 }
  0x58   :  { %6751 = vmatmul.mubr.msk.f32.gmra.mrb[6].mxu0 %vm102_vm1, %v89_v8 }
  0x59   :  { %6753 = vmatprep.mubr.msk.f32.mxu0 %vm102_vm1, %v90_v9 }
  0x5c   :  { %6754 = vmatmul.mubr.msk.f32.gmra.mrb[8].mxu0 %vm102_vm1, %v91_v10 }
  0x5d   :  { %6756 = vmatprep.mubr.msk.f32.mxu0 %vm102_vm1, %v92_v11 }
  0x60   :  { %6757 = vmatmul.mubr.msk.f32.gmra.mrb[10].mxu0 %vm102_vm1, %v93_v12 }
  0x61   :  { %6759 = vmatprep.mubr.msk.f32.mxu0 %vm102_vm1, %v94_v13 }
  0x64   :  { %6760 = vmatmul.mubr.msk.f32.gmra.mrb[12].mxu0 %vm102_vm1, %v95_v14 }
  0x65   :  { %6762 = vmatprep.mubr.msk.f32.mxu0 %vm102_vm1, %v96_v15 }
  0x68   :  { %6763 = vmatmul.mubr.msk.f32.gmra.mrb[14].mxu0 %vm102_vm1, %v97_v16 }
 0x11f   :  { %v6743_v24 = vpop.f32.mrb[0].mxu0 }
 0x120   :  { %v227_v25 = vadd.f32 %v6743_v24, %v8859_v23  ;;  %v221_v26 = vpop.f32.mrb[1].mxu0 }
 0x121   :  { %v222_v27 = vadd.f32 %v8859_v23, %v221_v26 }
 0x122   :  { %v317_v28 = vmul.f32 0.01, %v227_v25  ;;  %vm301_vm2 = vcmp.gt.f32.partialorder %v227_v25, 0.0 }
 0x123   :  { %v6746_v29 = vpop.f32.mrb[2].mxu0  ;;  %vm300_vm3 = vcmp.gt.f32.partialorder %v222_v27, 0.0  ;;  %v316_v30 = vmul.f32 0.01, %v222_v27 }
 0x124   :  { %v237_v31 = vadd.f32 %v6746_v29, %v8859_v23  ;;  %v231_v32 = vpop.f32.mrb[3].mxu0  ;;  %v333_v36 = vsel %vm301_vm2, %v227_v25, %v317_v28  ;;  %v6019_v25 = vld [vmem:[#allocation2 + $0x25] ss:$0 sm:$0xff] }
 0x125   :  { %v232_v33 = vadd.f32 %v8859_v23, %v231_v32  ;;  %v332_v34 = vsel %vm300_vm3, %v222_v27, %v316_v30 }
 0x126   :  { %v319_v35 = vmul.f32 0.01, %v237_v31  ;;  %6773 = vmatprep.mubr.msk.f32.mxu1 %vm352_vm4, %v332_v34  ;;  %vm303_vm5 = vcmp.gt.f32.partialorder %v237_v31, 0.0 }
 0x127   :  { %vm302_vm6 = vcmp.gt.f32.partialorder %v232_v33, 0.0  ;;  %v318_v37 = vmul.f32 0.01, %v232_v33  ;;  %v6749_v38 = vpop.f32.mrb[4].mxu0  ;;  %6774 = vmatmul.mubr.msk.f32.vlgmr.msra.gmra.mrb[0].mxu1 %vm352_vm4, %v333_v36 }
 0x128   :  { %v247_v39 = vadd.f32 %v6749_v38, %v8859_v23  ;;  %v241_v40 = vpop.f32.mrb[5].mxu0  ;;  %v335_v44 = vsel %vm303_vm5, %v237_v31, %v319_v35  ;;  %vm8944_vm5 = vmpackc.low %vm352_vm4, %vm352_vm4 }
 0x129   :  { %v242_v41 = vadd.f32 %v8859_v23, %v241_v40  ;;  %v334_v42 = vsel %vm302_vm6, %v232_v33, %v318_v37  ;;  %vm884_vm6 = vcmask 523264  }
 0x12a   :  { %v321_v43 = vmul.f32 0.01, %v247_v39  ;;  %6776 = vmatprep.mubr.msk.f32.mxu1 %vm352_vm4, %v334_v42  ;;  %vm305_vm7 = vcmp.gt.f32.partialorder %v247_v39, 0.0 }
 0x12b   :  { %vm304_vm8 = vcmp.gt.f32.partialorder %v242_v41, 0.0  ;;  %v320_v45 = vmul.f32 0.01, %v242_v41  ;;  %v6752_v46 = vpop.f32.mrb[6].mxu0  ;;  %6777 = vmatmul.mubr.msk.f32.gmra.mrb[2].mxu1 %vm352_vm4, %v335_v44 }
 0x12c   :  { %v257_v47 = vadd.f32 %v6752_v46, %v8859_v23  ;;  %v251_v48 = vpop.f32.mrb[7].mxu0  ;;  %v337_v52 = vsel %vm305_vm7, %v247_v39, %v321_v43  ;;  %vm1364_vm7 = vcmask 162816  }
 0x12d   :  { %v252_v49 = vadd.f32 %v8859_v23, %v251_v48  ;;  %v336_v50 = vsel %vm304_vm8, %v242_v41, %v320_v45  ;;  %vm1533_vm8 = vcmask 1041408  }
 0x12e   :  { %v323_v51 = vmul.f32 0.01, %v257_v47  ;;  %6779 = vmatprep.mubr.msk.f32.mxu1 %vm352_vm4, %v336_v50  ;;  %vm307_vm9 = vcmp.gt.f32.partialorder %v257_v47, 0.0 }
 0x12f   :  { %vm306_vm10 = vcmp.gt.f32.partialorder %v252_v49, 0.0  ;;  %v322_v53 = vmul.f32 0.01, %v252_v49  ;;  %v6755_v54 = vpop.f32.mrb[8].mxu0  ;;  %6780 = vmatmul.mubr.msk.f32.gmra.mrb[4].mxu1 %vm352_vm4, %v337_v52 }
 0x130   :  { %v267_v55 = vadd.f32 %v6755_v54, %v8859_v23  ;;  %v261_v56 = vpop.f32.mrb[9].mxu0  ;;  %v339_v60 = vsel %vm307_vm9, %v257_v47, %v323_v51  ;;  %vm8696_vm9 = vmmov 1  }
 0x131   :  { %v262_v57 = vadd.f32 %v8859_v23, %v261_v56  ;;  %v338_v58 = vsel %vm306_vm10, %v252_v49, %v322_v53  ;;  %vm7710_vm10 = vmpackc.low %vm1533_vm8, %vm8696_vm9 }
 0x132   :  { %v325_v59 = vmul.f32 0.01, %v267_v55  ;;  %6782 = vmatprep.mubr.msk.f32.mxu1 %vm352_vm4, %v338_v58  ;;  %vm309_vm11 = vcmp.gt.f32.partialorder %v267_v55, 0.0 }
 0x133   :  { %vm308_vm12 = vcmp.gt.f32.partialorder %v262_v57, 0.0  ;;  %v324_v61 = vmul.f32 0.01, %v262_v57  ;;  %6783 = vmatmul.mubr.msk.f32.gmra.mrb[6].mxu1 %vm352_vm4, %v339_v60  ;;  %v6758_v62 = vpop.f32.mrb[10].mxu0 }
 0x134   :  { %v277_v63 = vadd.f32 %v6758_v62, %v8859_v23  ;;  %v271_v0 = vpop.f32.mrb[11].mxu0  ;;  %v341_v4 = vsel %vm309_vm11, %v267_v55, %v325_v59  ;;  %vm1508_vm11 = vcmask 80896  }
 0x135   :  { %v340_v1 = vsel %vm308_vm12, %v262_v57, %v324_v61  ;;  %v272_v2 = vadd.f32 %v8859_v23, %v271_v0  ;;  %vm1759_vm12 = vcmask 326656  }
 0x136   :  { %6785 = vmatprep.mubr.msk.f32.mxu1 %vm352_vm4, %v340_v1  ;;  %vm311_vm13 = vcmp.gt.f32.partialorder %v277_v63, 0.0  ;;  %v327_v3 = vmul.f32 0.01, %v277_v63 }
 0x137   :  { %6786 = vmatmul.mubr.msk.f32.gmra.mrb[8].mxu1 %vm352_vm4, %v341_v4  ;;  %vm310_vm14 = vcmp.gt.f32.partialorder %v272_v2, 0.0  ;;  %v326_v5 = vmul.f32 0.01, %v272_v2  ;;  %v6761_v6 = vpop.f32.mrb[12].mxu0 }
 0x138   :  { %v287_v7 = vadd.f32 %v6761_v6, %v8859_v23  ;;  %v343_v8 = vsel %vm311_vm13, %v277_v63, %v327_v3  ;;  %v281_v9 = vpop.f32.mrb[13].mxu0  ;;  %vm3021_vm13 = vcmask 654336  }
 0x139   :  { %v342_v10 = vsel %vm310_vm14, %v272_v2, %v326_v5  ;;  %v282_v11 = vadd.f32 %v8859_v23, %v281_v9  ;;  %vm3891_vm14 = vcmask 490496  }
 0x13a   :  { %6788 = vmatprep.mubr.msk.f32.mxu1 %vm352_vm4, %v342_v10  ;;  %vm313_vm15 = vcmp.gt.f32.partialorder %v287_v7, 0.0  ;;  %v329_v12 = vmul.f32 0.01, %v287_v7 }
 0x13b   :  { %6789 = vmatmul.mubr.msk.f32.gmra.mrb[10].mxu1 %vm352_vm4, %v343_v8  ;;  %vm312_vm1 = vcmp.gt.f32.partialorder %v282_v11, 0.0  ;;  %v328_v13 = vmul.f32 0.01, %v282_v11  ;;  %v6764_v14 = vpop.f32.mrb[14].mxu0 }
 0x13c   :  { %v297_v15 = vadd.f32 %v6764_v14, %v8859_v23  ;;  %v345_v16 = vsel %vm313_vm15, %v287_v7, %v329_v12  ;;  %v291_v17 = vpop.f32.mrb[15].mxu0  ;;  %vm7976_vm15 = vmpackc.low %vm151_vm0, %vm8696_vm9 }
 0x13d   :  { %v344_v18 = vsel %vm312_vm1, %v282_v11, %v328_v13  ;;  %v292_v19 = vadd.f32 %v8859_v23, %v291_v17 }
 0x13e   :  { %6791 = vmatprep.mubr.msk.f32.mxu1 %vm352_vm4, %v344_v18  ;;  %vm315_vm2 = vcmp.gt.f32.partialorder %v297_v15, 0.0  ;;  %v331_v20 = vmul.f32 0.01, %v297_v15 }
 0x13f   :  { %6792 = vmatmul.mubr.msk.f32.gmra.mrb[12].mxu1 %vm352_vm4, %v345_v16  ;;  %vm314_vm3 = vcmp.gt.f32.partialorder %v292_v19, 0.0  ;;  %v330_v21 = vmul.f32 0.01, %v292_v19 }
 0x140   :  { %v347_v22 = vsel %vm315_vm2, %v297_v15, %v331_v20  ;;  %vm4037_vm2 = vcmask 244736  }
 0x141   :  { %v346_v24 = vsel %vm314_vm3, %v292_v19, %v330_v21  ;;  %vm4298_vm3 = vcmask 982016  }
 0x142   :  { %6794 = vmatprep.mubr.msk.f32.mxu1 %vm352_vm4, %v346_v24 }
 0x143   :  { %6795 = vmatmul.mubr.msk.f32.gmra.mrb[14].mxu1 %vm352_vm4, %v347_v22 }
 0x1fa   :  { %v6775_v26 = vpop.f32.mrb[0].mxu1 }
 0x1fb   :  { %v8893_v27 = vadd.f32 %v6775_v26, %v6019_v25  ;;  %v467_v28 = vpop.f32.mrb[1].mxu1 }
 0x1fc   :  { %v468_v23 = vadd.f32 %v6019_v25, %v467_v28 }
 0x1fe   :  { %v6778_v29 = vpop.f32.mrb[2].mxu1  ;;  %6813 = vmatprep.mubr.msk.f32.mxu0 %vm352_vm4, %v468_v23  ;;  %v8297_v30 = vpack.i.bf16 %v8893_v27, %v468_v23 }
 0x1ff   :  { %v8897_v31 = vadd.f32 %v6778_v29, %v6019_v25  ;;  %v477_v32 = vpop.f32.mrb[3].mxu1 }
 0x200   :  { %v8899_v33 = vadd.f32 %v6019_v25, %v477_v32  ;;  %8298 = vrot.lane.b32.xlu0 %v8297_v30, %s8695_s0 }
 0x202   :  { %v8302_v34 = vpack.i.bf16 %v8897_v31, %v8899_v33  ;;  %v6781_v35 = vpop.f32.mrb[4].mxu1 }
 0x203   :  { %v487_v36 = vpop.f32.mrb[5].mxu1  ;;  %v8907_v43 = vadd.f32 %v6781_v35, %v6019_v25 }
 0x204   :  { %8303 = vrot.lane.b32.xlu0 %v8302_v34, %s8695_s0  ;;  %v8909_v44 = vadd.f32 %v6019_v25, %v487_v36 }
 0x206   :  { %v6784_v37 = vpop.f32.mrb[6].mxu1  ;;  %v8312_v50 = vpack.i.bf16 %v8907_v43, %v8909_v44 }
 0x207   :  { %v497_v38 = vpop.f32.mrb[7].mxu1  ;;  %v8920_v51 = vadd.f32 %v6784_v37, %v6019_v25  ;;  %v868_v37 = vld [vmem:[#allocation4] sm:$0xff] }
 0x208   :  { %v8922_v52 = vadd.f32 %v6019_v25, %v497_v38 }
 0x20a   :  { %v6787_v39 = vpop.f32.mrb[8].mxu1  ;;  %v8322_v58 = vpack.i.bf16 %v8920_v51, %v8922_v52 }
 0x20b   :  { %v8905_v40 = vadd.f32 %v6787_v39, %v6019_v25  ;;  %v507_v41 = vpop.f32.mrb[9].mxu1 }
 0x20c   :  { %v508_v42 = vadd.f32 %v6019_v25, %v507_v41  ;;  %v870_v41 = vld [vmem:[#allocation4 + $0x10] sm:$0xff] }
 0x20e   :  { %6841 = vmatprep.mubr.msk.f32.mxu1 %vm352_vm4, %v508_v42  ;;  %v8307_v45 = vpack.i.bf16 %v8905_v40, %v508_v42  ;;  %v6790_v46 = vpop.f32.mrb[10].mxu1 }
 0x20f   :  { %v8913_v47 = vadd.f32 %v6790_v46, %v6019_v25  ;;  %v517_v48 = vpop.f32.mrb[11].mxu1 }
 0x210   :  { %8308 = vrot.lane.b32.xlu1 %v8307_v45, %s8695_s0  ;;  %v8916_v49 = vadd.f32 %v6019_v25, %v517_v48  ;;  %v871_v45 = vld [vmem:[#allocation4 + $0x18] sm:$0xff] }
 0x212   :  { %v8317_v53 = vpack.i.bf16 %v8913_v47, %v8916_v49  ;;  %v6793_v54 = vpop.f32.mrb[12].mxu1 }
 0x213   :  { %v8926_v55 = vadd.f32 %v6793_v54, %v6019_v25  ;;  %v527_v56 = vpop.f32.mrb[13].mxu1  ;;  %v874_v54 = vld [vmem:[#allocation4 + $0x30] sm:$0xff] }
 0x214   :  { %8313 = vrot.lane.b32.xlu1 %v8312_v50, %s8695_s0  ;;  %8318 = vrot.lane.b32.xlu0 %v8317_v53, %s8695_s0  ;;  %v8930_v57 = vadd.f32 %v6019_v25, %v527_v56 }
 0x216   :  { %v8327_v59 = vpack.i.bf16 %v8926_v55, %v8930_v57  ;;  %v6796_v60 = vpop.f32.mrb[14].mxu1 }
 0x217   :  { %v8936_v61 = vadd.f32 %v6796_v60, %v6019_v25  ;;  %v537_v62 = vpop.f32.mrb[15].mxu1 }
 0x218   :  { %8323 = vrot.lane.b32.xlu1 %v8322_v58, %s8695_s0  ;;  %8328 = vrot.lane.b32.xlu0 %v8327_v59, %s8695_s0  ;;  %v538_v63 = vadd.f32 %v6019_v25, %v537_v62  ;;  %v875_v62 = vld [vmem:[#allocation4 + $0x38] sm:$0xff] }
 0x21a   :  { %v8332_v0 = vpack.i.bf16 %v8936_v61, %v538_v63 }
 0x21c   :  { %8333 = vrot.lane.b32.xlu1 %v8332_v0, %s8695_s0 }
 0x272   :  { %v8299_v1 = vpop.permute.xlu0 %8298 }
 0x273   :  { %v8301_v2 = vunpack.i.h.bf16 %v8299_v1  ;;  %v8300_v3 = vunpack.i.l.bf16 %v8299_v1 }
 0x275   :  { %v7649_v5 = vpack.c.bf16 %v8301_v2, %v8300_v3 }
 0x276   :  { %v8304_v6 = vpop.permute.xlu0 %8303 }
 0x277   :  { %v8306_v7 = vunpack.i.h.bf16 %v8304_v6  ;;  %v8305_v8 = vunpack.i.l.bf16 %v8304_v6  ;;  %7651 = vmatprep.subr.msk.bf16.mxu1 %vm8944_vm5, %v7649_v5 }
 0x278   :  { %7654 = vmatpush3.bf16.xpose.msk.msra.mxu1 %vm8944_vm5, %v7649_v5 }
 0x279   :  { %v7655_v9 = vpack.c.bf16 %v8306_v7, %v8305_v8 }
 0x27b   :  { %7657 = vmatprep.subr.msk.bf16.mxu1 %vm8944_vm5, %v7655_v9 }
 0x280   :  { %7660 = vmatpush3.bf16.xpose.msk.msra.mxu1 %vm8944_vm5, %v7655_v9 }
 0x282   :  { %v8309_v10 = vpop.permute.xlu1 %8308 }
 0x283   :  { %v8311_v11 = vunpack.i.h.bf16 %v8309_v10  ;;  %v8310_v12 = vunpack.i.l.bf16 %v8309_v10 }
 0x285   :  { %v7625_v13 = vpack.c.bf16 %v8311_v11, %v8310_v12 }
 0x286   :  { %v8314_v14 = vpop.permute.xlu1 %8313  ;;  %v8319_v15 = vpop.permute.xlu0 %8318 }
 0x287   :  { %v8316_v16 = vunpack.i.h.bf16 %v8314_v14  ;;  %v8315_v17 = vunpack.i.l.bf16 %v8314_v14  ;;  %7627 = vmatprep.subr.msk.bf16.mxu0 %vm8944_vm5, %v7625_v13  ;;  %v8321_v18 = vunpack.i.h.bf16 %v8319_v15  ;;  %v8320_v19 = vunpack.i.l.bf16 %v8319_v15 }
 0x288   :  { %7630 = vmatpush3.bf16.xpose.msk.msra.mxu0 %vm8944_vm5, %v7625_v13 }
 0x289   :  { %v7661_v20 = vpack.c.bf16 %v8316_v16, %v8315_v17  ;;  %v7631_v21 = vpack.c.bf16 %v8321_v18, %v8320_v19 }
 0x28a   :  { %v8324_v22 = vpop.permute.xlu1 %8323  ;;  %v8329_v24 = vpop.permute.xlu0 %8328 }
 0x28b   :  { %v8326_v25 = vunpack.i.h.bf16 %v8324_v22  ;;  %v8325_v26 = vunpack.i.l.bf16 %v8324_v22  ;;  %7663 = vmatprep.subr.msk.bf16.mxu1 %vm8944_vm5, %v7661_v20  ;;  %7633 = vmatprep.subr.msk.bf16.mxu0 %vm8944_vm5, %v7631_v21  ;;  %v8331_v28 = vunpack.i.h.bf16 %v8329_v24  ;;  %v8330_v23 = vunpack.i.l.bf16 %v8329_v24 }
 0x28c   :  { %7666 = vmatpush3.bf16.xpose.msk.msra.mxu1 %vm8944_vm5, %v7661_v20 }
 0x28d   :  { %v7667_v29 = vpack.c.bf16 %v8326_v25, %v8325_v26  ;;  %v7637_v30 = vpack.c.bf16 %v8331_v28, %v8330_v23  ;;  %v1077_v28 = vld [vmem:[#allocation6 + $0x80] sm:$0xff]  ;;  %v1078_v23 = vld [vmem:[#allocation6 + $0x90] sm:$0xff] }
 0x28e   :  { %v8334_v32 = vpop.permute.xlu1 %8333 }
 0x28f   :  { %7669 = vmatprep.subr.msk.bf16.mxu1 %vm8944_vm5, %v7667_v29  ;;  %v8336_v34 = vunpack.i.h.bf16 %v8334_v32  ;;  %v8335_v35 = vunpack.i.l.bf16 %v8334_v32 }
 0x290   :  { %7636 = vmatpush3.bf16.xpose.msk.msra.mxu0 %vm8944_vm5, %v7631_v21 }
 0x291   :  { %7639 = vmatprep.subr.msk.bf16.mxu0 %vm8944_vm5, %v7637_v30  ;;  %v7643_v36 = vpack.c.bf16 %v8336_v34, %v8335_v35 }
 0x294   :  { %7672 = vmatpush3.bf16.xpose.msk.msra.mxu1 %vm8944_vm5, %v7667_v29  ;;  %v7673_v29 = vpack.c.bf16 %v1078_v23, %v1077_v28 }
 0x298   :  { %7642 = vmatpush3.bf16.xpose.msk.msra.mxu0 %vm8944_vm5, %v7637_v30 }
 0x299   :  { %7645 = vmatprep.subr.msk.bf16.mxu0 %vm8944_vm5, %v7643_v36 }
 0x29b   :  { %6842 = vmatmul.mubr.msk.f32.vlgmr.msra.gmra.mrb[16].mxu1 %vm352_vm4, %v8905_v40 }
 0x29c   :  { %6844 = vmatprep.mubr.msk.f32.mxu1 %vm352_vm4, %v8916_v49 }
 0x29f   :  { %6845 = vmatmul.mubr.msk.f32.gmra.mrb[18].mxu1 %vm352_vm4, %v8913_v47  ;;  %v872_v47 = vld [vmem:[#allocation4 + $0x20] sm:$0xff] }
 0x2a0   :  { %7648 = vmatpush3.bf16.xpose.msk.msra.mxu0 %vm8944_vm5, %v7643_v36  ;;  %6847 = vmatprep.mubr.msk.f32.mxu1 %vm352_vm4, %v8930_v57 }
 0x2a1   :  { %7674 = vmatprep.subr.bf16.mxu0 %v7673_v29 }
 0x2a3   :  { %6848 = vmatmul.mubr.msk.f32.gmra.mrb[20].mxu1 %vm352_vm4, %v8926_v55 }
 0x2a4   :  { %6850 = vmatprep.mubr.msk.f32.mxu1 %vm352_vm4, %v538_v63 }
 0x2a7   :  { %6814 = vmatmul.mubr.msk.f32.vlgmr.msra.gmra.mrb[16].mxu0 %vm352_vm4, %v8893_v27  ;;  %6851 = vmatmul.mubr.msk.f32.gmra.mrb[22].mxu1 %vm352_vm4, %v8936_v61  ;;  %v869_v27 = vld [vmem:[#allocation4 + $0x8] sm:$0xff] }
 0x2a8   :  { %6816 = vmatprep.mubr.msk.f32.mxu0 %vm352_vm4, %v8899_v33  ;;  %7676 = vmatpush3.bf16.msra.mxu0 %v7673_v29 }
 0x2ab   :  { %6817 = vmatmul.mubr.msk.f32.gmra.mrb[18].mxu0 %vm352_vm4, %v8897_v31 }
 0x2ac   :  { %6819 = vmatprep.mubr.msk.f32.mxu0 %vm352_vm4, %v8909_v44 }
 0x2af   :  { %6820 = vmatmul.mubr.msk.f32.gmra.mrb[20].mxu0 %vm352_vm4, %v8907_v43 }
 0x2b0   :  { %6822 = vmatprep.mubr.msk.f32.mxu0 %vm352_vm4, %v8922_v52  ;;  %v873_v52 = vld [vmem:[#allocation4 + $0x28] sm:$0xff] }
 0x2b3   :  { %6823 = vmatmul.mubr.msk.f32.gmra.mrb[22].mxu0 %vm352_vm4, %v8920_v51 }
 0x36e   :  { %v9007_v38 = vpop.f32.mrb[16].mxu1 }
 0x36f   :  { %v9009_v33 = vpop.f32.mrb[17].mxu1  ;;  %v9012_v31 = vadd.f32 %v9007_v38, %v869_v27 }
 0x370   :  { %v9015_v39 = vadd.f32 %v868_v37, %v9009_v33 }
 0x371   :  { %v984_v40 = vsel %vm884_vm6, %v9012_v31, -inf }
 0x372   :  { %985 = vmax.xlane.f32.xlu1 %v984_v40  ;;  %v9019_v42 = vpop.f32.mrb[18].mxu1  ;;  %v981_v43 = vsel %vm884_vm6, %v9015_v39, -inf }
 0x373   :  { %982 = vmax.xlane.f32.xlu0 %v981_v43  ;;  %v9023_v44 = vpop.f32.mrb[19].mxu1  ;;  %v9033_v50 = vadd.f32 %v9019_v42, %v871_v45 }
 0x374   :  { %v9026_v46 = vadd.f32 %v870_v41, %v9023_v44 }
 0x375   :  { %v990_v57 = vsel %vm884_vm6, %v9033_v50, -inf }
 0x376   :  { %v9028_v48 = vpop.f32.mrb[20].mxu1  ;;  %v987_v49 = vsel %vm884_vm6, %v9026_v46, -inf }
 0x377   :  { %988 = vmax.xlane.f32.xlu0 %v987_v49  ;;  %v9035_v51 = vpop.f32.mrb[21].mxu1  ;;  %v9049_v59 = vadd.f32 %v9028_v48, %v873_v52 }
 0x378   :  { %v9038_v53 = vadd.f32 %v872_v47, %v9035_v51 }
 0x379   :  { %v996_v1 = vsel %vm884_vm6, %v9049_v59, -inf }
 0x37a   :  { %v9040_v55 = vpop.f32.mrb[16].mxu0  ;;  %v9042_v56 = vpop.f32.mrb[22].mxu1  ;;  %v993_v58 = vsel %vm884_vm6, %v9038_v53, -inf }
 0x37b   :  { %991 = vmax.xlane.f32.xlu0 %v990_v57  ;;  %994 = vmax.xlane.f32.xlu1 %v993_v58  ;;  %v9051_v60 = vpop.f32.mrb[17].mxu0  ;;  %v9053_v61 = vpop.f32.mrb[23].mxu1  ;;  %v9065_v3 = vadd.f32 %v9042_v56, %v875_v62  ;;  %v9079_v9 = vadd.f32 %v9040_v55, %v869_v27 }
 0x37c   :  { %v9056_v63 = vadd.f32 %v874_v54, %v9053_v61  ;;  %v9068_v4 = vadd.f32 %v868_v37, %v9051_v60 }
 0x37d   :  { %v1002_v7 = vsel %vm884_vm6, %v9065_v3, -inf  ;;  %v888_v13 = vsel %vm884_vm6, %v9079_v9, -inf }
 0x37e   :  { %v9058_v0 = vpop.f32.mrb[18].mxu0  ;;  %v999_v2 = vsel %vm884_vm6, %v9056_v63, -inf  ;;  %v885_v8 = vsel %vm884_vm6, %v9068_v4, -inf }
 0x37f   :  { %997 = vmax.xlane.f32.xlu0 %v996_v1  ;;  %1000 = vmax.xlane.f32.xlu1 %v999_v2  ;;  %v9070_v5 = vpop.f32.mrb[19].mxu0  ;;  %v9093_v15 = vadd.f32 %v9058_v0, %v871_v45 }
 0x380   :  { %v9082_v10 = vadd.f32 %v870_v41, %v9070_v5 }
 0x381   :  { %v894_v18 = vsel %vm884_vm6, %v9093_v15, -inf }
 0x382   :  { %v9072_v6 = vpop.f32.mrb[20].mxu0  ;;  %v891_v14 = vsel %vm884_vm6, %v9082_v10, -inf }
 0x383   :  { %1003 = vmax.xlane.f32.xlu0 %v1002_v7  ;;  %886 = vmax.xlane.f32.xlu1 %v885_v8  ;;  %v9084_v11 = vpop.f32.mrb[21].mxu0  ;;  %v9105_v20 = vadd.f32 %v9072_v6, %v873_v52 }
 0x384   :  { %v9096_v16 = vadd.f32 %v872_v47, %v9084_v11 }
 0x385   :  { %v900_v22 = vsel %vm884_vm6, %v9105_v20, -inf }
 0x386   :  { %v9086_v12 = vpop.f32.mrb[22].mxu0  ;;  %v897_v19 = vsel %vm884_vm6, %v9096_v16, -inf }
 0x387   :  { %889 = vmax.xlane.f32.xlu0 %v888_v13  ;;  %892 = vmax.xlane.f32.xlu1 %v891_v14  ;;  %v9098_v17 = vpop.f32.mrb[23].mxu0  ;;  %v9115_v25 = vadd.f32 %v9086_v12, %v875_v62 }
 0x388   :  { %v9108_v21 = vadd.f32 %v874_v54, %v9098_v17 }
 0x389   :  { %v906_v26 = vsel %vm884_vm6, %v9115_v25, -inf }
 0x38a   :  { %v903_v24 = vsel %vm884_vm6, %v9108_v21, -inf }
 0x38b   :  { %895 = vmax.xlane.f32.xlu0 %v894_v18  ;;  %898 = vmax.xlane.f32.xlu1 %v897_v19 }
 0x38f   :  { %901 = vmax.xlane.f32.xlu0 %v900_v22  ;;  %904 = vmax.xlane.f32.xlu1 %v903_v24 }
 0x393   :  { %907 = vmax.xlane.f32.xlu0 %v906_v26 }
 0x3ff   :  { %v986_v30 = vpop.xlane.xlu1 %985 }
 0x400   :  { %v1006_v32 = vsub.f32 %v9012_v31, %v986_v30  ;;  %v983_v34 = vpop.xlane.xlu0 %982 }
 0x401   :  { %v1005_v35 = vsub.f32 %v9015_v39, %v983_v34 }
 0x402   :  { %v1015_v36 = vmul.f32 1.442695, %v1006_v32 }
 0x403   :  { %v1013_v27 = vmul.f32 1.442695, %v1005_v35 }
 0x404   :  { %8337 = vpow2.f32 %v1015_v36  ;;  %v989_v37 = vpop.xlane.xlu0 %988 }
 0x405   :  { %8339 = vpow2.f32 %v1013_v27  ;;  %v1007_v40 = vsub.f32 %v9026_v46, %v989_v37 }
 0x407   :  { %v1017_v41 = vmul.f32 1.442695, %v1007_v40 }
 0x408   :  { %v992_v43 = vpop.xlane.xlu0 %991  ;;  %v995_v45 = vpop.xlane.xlu1 %994 }
 0x409   :  { %8341 = vpow2.f32 %v1017_v41  ;;  %v1008_v47 = vsub.f32 %v9033_v50, %v992_v43  ;;  %v1009_v49 = vsub.f32 %v9038_v53, %v995_v45 }
 0x40b   :  { %v1019_v52 = vmul.f32 1.442695, %v1008_v47  ;;  %v1021_v31 = vmul.f32 1.442695, %v1009_v49 }
 0x40c   :  { %v998_v54 = vpop.xlane.xlu0 %997  ;;  %v1001_v57 = vpop.xlane.xlu1 %1000 }
 0x40d   :  { %8343 = vpow2.f32 %v1019_v52  ;;  %v1010_v39 = vsub.f32 %v9049_v59, %v998_v54  ;;  %v1011_v58 = vsub.f32 %v9056_v63, %v1001_v57 }
 0x40e   :  { %v9126_v62 = vpop.eup %8337  ;;  %8345 = vpow2.f32 %v1021_v31 }
 0x40f   :  { %v9128_v46 = vpop.eup %8339  ;;  %v1023_v1 = vmul.f32 1.442695, %v1010_v39  ;;  %v1025_v2 = vmul.f32 1.442695, %v1011_v58  ;;  %v1032_v50 = vsel %vm884_vm6, %v9126_v62, 0.0  ;;  %v1079_v58 = vld [vmem:[#allocation6 + $0xa0] sm:$0xff] }
 0x410   :  { %v1004_v53 = vpop.xlane.xlu0 %1003  ;;  %v887_v7 = vpop.xlane.xlu1 %886  ;;  %1033 = vadd.xlane.f32.xlu0 %v1032_v50  ;;  %v1029_v8 = vsel %vm884_vm6, %v9128_v46, 0.0 }
 0x411   :  { %8347 = vpow2.f32 %v1023_v1  ;;  %v1012_v59 = vsub.f32 %v9065_v3, %v1004_v53  ;;  %v909_v63 = vsub.f32 %v9068_v4, %v887_v7  ;;  %1030 = vadd.xlane.f32.xlu1 %v1029_v8 }
 0x412   :  { %8349 = vpow2.f32 %v1025_v2 }
 0x413   :  { %v9136_v13 = vpop.eup %8341  ;;  %v1027_v14 = vmul.f32 1.442695, %v1012_v59  ;;  %v917_v18 = vmul.f32 1.442695, %v909_v63  ;;  %v1081_v59 = vld [vmem:[#allocation6 + $0xc0] sm:$0xff]  ;;  %v1082_v63 = vld [vmem:[#allocation6 + $0xd0] sm:$0xff] }
 0x414   :  { %v890_v19 = vpop.xlane.xlu0 %889  ;;  %v893_v22 = vpop.xlane.xlu1 %892  ;;  %v1035_v24 = vsel %vm884_vm6, %v9136_v13, 0.0 }
 0x415   :  { %8351 = vpow2.f32 %v1027_v14  ;;  %v910_v26 = vsub.f32 %v9079_v9, %v890_v19  ;;  %v911_v28 = vsub.f32 %v9082_v10, %v893_v22  ;;  %1036 = vadd.xlane.f32.xlu1 %v1035_v24  ;;  %v7681_v14 = vpack.c.bf16 %v1082_v63, %v1081_v59  ;;  %v1083_v24 = vld [vmem:[#allocation6 + $0xe0] sm:$0xff] }
 0x416   :  { %8353 = vpow2.f32 %v917_v18 }
 0x417   :  { %v9142_v3 = vpop.eup %8343  ;;  %v919_v4 = vmul.f32 1.442695, %v910_v26  ;;  %v921_v23 = vmul.f32 1.442695, %v911_v28  ;;  %v1084_v26 = vld [vmem:[#allocation6 + $0xf0] sm:$0xff] }
 0x418   :  { %v9144_v29 = vpop.eup %8345  ;;  %v896_v30 = vpop.xlane.xlu0 %895  ;;  %v1038_v34 = vsel %vm884_vm6, %v9142_v3, 0.0 }
 0x419   :  { %v899_v32 = vpop.xlane.xlu1 %898  ;;  %8355 = vpow2.f32 %v919_v4  ;;  %v912_v35 = vsub.f32 %v9093_v15, %v896_v30  ;;  %1039 = vadd.xlane.f32.xlu0 %v1038_v34  ;;  %v1041_v10 = vsel %vm884_vm6, %v9144_v29, 0.0  ;;  %v7685_v4 = vpack.c.bf16 %v1084_v26, %v1083_v24 }
 0x41a   :  { %v913_v9 = vsub.f32 %v9096_v16, %v899_v32  ;;  %8357 = vpow2.f32 %v921_v23  ;;  %1042 = vadd.xlane.f32.xlu1 %v1041_v10  ;;  %v2129_v23 = vld [vmem:[#allocation4 + $0x40] sm:$0xff]  ;;  %v2130_v10 = vld [vmem:[#allocation4 + $0x48] sm:$0xff] }
 0x41b   :  { %v9152_v36 = vpop.eup %8347  ;;  %v923_v27 = vmul.f32 1.442695, %v912_v35  ;;  %v9241_v26 = vadd.f32 %v2129_v23, %v9051_v60 }
 0x41c   :  { %v925_v37 = vmul.f32 1.442695, %v913_v9  ;;  %v9154_v40 = vpop.eup %8349  ;;  %v902_v41 = vpop.xlane.xlu0 %901  ;;  %v1044_v45 = vsel %vm884_vm6, %v9152_v36, 0.0  ;;  %v9196_v9 = vadd.f32 %v2129_v23, %v9009_v33 }
 0x41d   :  { %v905_v43 = vpop.xlane.xlu1 %904  ;;  %8359 = vpow2.f32 %v923_v27  ;;  %v914_v15 = vsub.f32 %v9105_v20, %v902_v41  ;;  %1045 = vadd.xlane.f32.xlu0 %v1044_v45  ;;  %v1047_v47 = vsel %vm884_vm6, %v9154_v40, 0.0  ;;  %v1080_v20 = vld [vmem:[#allocation6 + $0xb0] sm:$0xff]  ;;  %v1069_v41 = vld [vmem:[#allocation6] sm:$0xff] }
 0x41e   :  { %v915_v16 = vsub.f32 %v9108_v21, %v905_v43  ;;  %8361 = vpow2.f32 %v925_v37  ;;  %1048 = vadd.xlane.f32.xlu1 %v1047_v47  ;;  %v7677_v2 = vpack.c.bf16 %v1080_v20, %v1079_v58  ;;  %v2131_v27 = vld [vmem:[#allocation4 + $0x50] sm:$0xff]  ;;  %v2241_v47 = vsel %vm884_vm6, %v9196_v9, -inf }
 0x41f   :  { %v9162_v49 = vpop.eup %8351  ;;  %v927_v52 = vmul.f32 1.442695, %v914_v15  ;;  %v1070_v43 = vld [vmem:[#allocation6 + $0x10] sm:$0xff]  ;;  %v9203_v15 = vadd.f32 %v9007_v38, %v2130_v10 }
 0x420   :  { %v929_v31 = vmul.f32 1.442695, %v915_v16  ;;  %v9164_v54 = vpop.eup %8353  ;;  %v908_v57 = vpop.xlane.xlu0 %907  ;;  %v1050_v39 = vsel %vm884_vm6, %v9162_v49, 0.0  ;;  %7678 = vmatprep.subr.bf16.mxu0 %v7677_v2  ;;  %v9205_v16 = vpack.c.bf16 %v1070_v43, %v1069_v41 }
 0x421   :  { %8363 = vpow2.f32 %v927_v52  ;;  %v916_v21 = vsub.f32 %v9115_v25, %v908_v57  ;;  %1051 = vadd.xlane.f32.xlu0 %v1050_v39  ;;  %v933_v1 = vsel %vm884_vm6, %v9164_v54, 0.0  ;;  %7680 = vmatpush3.bf16.msra.mxu0 %v7677_v2  ;;  %v9210_v52 = vadd.f32 %v2131_v27, %v9023_v44  ;;  %v2133_v57 = vld [vmem:[#allocation4 + $0x60] sm:$0xff]  ;;  %v2135_v2 = vld [vmem:[#allocation4 + $0x70] sm:$0xff] }
 0x422   :  { %8365 = vpow2.f32 %v929_v31  ;;  %934 = vadd.xlane.f32.xlu1 %v933_v1  ;;  %7682 = vmatprep.subr.bf16.mxu0 %v7681_v14  ;;  %v2132_v31 = vld [vmem:[#allocation4 + $0x58] sm:$0xff]  ;;  %v2244_v39 = vsel %vm884_vm6, %v9203_v15, -inf  ;;  %v2134_v1 = vld [vmem:[#allocation4 + $0x68] sm:$0xff]  ;;  %v9231_v63 = vadd.f32 %v2135_v2, %v9053_v61 }
 0x423   :  { %v9171_v50 = vpop.eup %8355  ;;  %v931_v53 = vmul.f32 1.442695, %v916_v21  ;;  %v9216_v58 = vadd.f32 %v9019_v42, %v2132_v31  ;;  %v2247_v20 = vsel %vm884_vm6, %v9210_v52, -inf  ;;  %v9221_v21 = vadd.f32 %v2133_v57, %v9035_v51 }
 0x424   :  { %v9173_v7 = vpop.eup %8357  ;;  %v936_v8 = vsel %vm884_vm6, %v9171_v50, 0.0  ;;  %v2259_v24 = vsel %vm884_vm6, %v9231_v63, -inf  ;;  %v9256_v23 = vadd.f32 %v9058_v0, %v2132_v31  ;;  %v9271_v31 = vadd.f32 %v2135_v2, %v9098_v17 }
 0x425   :  { %8367 = vpow2.f32 %v931_v53  ;;  %937 = vadd.xlane.f32.xlu0 %v936_v8  ;;  %v939_v25 = vsel %vm884_vm6, %v9173_v7, 0.0  ;;  %7684 = vmatpush3.bf16.msra.mxu0 %v7681_v14  ;;  %v2250_v53 = vsel %vm884_vm6, %v9216_v58, -inf  ;;  %v9226_v8 = vadd.f32 %v9028_v48, %v2134_v1 }
 0x426   :  { %940 = vadd.xlane.f32.xlu1 %v939_v25  ;;  %7686 = vmatprep.subr.bf16.mxu0 %v7685_v4  ;;  %v2253_v59 = vsel %vm884_vm6, %v9221_v21, -inf  ;;  %v2136_v25 = vld [vmem:[#allocation4 + $0x78] sm:$0xff] }
 0x427   :  { %v9179_v18 = vpop.eup %8359  ;;  %v2256_v14 = vsel %vm884_vm6, %v9226_v8, -inf }
 0x428   :  { %v9181_v19 = vpop.eup %8361  ;;  %v942_v22 = vsel %vm884_vm6, %v9179_v18, 0.0 }
 0x429   :  { %943 = vadd.xlane.f32.xlu0 %v942_v22  ;;  %v945_v28 = vsel %vm884_vm6, %v9181_v19, 0.0  ;;  %7688 = vmatpush3.bf16.msra.mxu0 %v7685_v4  ;;  %v9236_v22 = vadd.f32 %v9042_v56, %v2136_v25  ;;  %v9246_v4 = vadd.f32 %v9040_v55, %v2130_v10  ;;  %v9261_v10 = vadd.f32 %v2133_v57, %v9084_v11 }
 0x42a   :  { %946 = vadd.xlane.f32.xlu1 %v945_v28  ;;  %7690 = vmatprep.subr.bf16.mxu0 %v9205_v16  ;;  %v9276_v57 = vadd.f32 %v9086_v12, %v2136_v25 }
 0x42b   :  { %v9187_v30 = vpop.eup %8363  ;;  %v2262_v28 = vsel %vm884_vm6, %v9236_v22, -inf  ;;  %v2148_v41 = vsel %vm884_vm6, %v9246_v4, -inf }
 0x42c   :  { %v9189_v32 = vpop.eup %8365  ;;  %v948_v34 = vsel %vm884_vm6, %v9187_v30, 0.0 }
 0x42d   :  { %949 = vadd.xlane.f32.xlu0 %v948_v34  ;;  %v951_v35 = vsel %vm884_vm6, %v9189_v32, 0.0  ;;  %v2145_v34 = vsel %vm884_vm6, %v9241_v26, -inf }
 0x42e   :  { %952 = vadd.xlane.f32.xlu1 %v951_v35  ;;  %v9251_v35 = vadd.f32 %v2131_v27, %v9070_v5  ;;  %v9266_v27 = vadd.f32 %v9072_v6, %v2134_v1  ;;  %v2166_v1 = vsel %vm884_vm6, %v9276_v57, -inf }
 0x42f   :  { %v9198_v37 = vpop.eup %8367 }
 0x430   :  { %v954_v45 = vsel %vm884_vm6, %v9198_v37, 0.0  ;;  %v2151_v43 = vsel %vm884_vm6, %v9251_v35, -inf }
 0x431   :  { %955 = vadd.xlane.f32.xlu0 %v954_v45  ;;  %v2154_v45 = vsel %vm884_vm6, %v9256_v23, -inf }
 0x432   :  { %2242 = vmax.xlane.f32.xlu1 %v2241_v47  ;;  %v2157_v47 = vsel %vm884_vm6, %v9261_v10, -inf }
 0x435   :  { %2245 = vmax.xlane.f32.xlu0 %v2244_v39  ;;  %v2160_v39 = vsel %vm884_vm6, %v9266_v27, -inf }
 0x436   :  { %2248 = vmax.xlane.f32.xlu1 %v2247_v20  ;;  %v2163_v20 = vsel %vm884_vm6, %v9271_v31, -inf }
 0x439   :  { %2251 = vmax.xlane.f32.xlu0 %v2250_v53 }
 0x43a   :  { %2254 = vmax.xlane.f32.xlu1 %v2253_v59 }
 0x43d   :  { %2257 = vmax.xlane.f32.xlu0 %v2256_v14 }
 0x43e   :  { %2260 = vmax.xlane.f32.xlu1 %v2259_v24 }
 0x441   :  { %2263 = vmax.xlane.f32.xlu0 %v2262_v28  ;;  %v1071_v28 = vld [vmem:[#allocation6 + $0x20] sm:$0xff] }
 0x442   :  { %2146 = vmax.xlane.f32.xlu1 %v2145_v34  ;;  %v1072_v34 = vld [vmem:[#allocation6 + $0x30] sm:$0xff] }
 0x445   :  { %2149 = vmax.xlane.f32.xlu0 %v2148_v41 }
 0x446   :  { %2152 = vmax.xlane.f32.xlu1 %v2151_v43 }
 0x449   :  { %2155 = vmax.xlane.f32.xlu0 %v2154_v45 }
 0x44a   :  { %2158 = vmax.xlane.f32.xlu1 %v2157_v47 }
 0x44d   :  { %2161 = vmax.xlane.f32.xlu0 %v2160_v39 }
 0x44e   :  { %2164 = vmax.xlane.f32.xlu1 %v2163_v20  ;;  %v7693_v20 = vpack.c.bf16 %v1072_v34, %v1071_v28 }
 0x451   :  { %2167 = vmax.xlane.f32.xlu0 %v2166_v1  ;;  %v1073_v1 = vld [vmem:[#allocation6 + $0x40] sm:$0xff] }
 0x49d   :  { %v1034_v53 = vpop.xlane.xlu0 %1033 }
 0x49e   :  { %8369 = vrcp.f32 %v1034_v53  ;;  %v1031_v2 = vpop.xlane.xlu1 %1030  ;;  %v1074_v53 = vld [vmem:[#allocation6 + $0x50] sm:$0xff] }
 0x49f   :  { %8371 = vrcp.f32 %v1031_v2 }
 0x4a2   :  { %v1037_v59 = vpop.xlane.xlu1 %1036 }
 0x4a3   :  { %8373 = vrcp.f32 %v1037_v59 }
 0x4a6   :  { %v1040_v14 = vpop.xlane.xlu0 %1039 }
 0x4a7   :  { %8375 = vrcp.f32 %v1040_v14  ;;  %v1043_v24 = vpop.xlane.xlu1 %1042 }
 0x4a8   :  { %v8370_v25 = vpop.eup %8369  ;;  %8377 = vrcp.f32 %v1043_v24  ;;  %v1075_v24 = vld [vmem:[#allocation6 + $0x60] sm:$0xff] }
 0x4a9   :  { %v8372_v41 = vpop.eup %8371  ;;  %v1056_v47 = vmul.f32 %v8370_v25, %v9126_v62  ;;  %v7697_v62 = vpack.c.bf16 %v1074_v53, %v1073_v1  ;;  %v1076_v25 = vld [vmem:[#allocation6 + $0x70] sm:$0xff] }
 0x4aa   :  { %v1046_v43 = vpop.xlane.xlu0 %1045  ;;  %v1054_v45 = vmul.f32 %v8372_v41, %v9128_v46 }
 0x4ab   :  { %8379 = vrcp.f32 %v1046_v43  ;;  %v1049_v39 = vpop.xlane.xlu1 %1048 }
 0x4ac   :  { %8381 = vrcp.f32 %v1049_v39  ;;  %6869 = vmatprep.mubr.msk.f32.mxu0 %vm884_vm6, %v1054_v45 }
 0x4ad   :  { %v8374_v2 = vpop.eup %8373  ;;  %6870 = vmatmul.mubr.msk.f32.vlgmr.msra.gmra.mrb[24].mxu0 %vm884_vm6, %v1056_v47 }
 0x4ae   :  { %v1052_v59 = vpop.xlane.xlu0 %1051  ;;  %v1058_v14 = vmul.f32 %v8374_v2, %v9136_v13  ;;  %7692 = vmatpush3.bf16.msra.mxu0 %v9205_v16  ;;  %v7701_v16 = vpack.c.bf16 %v1076_v25, %v1075_v24 }
 0x4af   :  { %8383 = vrcp.f32 %v1052_v59  ;;  %v935_v46 = vpop.xlane.xlu1 %934  ;;  %7694 = vmatprep.subr.bf16.mxu0 %v7693_v20 }
 0x4b0   :  { %8385 = vrcp.f32 %v935_v46  ;;  %6872 = vmatprep.mubr.msk.f32.mxu0 %vm884_vm6, %v1058_v14 }
 0x4b1   :  { %v8376_v28 = vpop.eup %8375 }
 0x4b2   :  { %v8378_v34 = vpop.eup %8377  ;;  %v938_v41 = vpop.xlane.xlu0 %937  ;;  %v1060_v43 = vmul.f32 %v8376_v28, %v9142_v3  ;;  %7696 = vmatpush3.bf16.msra.mxu0 %v7693_v20 }
 0x4b3   :  { %8387 = vrcp.f32 %v938_v41  ;;  %v941_v45 = vpop.xlane.xlu1 %940  ;;  %v1062_v13 = vmul.f32 %v8378_v34, %v9144_v29  ;;  %7698 = vmatprep.subr.bf16.mxu0 %v7697_v62 }
 0x4b4   :  { %8389 = vrcp.f32 %v941_v45  ;;  %6873 = vmatmul.mubr.msk.f32.gmra.mrb[26].mxu0 %vm884_vm6, %v1060_v43 }
 0x4b5   :  { %v8380_v47 = vpop.eup %8379  ;;  %6875 = vmatprep.mubr.msk.f32.mxu0 %vm884_vm6, %v1062_v13 }
 0x4b6   :  { %v8382_v39 = vpop.eup %8381  ;;  %v944_v1 = vpop.xlane.xlu0 %943  ;;  %v1064_v53 = vmul.f32 %v8380_v47, %v9152_v36  ;;  %7700 = vmatpush3.bf16.msra.mxu0 %v7697_v62 }
 0x4b7   :  { %8391 = vrcp.f32 %v944_v1  ;;  %v947_v3 = vpop.xlane.xlu1 %946  ;;  %v1066_v20 = vmul.f32 %v8382_v39, %v9154_v40  ;;  %7702 = vmatprep.subr.bf16.mxu0 %v7701_v16 }
 0x4b8   :  { %8393 = vrcp.f32 %v947_v3  ;;  %6876 = vmatmul.mubr.msk.f32.gmra.mrb[28].mxu0 %vm884_vm6, %v1064_v53 }
 0x4b9   :  { %v8384_v29 = vpop.eup %8383  ;;  %6878 = vmatprep.mubr.msk.f32.mxu0 %vm884_vm6, %v1066_v20 }
 0x4ba   :  { %v8386_v2 = vpop.eup %8385  ;;  %v950_v59 = vpop.xlane.xlu0 %949  ;;  %v1068_v14 = vmul.f32 %v8384_v29, %v9162_v49  ;;  %7704 = vmatpush3.bf16.msra.mxu0 %v7701_v16 }
 0x4bb   :  { %8395 = vrcp.f32 %v950_v59  ;;  %v953_v46 = vpop.xlane.xlu1 %952  ;;  %v958_v36 = vmul.f32 %v8386_v2, %v9164_v54 }
 0x4bc   :  { %8397 = vrcp.f32 %v953_v46  ;;  %6879 = vmatmul.mubr.msk.f32.gmra.mrb[30].mxu0 %vm884_vm6, %v1068_v14 }
 0x4bd   :  { %v8388_v40 = vpop.eup %8387  ;;  %6897 = vmatprep.mubr.msk.f32.mxu0 %vm884_vm6, %v958_v36 }
 0x4be   :  { %v8390_v62 = vpop.eup %8389  ;;  %v960_v24 = vmul.f32 %v8388_v40, %v9171_v50  ;;  %v956_v25 = vpop.xlane.xlu0 %955 }
 0x4bf   :  { %8399 = vrcp.f32 %v956_v25  ;;  %v2243_v28 = vpop.xlane.xlu1 %2242  ;;  %v962_v34 = vmul.f32 %v8390_v62, %v9173_v7 }
 0x4c0   :  { %v2265_v49 = vsub.f32 %v9196_v9, %v2243_v28  ;;  %6898 = vmatmul.mubr.msk.f32.vlgmr.msra.gmra.mrb[24].mxu0 %vm884_vm6, %v960_v24 }
 0x4c1   :  { %v8392_v41 = vpop.eup %8391  ;;  %6900 = vmatprep.mubr.msk.f32.mxu0 %vm884_vm6, %v962_v34 }
 0x4c2   :  { %v8394_v54 = vpop.eup %8393  ;;  %v2273_v43 = vmul.f32 1.442695, %v2265_v49  ;;  %v2246_v45 = vpop.xlane.xlu0 %2245  ;;  %v964_v13 = vmul.f32 %v8392_v41, %v9179_v18 }
 0x4c3   :  { %v2266_v16 = vsub.f32 %v9203_v15, %v2246_v45  ;;  %v2249_v50 = vpop.xlane.xlu1 %2248  ;;  %v966_v47 = vmul.f32 %v8394_v54, %v9181_v19 }
 0x4c4   :  { %8401 = vpow2.f32 %v2273_v43  ;;  %v2267_v7 = vsub.f32 %v9210_v52, %v2249_v50  ;;  %6901 = vmatmul.mubr.msk.f32.gmra.mrb[26].mxu0 %vm884_vm6, %v964_v13 }
 0x4c5   :  { %v8396_v9 = vpop.eup %8395  ;;  %v2275_v39 = vmul.f32 1.442695, %v2266_v16  ;;  %6903 = vmatprep.mubr.msk.f32.mxu0 %vm884_vm6, %v966_v47 }
 0x4c6   :  { %v8398_v1 = vpop.eup %8397  ;;  %v2277_v53 = vmul.f32 1.442695, %v2267_v7  ;;  %v2252_v3 = vpop.xlane.xlu0 %2251  ;;  %v968_v20 = vmul.f32 %v8396_v9, %v9187_v30 }
 0x4c7   :  { %8403 = vpow2.f32 %v2275_v39  ;;  %v2268_v18 = vsub.f32 %v9216_v58, %v2252_v3  ;;  %v2255_v15 = vpop.xlane.xlu1 %2254  ;;  %v970_v19 = vmul.f32 %v8398_v1, %v9189_v32 }
 0x4c8   :  { %8405 = vpow2.f32 %v2277_v53  ;;  %v2269_v52 = vsub.f32 %v9221_v21, %v2255_v15  ;;  %6904 = vmatmul.mubr.msk.f32.gmra.mrb[28].mxu0 %vm884_vm6, %v968_v20 }
 0x4c9   :  { %v8400_v29 = vpop.eup %8399  ;;  %v2279_v2 = vmul.f32 1.442695, %v2268_v18  ;;  %6906 = vmatprep.mubr.msk.f32.mxu0 %vm884_vm6, %v970_v19 }
 0x4ca   :  { %v2281_v59 = vmul.f32 1.442695, %v2269_v52  ;;  %v2258_v14 = vpop.xlane.xlu0 %2257  ;;  %v972_v46 = vmul.f32 %v8400_v29, %v9198_v37 }
 0x4cb   :  { %8407 = vpow2.f32 %v2279_v2  ;;  %v2270_v30 = vsub.f32 %v9226_v8, %v2258_v14  ;;  %v2261_v58 = vpop.xlane.xlu1 %2260 }
 0x4cc   :  { %8409 = vpow2.f32 %v2281_v59  ;;  %v2271_v32 = vsub.f32 %v9231_v63, %v2261_v58  ;;  %6907 = vmatmul.mubr.msk.f32.gmra.mrb[30].mxu0 %vm884_vm6, %v972_v46 }
 0x4cd   :  { %v2283_v21 = vmul.f32 1.442695, %v2270_v30 }
 0x4ce   :  { %v9322_v36 = vpop.eup %8401  ;;  %v2285_v40 = vmul.f32 1.442695, %v2271_v32  ;;  %v2264_v62 = vpop.xlane.xlu0 %2263 }
 0x4cf   :  { %8411 = vpow2.f32 %v2283_v21  ;;  %v2272_v24 = vsub.f32 %v9236_v22, %v2264_v62  ;;  %v2147_v25 = vpop.xlane.xlu1 %2146  ;;  %v2289_v37 = vsel %vm884_vm6, %v9322_v36, 0.0 }
 0x4d0   :  { %8413 = vpow2.f32 %v2285_v40  ;;  %v2169_v8 = vsub.f32 %v9241_v26, %v2147_v25  ;;  %2290 = vadd.xlane.f32.xlu1 %v2289_v37 }
 0x4d1   :  { %v9328_v28 = vpop.eup %8403  ;;  %v2287_v63 = vmul.f32 1.442695, %v2272_v24 }
 0x4d2   :  { %v9330_v34 = vpop.eup %8405  ;;  %v2177_v49 = vmul.f32 1.442695, %v2169_v8  ;;  %v2150_v41 = vpop.xlane.xlu0 %2149  ;;  %v2292_v54 = vsel %vm884_vm6, %v9328_v28, 0.0 }
 0x4d3   :  { %8415 = vpow2.f32 %v2287_v63  ;;  %v2170_v22 = vsub.f32 %v9246_v4, %v2150_v41  ;;  %v2153_v43 = vpop.xlane.xlu1 %2152  ;;  %2293 = vadd.xlane.f32.xlu0 %v2292_v54  ;;  %v2295_v45 = vsel %vm884_vm6, %v9330_v34, 0.0  ;;  %v3391_v63 = vld [vmem:[#allocation4 + $0x80] sm:$0xff] }
 0x4d4   :  { %8417 = vpow2.f32 %v2177_v49  ;;  %v2171_v26 = vsub.f32 %v9251_v35, %v2153_v43  ;;  %2296 = vadd.xlane.f32.xlu1 %v2295_v45  ;;  %v9392_v43 = vadd.f32 %v3391_v63, %v9009_v33  ;;  %v3392_v45 = vld [vmem:[#allocation4 + $0x88] sm:$0xff] }
 0x4d5   :  { %v9338_v13 = vpop.eup %8407  ;;  %v2179_v16 = vmul.f32 1.442695, %v2170_v22 }
 0x4d6   :  { %v9340_v50 = vpop.eup %8409  ;;  %v2181_v47 = vmul.f32 1.442695, %v2171_v26  ;;  %v2156_v7 = vpop.xlane.xlu0 %2155  ;;  %v2298_v9 = vsel %vm884_vm6, %v9338_v13, 0.0  ;;  %v3393_v26 = vld [vmem:[#allocation4 + $0x90] sm:$0xff] }
 0x4d7   :  { %8419 = vpow2.f32 %v2179_v16  ;;  %v2172_v4 = vsub.f32 %v9256_v23, %v2156_v7  ;;  %v2159_v39 = vpop.xlane.xlu1 %2158  ;;  %2299 = vadd.xlane.f32.xlu0 %v2298_v9  ;;  %v2301_v1 = vsel %vm884_vm6, %v9340_v50, 0.0  ;;  %v9399_v7 = vadd.f32 %v9007_v38, %v3392_v45 }
 0x4d8   :  { %8421 = vpow2.f32 %v2181_v47  ;;  %v2173_v35 = vsub.f32 %v9261_v10, %v2159_v39  ;;  %2302 = vadd.xlane.f32.xlu1 %v2301_v1  ;;  %v3503_v9 = vsel %vm884_vm6, %v9392_v43, -inf  ;;  %v3394_v39 = vld [vmem:[#allocation4 + $0x98] sm:$0xff]  ;;  %v3395_v1 = vld [vmem:[#allocation4 + $0xa0] sm:$0xff] }
 0x4d9   :  { %v9348_v53 = vpop.eup %8411  ;;  %v2183_v3 = vmul.f32 1.442695, %v2172_v4  ;;  %v9404_v4 = vadd.f32 %v3393_v26, %v9023_v44 }
 0x4da   :  { %10115 = vst [vmem:[#allocation12_spill] sm:$0xff] %v9348_v53  ;;  %v9350_v20 = vpop.eup %8413  ;;  %v2185_v18 = vmul.f32 1.442695, %v2173_v35  ;;  %v2162_v15 = vpop.xlane.xlu0 %2161  ;;  %v2304_v19 = vsel %vm884_vm6, %v9348_v53, 0.0  ;;  %v3506_v35 = vsel %vm884_vm6, %v9399_v7, -inf }
 0x4db   :  { %10116 = vst [vmem:[#allocation13_spill] sm:$0xff] %v9350_v20  ;;  %8423 = vpow2.f32 %v2183_v3  ;;  %v2174_v23 = vsub.f32 %v9266_v27, %v2162_v15  ;;  %v2165_v52 = vpop.xlane.xlu1 %2164  ;;  %2305 = vadd.xlane.f32.xlu0 %v2304_v19  ;;  %v2307_v29 = vsel %vm884_vm6, %v9350_v20, 0.0  ;;  %v9409_v3 = vadd.f32 %v9019_v42, %v3394_v39  ;;  %v3396_v19 = vld [vmem:[#allocation4 + $0xa8] sm:$0xff] }
 0x4dc   :  { %8425 = vpow2.f32 %v2185_v18  ;;  %v2175_v10 = vsub.f32 %v9271_v31, %v2165_v52  ;;  %2308 = vadd.xlane.f32.xlu1 %v2307_v29  ;;  %v3509_v18 = vsel %vm884_vm6, %v9404_v4, -inf  ;;  %v9414_v15 = vadd.f32 %v3395_v1, %v9035_v51 }
 0x4dd   :  { %v9358_v2 = vpop.eup %8415  ;;  %v2187_v59 = vmul.f32 1.442695, %v2174_v23  ;;  %v3397_v23 = vld [vmem:[#allocation4 + $0xb0] sm:$0xff]  ;;  %v3512_v52 = vsel %vm884_vm6, %v9409_v3, -inf  ;;  %v9419_v29 = vadd.f32 %v9028_v48, %v3396_v19 }
 0x4de   :  { %10117 = vst [vmem:[#allocation14_spill] sm:$0xff] %v9358_v2  ;;  %v9360_v14 = vpop.eup %8417  ;;  %v2189_v46 = vmul.f32 1.442695, %v2175_v10  ;;  %v2168_v30 = vpop.xlane.xlu0 %2167  ;;  %v2310_v58 = vsel %vm884_vm6, %v9358_v2, 0.0  ;;  %v3515_v10 = vsel %vm884_vm6, %v9414_v15, -inf }
 0x4df   :  { %10118 = vst [vmem:[#allocation15_spill] sm:$0xff] %v9360_v14  ;;  %8427 = vpow2.f32 %v2187_v59  ;;  %v2176_v27 = vsub.f32 %v9276_v57, %v2168_v30  ;;  %2311 = vadd.xlane.f32.xlu0 %v2310_v58  ;;  %v2193_v32 = vsel %vm884_vm6, %v9360_v14, 0.0  ;;  %v9424_v59 = vadd.f32 %v3397_v23, %v9053_v61 }
 0x4e0   :  { %8429 = vpow2.f32 %v2189_v46  ;;  %2194 = vadd.xlane.f32.xlu1 %v2193_v32  ;;  %v3398_v46 = vld [vmem:[#allocation4 + $0xb8] sm:$0xff]  ;;  %v3518_v30 = vsel %vm884_vm6, %v9419_v29, -inf  ;;  %v9434_v32 = vadd.f32 %v3391_v63, %v9051_v60  ;;  %v9449_v63 = vadd.f32 %v9058_v0, %v3394_v39 }
 0x4e1   :  { %v9367_v31 = vpop.eup %8419  ;;  %v2191_v21 = vmul.f32 1.442695, %v2176_v27  ;;  %v9429_v58 = vadd.f32 %v9042_v56, %v3398_v46  ;;  %v3521_v27 = vsel %vm884_vm6, %v9424_v59, -inf }
 0x4e2   :  { %10119 = vst [vmem:[#allocation16_spill] sm:$0xff] %v9367_v31  ;;  %v9369_v40 = vpop.eup %8421  ;;  %v2196_v62 = vsel %vm884_vm6, %v9367_v31, 0.0 }
 0x4e3   :  { %10120 = vst [vmem:[#allocation17_spill] sm:$0xff] %v9369_v40  ;;  %8431 = vpow2.f32 %v2191_v21  ;;  %2197 = vadd.xlane.f32.xlu0 %v2196_v62  ;;  %v2199_v24 = vsel %vm884_vm6, %v9369_v40, 0.0  ;;  %v3524_v21 = vsel %vm884_vm6, %v9429_v58, -inf  ;;  %v9439_v62 = vadd.f32 %v9040_v55, %v3392_v45 }
 0x4e4   :  { %2200 = vadd.xlane.f32.xlu1 %v2199_v24  ;;  %v3407_v24 = vsel %vm884_vm6, %v9434_v32, -inf  ;;  %v3416_v45 = vsel %vm884_vm6, %v9449_v63, -inf }
 0x4e5   :  { %v9375_v57 = vpop.eup %8423 }
 0x4e6   :  { %10121 = vst [vmem:[#allocation18_spill] sm:$0xff] %v9375_v57  ;;  %v9377_v25 = vpop.eup %8425  ;;  %v2202_v37 = vsel %vm884_vm6, %v9375_v57, 0.0 }
 0x4e7   :  { %10122 = vst [vmem:[#allocation19_spill] sm:$0xff] %v9377_v25  ;;  %2203 = vadd.xlane.f32.xlu0 %v2202_v37  ;;  %v2205_v8 = vsel %vm884_vm6, %v9377_v25, 0.0  ;;  %v9444_v37 = vadd.f32 %v3393_v26, %v9070_v5  ;;  %v9459_v26 = vadd.f32 %v9072_v6, %v3396_v19  ;;  %v1360_v19 = vld [vmem:[#allocation6 + $0x100] sm:$0xff] }
 0x4e8   :  { %2206 = vadd.xlane.f32.xlu1 %v2205_v8  ;;  %v3410_v8 = vsel %vm884_vm6, %v9439_v62, -inf }
 0x4e9   :  { %v9383_v49 = vpop.eup %8427  ;;  %v3422_v39 = vsel %vm884_vm6, %v9459_v26, -inf }
 0x4ea   :  { %10123 = vst [vmem:[#allocation20_spill] sm:$0xff] %v9383_v49  ;;  %v9385_v41 = vpop.eup %8429  ;;  %v2208_v54 = vsel %vm884_vm6, %v9383_v49, 0.0 }
 0x4eb   :  { %10124 = vst [vmem:[#allocation21_spill] sm:$0xff] %v9385_v41  ;;  %2209 = vadd.xlane.f32.xlu0 %v2208_v54  ;;  %v2211_v22 = vsel %vm884_vm6, %v9385_v41, 0.0  ;;  %v3413_v54 = vsel %vm884_vm6, %v9444_v37, -inf }
 0x4ec   :  { %2212 = vadd.xlane.f32.xlu1 %v2211_v22  ;;  %v9454_v22 = vadd.f32 %v3395_v1, %v9084_v11  ;;  %v9469_v1 = vadd.f32 %v9086_v12, %v3398_v46 }
 0x4ed   :  { %v9394_v16 = vpop.eup %8431 }
 0x4ee   :  { %10125 = vst [vmem:[#allocation22_spill] sm:$0xff] %v9394_v16  ;;  %v2214_v47 = vsel %vm884_vm6, %v9394_v16, 0.0 }
 0x4ef   :  { %2215 = vadd.xlane.f32.xlu0 %v2214_v47  ;;  %v3419_v47 = vsel %vm884_vm6, %v9454_v22, -inf }
 0x4f0   :  { %3504 = vmax.xlane.f32.xlu1 %v3503_v9  ;;  %v9464_v9 = vadd.f32 %v3397_v23, %v9098_v17 }
 0x4f3   :  { %3507 = vmax.xlane.f32.xlu0 %v3506_v35  ;;  %v3425_v35 = vsel %vm884_vm6, %v9464_v9, -inf }
 0x4f4   :  { %3510 = vmax.xlane.f32.xlu1 %v3509_v18  ;;  %v3428_v18 = vsel %vm884_vm6, %v9469_v1, -inf }
 0x4f7   :  { %3513 = vmax.xlane.f32.xlu0 %v3512_v52  ;;  %v1361_v52 = vld [vmem:[#allocation6 + $0x110] sm:$0xff] }
 0x4f8   :  { %3516 = vmax.xlane.f32.xlu1 %v3515_v10  ;;  %v7705_v23 = vpack.c.bf16 %v1361_v52, %v1360_v19  ;;  %v1362_v10 = vld [vmem:[#allocation6 + $0x120] sm:$0xf] }
 0x4fa   :  { %7706 = vmatprep.subr.bf16.mxu1 %v7705_v23 }
 0x4fb   :  { %3519 = vmax.xlane.f32.xlu0 %v3518_v30  ;;  %7708 = vmatpush3.bf16.msra.mxu1 %v7705_v23 }
 0x4fc   :  { %3522 = vmax.xlane.f32.xlu1 %v3521_v27  ;;  %6913 = vmatprep.subr.msk.mxu1 %vm151_vm0, %v1362_v10 }
 0x4ff   :  { %3525 = vmax.xlane.f32.xlu0 %v3524_v21  ;;  %6914 = vmatpush3.msk.msra.mxu1 %vm151_vm0, %v1362_v10 }
 0x500   :  { %3408 = vmax.xlane.f32.xlu1 %v3407_v24 }
 0x503   :  { %3411 = vmax.xlane.f32.xlu0 %v3410_v8 }
 0x504   :  { %3414 = vmax.xlane.f32.xlu1 %v3413_v54 }
 0x507   :  { %3417 = vmax.xlane.f32.xlu0 %v3416_v45 }
 0x508   :  { %3420 = vmax.xlane.f32.xlu1 %v3419_v47 }
 0x50b   :  { %3423 = vmax.xlane.f32.xlu0 %v3422_v39 }
 0x50c   :  { %3426 = vmax.xlane.f32.xlu1 %v3425_v35 }
 0x50f   :  { %3429 = vmax.xlane.f32.xlu0 %v3428_v18 }
 0x55d   :  { %v9477_v46 = vpop.xlane.xlu1 %2290 }
 0x560   :  { %v9479_v30 = vpop.xlane.xlu0 %2293 }
 0x561   :  { %v9481_v27 = vpop.xlane.xlu1 %2296 }
 0x564   :  { %v9483_v21 = vpop.xlane.xlu0 %2299 }
 0x565   :  { %v9485_v24 = vpop.xlane.xlu1 %2302 }
 0x568   :  { %v9487_v8 = vpop.xlane.xlu0 %2305 }
 0x569   :  { %v9489_v54 = vpop.xlane.xlu1 %2308 }
 0x56c   :  { %v9491_v45 = vpop.xlane.xlu0 %2311 }
 0x56d   :  { %v9493_v47 = vpop.xlane.xlu1 %2194 }
 0x570   :  { %v9495_v39 = vpop.xlane.xlu0 %2197 }
 0x571   :  { %v9497_v35 = vpop.xlane.xlu1 %2200 }
 0x574   :  { %v9499_v18 = vpop.xlane.xlu0 %2203 }
 0x575   :  { %v9501_v19 = vpop.xlane.xlu1 %2206 }
 0x578   :  { %v9503_v52 = vpop.xlane.xlu0 %2209 }
 0x579   :  { %10126 = vst [vmem:[#allocation23_spill] sm:$0xff] %v9503_v52  ;;  %v9505_v23 = vpop.xlane.xlu1 %2212 }
 0x57a   :  { %10127 = vst [vmem:[#allocation24_spill] sm:$0xff] %v9505_v23 }
 0x57c   :  { %v9507_v10 = vpop.xlane.xlu0 %2215 }
 0x57d   :  { %10128 = vst [vmem:[#allocation25_spill] sm:$0xff] %v9507_v10  ;;  %v3505_v16 = vpop.xlane.xlu1 %3504 }
 0x57e   :  { %v3527_v41 = vsub.f32 %v9392_v43, %v3505_v16 }
 0x580   :  { %v3535_v49 = vmul.f32 1.442695, %v3527_v41  ;;  %v3508_v25 = vpop.xlane.xlu0 %3507 }
 0x581   :  { %v3528_v57 = vsub.f32 %v9399_v7, %v3508_v25  ;;  %v3511_v40 = vpop.xlane.xlu1 %3510 }
 0x582   :  { %8433 = vpow2.f32 %v3535_v49  ;;  %v3529_v31 = vsub.f32 %v9404_v4, %v3511_v40 }
 0x583   :  { %v3537_v14 = vmul.f32 1.442695, %v3528_v57 }
 0x584   :  { %v3539_v2 = vmul.f32 1.442695, %v3529_v31  ;;  %v3514_v20 = vpop.xlane.xlu0 %3513 }
 0x585   :  { %8435 = vpow2.f32 %v3537_v14  ;;  %v3530_v52 = vsub.f32 %v9409_v3, %v3514_v20  ;;  %v3517_v23 = vpop.xlane.xlu1 %3516 }
 0x586   :  { %8437 = vpow2.f32 %v3539_v2  ;;  %v3531_v10 = vsub.f32 %v9414_v15, %v3517_v23 }
 0x587   :  { %v3541_v53 = vmul.f32 1.442695, %v3530_v52 }
 0x588   :  { %v3543_v43 = vmul.f32 1.442695, %v3531_v10  ;;  %v3520_v41 = vpop.xlane.xlu0 %3519 }
 0x589   :  { %8439 = vpow2.f32 %v3541_v53  ;;  %v3532_v25 = vsub.f32 %v9419_v29, %v3520_v41  ;;  %v3523_v16 = vpop.xlane.xlu1 %3522 }
 0x58a   :  { %8441 = vpow2.f32 %v3543_v43  ;;  %v3533_v40 = vsub.f32 %v9424_v59, %v3523_v16 }
 0x58b   :  { %v3545_v57 = vmul.f32 1.442695, %v3532_v25 }
 0x58c   :  { %v9516_v31 = vpop.eup %8433  ;;  %v3547_v14 = vmul.f32 1.442695, %v3533_v40  ;;  %v3526_v49 = vpop.xlane.xlu0 %3525 }
 0x58d   :  { %8443 = vpow2.f32 %v3545_v57  ;;  %v3534_v20 = vsub.f32 %v9429_v58, %v3526_v49  ;;  %v3409_v2 = vpop.xlane.xlu1 %3408  ;;  %v3551_v7 = vsel %vm884_vm6, %v9516_v31, 0.0 }
 0x58e   :  { %8445 = vpow2.f32 %v3547_v14  ;;  %v3431_v53 = vsub.f32 %v9434_v32, %v3409_v2  ;;  %3552 = vadd.xlane.f32.xlu1 %v3551_v7  ;;  %v9531_v32 = vld [vmem:[#allocation6 + $0x270] ss:$0 sm:$0xff] }
 0x58f   :  { %v9522_v4 = vpop.eup %8435  ;;  %v3549_v3 = vmul.f32 1.442695, %v3534_v20 }
 0x590   :  { %v9524_v15 = vpop.eup %8437  ;;  %v3439_v29 = vmul.f32 1.442695, %v3431_v53  ;;  %v3412_v59 = vpop.xlane.xlu0 %3411  ;;  %v3554_v52 = vsel %vm884_vm6, %v9522_v4, 0.0 }
 0x591   :  { %8447 = vpow2.f32 %v3549_v3  ;;  %v3432_v58 = vsub.f32 %v9439_v62, %v3412_v59  ;;  %v3415_v23 = vpop.xlane.xlu1 %3414  ;;  %3555 = vadd.xlane.f32.xlu0 %v3554_v52  ;;  %v3557_v10 = vsel %vm884_vm6, %v9524_v15, 0.0 }
 0x592   :  { %8449 = vpow2.f32 %v3439_v29  ;;  %v3433_v43 = vsub.f32 %v9444_v37, %v3415_v23  ;;  %3558 = vadd.xlane.f32.xlu1 %v3557_v10 }
 0x593   :  { %v9534_v41 = vpop.eup %8439  ;;  %v3441_v25 = vmul.f32 1.442695, %v3432_v58  ;;  %v6899_v16 = vpop.f32.mrb[24].mxu0 }
 0x594   :  { %v9536_v40 = vpop.eup %8441  ;;  %v3443_v57 = vmul.f32 1.442695, %v3433_v43  ;;  %v1345_v62 = vadd.f32 %v6899_v16, %v9531_v32  ;;  %v3418_v14 = vpop.xlane.xlu0 %3417  ;;  %v3560_v20 = vsel %vm884_vm6, %v9534_v41, 0.0 }
 0x595   :  { %v1304_v49 = vpop.f32.mrb[25].mxu0  ;;  %8451 = vpow2.f32 %v3441_v25  ;;  %v3434_v2 = vsub.f32 %v9449_v63, %v3418_v14  ;;  %v3421_v7 = vpop.xlane.xlu1 %3420  ;;  %3561 = vadd.xlane.f32.xlu0 %v3560_v20  ;;  %v3563_v53 = vsel %vm884_vm6, %v9536_v40, 0.0 }
 0x596   :  { %v1344_v37 = vadd.f32 %v9531_v32, %v1304_v49  ;;  %8453 = vpow2.f32 %v3443_v57  ;;  %v3435_v3 = vsub.f32 %v9454_v22, %v3421_v7  ;;  %3564 = vadd.xlane.f32.xlu1 %v3563_v53  ;;  %v1353_v63 = vmax.f32 %v1345_v62, 0.0 }
 0x597   :  { %v9546_v29 = vpop.eup %8443  ;;  %v3445_v59 = vmul.f32 1.442695, %v3434_v2  ;;  %v6902_v58 = vpop.f32.mrb[26].mxu0 }
 0x598   :  { %10129 = vst [vmem:[#allocation26_spill] sm:$0xff] %v9546_v29  ;;  %v1352_v52 = vmax.f32 %v1344_v37, 0.0  ;;  %v9548_v23 = vpop.eup %8445  ;;  %v3447_v10 = vmul.f32 1.442695, %v3435_v3  ;;  %v1347_v43 = vadd.f32 %v6902_v58, %v9531_v32  ;;  %v3424_v25 = vpop.xlane.xlu0 %3423  ;;  %v3566_v57 = vsel %vm884_vm6, %v9546_v29, 0.0 }
 0x599   :  { %10130 = vst [vmem:[#allocation27_spill] sm:$0xff] %v9548_v23  ;;  %v1314_v16 = vpop.f32.mrb[27].mxu0  ;;  %8455 = vpow2.f32 %v3445_v59  ;;  %v3436_v22 = vsub.f32 %v9459_v26, %v3424_v25  ;;  %v3427_v49 = vpop.xlane.xlu1 %3426  ;;  %3567 = vadd.xlane.f32.xlu0 %v3566_v57  ;;  %v3569_v62 = vsel %vm884_vm6, %v9548_v23, 0.0 }
 0x59a   :  { %v1346_v14 = vadd.f32 %v9531_v32, %v1314_v16  ;;  %6915 = vmatprep.mubr.msk.f32.mxu1 %vm1364_vm7, %v1352_v52  ;;  %8457 = vpow2.f32 %v3447_v10  ;;  %v3437_v20 = vsub.f32 %v9464_v9, %v3427_v49  ;;  %3570 = vadd.xlane.f32.xlu1 %v3569_v62  ;;  %v1355_v3 = vmax.f32 %v1347_v43, 0.0 }
 0x59b   :  { %6916 = vmatmul.mubr.msk.f32.vlgmr.msra.gmra.mrb[24].mxu1 %vm1364_vm7, %v1353_v63  ;;  %v9560_v2 = vpop.eup %8447  ;;  %v3449_v37 = vmul.f32 1.442695, %v3436_v22  ;;  %v6905_v26 = vpop.f32.mrb[28].mxu0 }
 0x59c   :  { %10131 = vst [vmem:[#allocation28_spill] sm:$0xff] %v9560_v2  ;;  %v1354_v7 = vmax.f32 %v1346_v14, 0.0  ;;  %v9562_v53 = vpop.eup %8449  ;;  %v3451_v59 = vmul.f32 1.442695, %v3437_v20  ;;  %v1349_v52 = vadd.f32 %v6905_v26, %v9531_v32  ;;  %v3430_v58 = vpop.xlane.xlu0 %3429  ;;  %v3572_v10 = vsel %vm884_vm6, %v9560_v2, 0.0 }
 0x59d   :  { %10132 = vst [vmem:[#allocation29_spill] sm:$0xff] %v9562_v53  ;;  %v1324_v25 = vpop.f32.mrb[29].mxu0  ;;  %8459 = vpow2.f32 %v3449_v37  ;;  %v3438_v9 = vsub.f32 %v9469_v1, %v3430_v58  ;;  %3573 = vadd.xlane.f32.xlu0 %v3572_v10  ;;  %v3455_v16 = vsel %vm884_vm6, %v9562_v53, 0.0  ;;  %v4668_v10 = vld [vmem:[#allocation4 + $0xc0] sm:$0xff] }
 0x59e   :  { %v1348_v63 = vadd.f32 %v9531_v32, %v1324_v25  ;;  %6918 = vmatprep.mubr.msk.f32.mxu1 %vm1364_vm7, %v1354_v7  ;;  %8461 = vpow2.f32 %v3451_v59  ;;  %3456 = vadd.xlane.f32.xlu1 %v3455_v16  ;;  %v1357_v1 = vmax.f32 %v1349_v52, 0.0 }
 0x59f   :  { %6919 = vmatmul.mubr.msk.f32.gmra.mrb[26].mxu1 %vm1364_vm7, %v1355_v3  ;;  %v9573_v43 = vpop.eup %8451  ;;  %v3453_v57 = vmul.f32 1.442695, %v3438_v9  ;;  %v6908_v14 = vpop.f32.mrb[30].mxu0 }
 0x5a0   :  { %10133 = vst [vmem:[#allocation30_spill] sm:$0xff] %v9573_v43  ;;  %v1356_v22 = vmax.f32 %v1348_v63, 0.0  ;;  %v9575_v49 = vpop.eup %8453  ;;  %v1351_v62 = vadd.f32 %v6908_v14, %v9531_v32  ;;  %v1334_v20 = vpop.f32.mrb[31].mxu0  ;;  %v3458_v37 = vsel %vm884_vm6, %v9573_v43, 0.0  ;;  %v4669_v14 = vld [vmem:[#allocation4 + $0xc8] sm:$0xff] }
 0x5a1   :  { %10134 = vst [vmem:[#allocation31_spill] sm:$0xff] %v9575_v49  ;;  %8463 = vpow2.f32 %v3453_v57  ;;  %v1350_v7 = vadd.f32 %v9531_v32, %v1334_v20  ;;  %3459 = vadd.xlane.f32.xlu0 %v3458_v37  ;;  %v3461_v26 = vsel %vm884_vm6, %v9575_v49, 0.0  ;;  %v9611_v37 = vadd.f32 %v9007_v38, %v4669_v14 }
 0x5a2   :  { %6921 = vmatprep.mubr.msk.f32.mxu1 %vm1364_vm7, %v1356_v22  ;;  %3462 = vadd.xlane.f32.xlu1 %v3461_v26  ;;  %v1359_v58 = vmax.f32 %v1351_v62, 0.0  ;;  %v9604_v22 = vadd.f32 %v4668_v10, %v9009_v33  ;;  %v4671_v33 = vld [vmem:[#allocation4 + $0xd8] sm:$0xff] }
 0x5a3   :  { %6922 = vmatmul.mubr.msk.f32.gmra.mrb[28].mxu1 %vm1364_vm7, %v1357_v1  ;;  %v9585_v3 = vpop.eup %8455  ;;  %v1358_v59 = vmax.f32 %v1350_v7, 0.0  ;;  %v4670_v1 = vld [vmem:[#allocation4 + $0xd0] sm:$0xff] }
 0x5a4   :  { %10135 = vst [vmem:[#allocation32_spill] sm:$0xff] %v9585_v3  ;;  %v9587_v52 = vpop.eup %8457  ;;  %v3464_v25 = vsel %vm884_vm6, %v9585_v3, 0.0  ;;  %v4780_v7 = vsel %vm884_vm6, %v9604_v22, -inf  ;;  %v9616_v26 = vadd.f32 %v4670_v1, %v9023_v44  ;;  %v4674_v44 = vld [vmem:[#allocation4 + $0xf0] sm:$0xff] }
 0x5a5   :  { %10136 = vst [vmem:[#allocation33_spill] sm:$0xff] %v9587_v52  ;;  %3465 = vadd.xlane.f32.xlu0 %v3464_v25  ;;  %6924 = vmatprep.mubr.msk.f32.mxu1 %vm1364_vm7, %v1358_v59  ;;  %v3467_v32 = vsel %vm884_vm6, %v9587_v52, 0.0  ;;  %v4672_v59 = vld [vmem:[#allocation4 + $0xe0] sm:$0xff]  ;;  %v9621_v25 = vadd.f32 %v9019_v42, %v4671_v33 }
 0x5a6   :  { %3468 = vadd.xlane.f32.xlu1 %v3467_v32  ;;  %v4786_v38 = vsel %vm884_vm6, %v9616_v26, -inf  ;;  %v9626_v32 = vadd.f32 %v4672_v59, %v9035_v51 }
 0x5a7   :  { %6925 = vmatmul.mubr.msk.f32.gmra.mrb[30].mxu1 %vm1364_vm7, %v1359_v58  ;;  %v9595_v9 = vpop.eup %8459  ;;  %v4783_v58 = vsel %vm884_vm6, %v9611_v37, -inf }
 0x5a8   :  { %10137 = vst [vmem:[#allocation34_spill] sm:$0xff] %v9595_v9  ;;  %v9597_v63 = vpop.eup %8461  ;;  %v3470_v16 = vsel %vm884_vm6, %v9595_v9, 0.0  ;;  %v4792_v42 = vsel %vm884_vm6, %v9626_v32, -inf }
 0x5a9   :  { %10138 = vst [vmem:[#allocation35_spill] sm:$0xff] %v9597_v63  ;;  %3471 = vadd.xlane.f32.xlu0 %v3470_v16  ;;  %v3473_v57 = vsel %vm884_vm6, %v9597_v63, 0.0  ;;  %v4673_v16 = vld [vmem:[#allocation4 + $0xe8] sm:$0xff] }
 0x5aa   :  { %3474 = vadd.xlane.f32.xlu1 %v3473_v57  ;;  %v4789_v57 = vsel %vm884_vm6, %v9621_v25, -inf }
 0x5ab   :  { %v9606_v62 = vpop.eup %8463 }
 0x5ac   :  { %10139 = vst [vmem:[#allocation36_spill] sm:$0xff] %v9606_v62  ;;  %v3476_v20 = vsel %vm884_vm6, %v9606_v62, 0.0  ;;  %v9651_v62 = vadd.f32 %v9040_v55, %v4669_v14  ;;  %v9666_v55 = vadd.f32 %v4672_v59, %v9084_v11 }
 0x5ad   :  { %3477 = vadd.xlane.f32.xlu0 %v3476_v20  ;;  %v9631_v20 = vadd.f32 %v9028_v48, %v4673_v16 }
 0x5ae   :  { %4781 = vmax.xlane.f32.xlu1 %v4780_v7  ;;  %v9636_v7 = vadd.f32 %v4674_v44, %v9053_v61 }
 0x5af   :  { %v4795_v51 = vsel %vm884_vm6, %v9631_v20, -inf }
 0x5b0   :  { %v4798_v48 = vsel %vm884_vm6, %v9636_v7, -inf }
 0x5b1   :  { %4784 = vmax.xlane.f32.xlu0 %v4783_v58  ;;  %v4675_v58 = vld [vmem:[#allocation4 + $0xf8] sm:$0xff] }
 0x5b2   :  { %4787 = vmax.xlane.f32.xlu1 %v4786_v38  ;;  %v9641_v38 = vadd.f32 %v9042_v56, %v4675_v58  ;;  %v9656_v56 = vadd.f32 %v4670_v1, %v9070_v5  ;;  %v9671_v5 = vadd.f32 %v9072_v6, %v4673_v16  ;;  %v4696_v1 = vsel %vm884_vm6, %v9666_v55, -inf  ;;  %v1505_v16 = vld [vmem:[#allocation6 + $0x1a0] sm:$0xff] }
 0x5b3   :  { %v9681_v11 = vadd.f32 %v9086_v12, %v4675_v58 }
 0x5b4   :  { %v4801_v61 = vsel %vm884_vm6, %v9641_v38, -inf }
 0x5b5   :  { %4790 = vmax.xlane.f32.xlu0 %v4789_v57  ;;  %v9646_v57 = vadd.f32 %v4668_v10, %v9051_v60  ;;  %v9661_v60 = vadd.f32 %v9058_v0, %v4671_v33  ;;  %v4690_v10 = vsel %vm884_vm6, %v9656_v56, -inf  ;;  %v9676_v0 = vadd.f32 %v4674_v44, %v9098_v17 }
 0x5b6   :  { %4793 = vmax.xlane.f32.xlu1 %v4792_v42  ;;  %v4699_v33 = vsel %vm884_vm6, %v9671_v5, -inf  ;;  %v4705_v6 = vsel %vm884_vm6, %v9681_v11, -inf }
 0x5b7   :  { %v4684_v42 = vsel %vm884_vm6, %v9646_v57, -inf  ;;  %v4693_v14 = vsel %vm884_vm6, %v9661_v60, -inf  ;;  %v4702_v59 = vsel %vm884_vm6, %v9676_v0, -inf }
 0x5b9   :  { %4796 = vmax.xlane.f32.xlu0 %v4795_v51  ;;  %v4687_v51 = vsel %vm884_vm6, %v9651_v62, -inf }
 0x5ba   :  { %4799 = vmax.xlane.f32.xlu1 %v4798_v48  ;;  %v1506_v48 = vld [vmem:[#allocation6 + $0x1b0] sm:$0x3] }
 0x5bb   :  { %v7709_v17 = vpack.c.bf16 %v1506_v48, %v1505_v16 }
 0x5bd   :  { %4802 = vmax.xlane.f32.xlu0 %v4801_v61  ;;  %7711 = vmatprep.subr.msk.bf16.mxu1 %vm7710_vm10, %v7709_v17 }
 0x5be   :  { %4685 = vmax.xlane.f32.xlu1 %v4684_v42  ;;  %7714 = vmatpush3.bf16.msk.msra.mxu1 %vm7710_vm10, %v7709_v17 }
 0x5c1   :  { %4688 = vmax.xlane.f32.xlu0 %v4687_v51 }
 0x5c2   :  { %4691 = vmax.xlane.f32.xlu1 %v4690_v10 }
 0x5c5   :  { %4694 = vmax.xlane.f32.xlu0 %v4693_v14 }
 0x5c6   :  { %4697 = vmax.xlane.f32.xlu1 %v4696_v1 }
 0x5c9   :  { %4700 = vmax.xlane.f32.xlu0 %v4699_v33 }
 0x5ca   :  { %4703 = vmax.xlane.f32.xlu1 %v4702_v59 }
 0x5cd   :  { %4706 = vmax.xlane.f32.xlu0 %v4705_v6 }
 0x61b   :  { %v9688_v12 = vpop.xlane.xlu1 %3552 }
 0x61e   :  { %v9690_v44 = vpop.xlane.xlu0 %3555 }
 0x61f   :  { %v9692_v58 = vpop.xlane.xlu1 %3558 }
 0x622   :  { %v9694_v61 = vpop.xlane.xlu0 %3561 }
 0x623   :  { %v9696_v42 = vpop.xlane.xlu1 %3564 }
 0x626   :  { %v9698_v51 = vpop.xlane.xlu0 %3567 }
 0x627   :  { %v9700_v10 = vpop.xlane.xlu1 %3570 }
 0x62a   :  { %v9702_v14 = vpop.xlane.xlu0 %3573 }
 0x62b   :  { %v9704_v1 = vpop.xlane.xlu1 %3456 }
 0x62e   :  { %v9706_v33 = vpop.xlane.xlu0 %3459 }
 0x62f   :  { %v9708_v59 = vpop.xlane.xlu1 %3462 }
 0x632   :  { %v9710_v6 = vpop.xlane.xlu0 %3465 }
 0x633   :  { %10140 = vst [vmem:[#allocation37_spill] sm:$0xff] %v9710_v6  ;;  %v9712_v16 = vpop.xlane.xlu1 %3468 }
 0x634   :  { %10141 = vst [vmem:[#allocation38_spill] sm:$0xff] %v9712_v16 }
 0x636   :  { %v9714_v48 = vpop.xlane.xlu0 %3471 }
 0x637   :  { %10142 = vst [vmem:[#allocation39_spill] sm:$0xff] %v9714_v48  ;;  %v9716_v17 = vpop.xlane.xlu1 %3474 }
 0x638   :  { %10143 = vst [vmem:[#allocation40_spill] sm:$0xff] %v9716_v17 }
 0x63a   :  { %v9718_v63 = vpop.xlane.xlu0 %3477 }
 0x63b   :  { %10144 = vst [vmem:[#allocation41_spill] sm:$0xff] %v9718_v63  ;;  %v4782_v9 = vpop.xlane.xlu1 %4781 }
 0x63c   :  { %v4804_v52 = vsub.f32 %v9604_v22, %v4782_v9 }
 0x63e   :  { %v4812_v3 = vmul.f32 1.442695, %v4804_v52  ;;  %v4785_v49 = vpop.xlane.xlu0 %4784 }
 0x63f   :  { %v4805_v43 = vsub.f32 %v9611_v37, %v4785_v49  ;;  %v4788_v53 = vpop.xlane.xlu1 %4787 }
 0x640   :  { %8465 = vpow2.f32 %v4812_v3  ;;  %v4806_v2 = vsub.f32 %v9616_v26, %v4788_v53 }
 0x641   :  { %v4814_v23 = vmul.f32 1.442695, %v4805_v43 }
 0x642   :  { %v4816_v29 = vmul.f32 1.442695, %v4806_v2  ;;  %v4791_v16 = vpop.xlane.xlu0 %4790 }
 0x643   :  { %8467 = vpow2.f32 %v4814_v23  ;;  %v4807_v48 = vsub.f32 %v9621_v25, %v4791_v16  ;;  %v4794_v17 = vpop.xlane.xlu1 %4793 }
 0x644   :  { %8469 = vpow2.f32 %v4816_v29  ;;  %v4808_v63 = vsub.f32 %v9626_v32, %v4794_v17 }
 0x645   :  { %v4818_v6 = vmul.f32 1.442695, %v4807_v48 }
 0x646   :  { %v4820_v9 = vmul.f32 1.442695, %v4808_v63  ;;  %v4797_v52 = vpop.xlane.xlu0 %4796 }
 0x647   :  { %8471 = vpow2.f32 %v4818_v6  ;;  %v4809_v49 = vsub.f32 %v9631_v20, %v4797_v52  ;;  %v4800_v22 = vpop.xlane.xlu1 %4799 }
 0x648   :  { %8473 = vpow2.f32 %v4820_v9  ;;  %v4810_v53 = vsub.f32 %v9636_v7, %v4800_v22 }
 0x649   :  { %v4822_v43 = vmul.f32 1.442695, %v4809_v49 }
 0x64a   :  { %v9727_v2 = vpop.eup %8465  ;;  %v4824_v23 = vmul.f32 1.442695, %v4810_v53  ;;  %v4803_v3 = vpop.xlane.xlu0 %4802 }
 0x64b   :  { %8475 = vpow2.f32 %v4822_v43  ;;  %v4811_v29 = vsub.f32 %v9641_v38, %v4803_v3  ;;  %v4686_v37 = vpop.xlane.xlu1 %4685  ;;  %v4828_v63 = vsel %vm884_vm6, %v9727_v2, 0.0 }
 0x64c   :  { %8477 = vpow2.f32 %v4824_v23  ;;  %v4708_v26 = vsub.f32 %v9646_v57, %v4686_v37  ;;  %4829 = vadd.xlane.f32.xlu1 %v4828_v63 }
 0x64d   :  { %v9733_v25 = vpop.eup %8467  ;;  %v4826_v32 = vmul.f32 1.442695, %v4811_v29 }
 0x64e   :  { %v9735_v20 = vpop.eup %8469  ;;  %v4716_v7 = vmul.f32 1.442695, %v4708_v26  ;;  %v4689_v6 = vpop.xlane.xlu0 %4688  ;;  %v4831_v16 = vsel %vm884_vm6, %v9733_v25, 0.0 }
 0x64f   :  { %8479 = vpow2.f32 %v4826_v32  ;;  %v4709_v38 = vsub.f32 %v9651_v62, %v4689_v6  ;;  %v4692_v48 = vpop.xlane.xlu1 %4691  ;;  %4832 = vadd.xlane.f32.xlu0 %v4831_v16  ;;  %v4834_v17 = vsel %vm884_vm6, %v9735_v20, 0.0 }
 0x650   :  { %8481 = vpow2.f32 %v4716_v7  ;;  %v4710_v57 = vsub.f32 %v9656_v56, %v4692_v48  ;;  %4835 = vadd.xlane.f32.xlu1 %v4834_v17 }
 0x651   :  { %v9743_v9 = vpop.eup %8471  ;;  %v4718_v52 = vmul.f32 1.442695, %v4709_v38 }
 0x652   :  { %v9745_v49 = vpop.eup %8473  ;;  %v4720_v22 = vmul.f32 1.442695, %v4710_v57  ;;  %v4695_v53 = vpop.xlane.xlu0 %4694  ;;  %v4837_v43 = vsel %vm884_vm6, %v9743_v9, 0.0 }
 0x653   :  { %10145 = vst [vmem:[#allocation42_spill] sm:$0xff] %v9745_v49  ;;  %8483 = vpow2.f32 %v4718_v52  ;;  %v4711_v62 = vsub.f32 %v9661_v60, %v4695_v53  ;;  %v4698_v23 = vpop.xlane.xlu1 %4697  ;;  %4838 = vadd.xlane.f32.xlu0 %v4837_v43  ;;  %v4840_v3 = vsel %vm884_vm6, %v9745_v49, 0.0 }
 0x654   :  { %8485 = vpow2.f32 %v4720_v22  ;;  %v4712_v56 = vsub.f32 %v9666_v55, %v4698_v23  ;;  %4841 = vadd.xlane.f32.xlu1 %v4840_v3 }
 0x655   :  { %v9753_v29 = vpop.eup %8475  ;;  %v4722_v37 = vmul.f32 1.442695, %v4711_v62 }
 0x656   :  { %10146 = vst [vmem:[#allocation43_spill] sm:$0xff] %v9753_v29  ;;  %v9755_v63 = vpop.eup %8477  ;;  %v4724_v26 = vmul.f32 1.442695, %v4712_v56  ;;  %v4701_v32 = vpop.xlane.xlu0 %4700  ;;  %v4843_v7 = vsel %vm884_vm6, %v9753_v29, 0.0  ;;  %v1654_v29 = vld [vmem:[#allocation6 + $0x230] sm:$0xff] }
 0x657   :  { %10147 = vst [vmem:[#allocation44_spill] sm:$0xff] %v9755_v63  ;;  %8487 = vpow2.f32 %v4722_v37  ;;  %v4713_v60 = vsub.f32 %v9671_v5, %v4701_v32  ;;  %v4704_v6 = vpop.xlane.xlu1 %4703  ;;  %4844 = vadd.xlane.f32.xlu0 %v4843_v7  ;;  %v4846_v16 = vsel %vm884_vm6, %v9755_v63, 0.0 }
 0x658   :  { %8489 = vpow2.f32 %v4724_v26  ;;  %v4714_v55 = vsub.f32 %v9676_v0, %v4704_v6  ;;  %4847 = vadd.xlane.f32.xlu1 %v4846_v16 }
 0x659   :  { %v9763_v38 = vpop.eup %8479  ;;  %v4726_v48 = vmul.f32 1.442695, %v4713_v60 }
 0x65a   :  { %10148 = vst [vmem:[#allocation45_spill] sm:$0xff] %v9763_v38  ;;  %v9765_v17 = vpop.eup %8481  ;;  %v4728_v57 = vmul.f32 1.442695, %v4714_v55  ;;  %v4707_v52 = vpop.xlane.xlu0 %4706  ;;  %v4849_v22 = vsel %vm884_vm6, %v9763_v38, 0.0 }
 0x65b   :  { %10149 = vst [vmem:[#allocation46_spill] sm:$0xff] %v9765_v17  ;;  %8491 = vpow2.f32 %v4726_v48  ;;  %v4715_v5 = vsub.f32 %v9681_v11, %v4707_v52  ;;  %4850 = vadd.xlane.f32.xlu0 %v4849_v22  ;;  %v4732_v53 = vsel %vm884_vm6, %v9765_v17, 0.0  ;;  %v1363_v48 = vld [vmem:[#allocation6 + $0x271] ss:$0 sm:$0xff] }
 0x65c   :  { %8493 = vpow2.f32 %v4728_v57  ;;  %4733 = vadd.xlane.f32.xlu1 %v4732_v53 }
 0x65d   :  { %v9772_v0 = vpop.eup %8483  ;;  %v4730_v43 = vmul.f32 1.442695, %v4715_v5 }
 0x65e   :  { %10150 = vst [vmem:[#allocation47_spill] sm:$0xff] %v9772_v0  ;;  %v9774_v62 = vpop.eup %8485  ;;  %v4735_v23 = vsel %vm884_vm6, %v9772_v0, 0.0 }
 0x65f   :  { %10151 = vst [vmem:[#allocation48_spill] sm:$0xff] %v9774_v62  ;;  %8495 = vpow2.f32 %v4730_v43  ;;  %4736 = vadd.xlane.f32.xlu0 %v4735_v23  ;;  %v4738_v3 = vsel %vm884_vm6, %v9774_v62, 0.0 }
 0x660   :  { %4739 = vadd.xlane.f32.xlu1 %v4738_v3  ;;  %8497 = vrcp.f32 %v9477_v46 }
 0x661   :  { %v9780_v11 = vpop.eup %8487  ;;  %8499 = vrcp.f32 %v9479_v30 }
 0x662   :  { %10152 = vst [vmem:[#allocation49_spill] sm:$0xff] %v9780_v11  ;;  %v9782_v56 = vpop.eup %8489  ;;  %v4741_v37 = vsel %vm884_vm6, %v9780_v11, 0.0  ;;  %8501 = vrcp.f32 %v9481_v27 }
 0x663   :  { %10153 = vst [vmem:[#allocation50_spill] sm:$0xff] %v9782_v56  ;;  %4742 = vadd.xlane.f32.xlu0 %v4741_v37  ;;  %v4744_v26 = vsel %vm884_vm6, %v9782_v56, 0.0  ;;  %8503 = vrcp.f32 %v9483_v21 }
 0x664   :  { %4745 = vadd.xlane.f32.xlu1 %v4744_v26  ;;  %8505 = vrcp.f32 %v9485_v24 }
 0x665   :  { %v9788_v32 = vpop.eup %8491  ;;  %8507 = vrcp.f32 %v9487_v8 }
 0x666   :  { %10154 = vst [vmem:[#allocation51_spill] sm:$0xff] %v9788_v32  ;;  %v9790_v7 = vpop.eup %8493  ;;  %v4747_v60 = vsel %vm884_vm6, %v9788_v32, 0.0  ;;  %8509 = vrcp.f32 %v9489_v54  ;;  %v2334_v54 = vld [vmem:[#allocation6 + $0x2d0] sm:$0xff] }
 0x667   :  { %10155 = vst [vmem:[#allocation52_spill] sm:$0xff] %v9790_v7  ;;  %4748 = vadd.xlane.f32.xlu0 %v4747_v60  ;;  %v4750_v6 = vsel %vm884_vm6, %v9790_v7, 0.0  ;;  %8511 = vrcp.f32 %v9491_v45 }
 0x668   :  { %4751 = vadd.xlane.f32.xlu1 %v4750_v6  ;;  %8513 = vrcp.f32 %v9493_v47 }
 0x669   :  { %v9796_v16 = vpop.eup %8495  ;;  %8515 = vrcp.f32 %v9495_v39  ;;  %v10157_v39 = vld [vmem:[#allocation12_spill] sm:$0xff] }
 0x66a   :  { %10156 = vst [vmem:[#allocation53_spill] sm:$0xff] %v9796_v16  ;;  %v4753_v55 = vsel %vm884_vm6, %v9796_v16, 0.0  ;;  %8517 = vrcp.f32 %v9497_v35 }
 0x66b   :  { %4754 = vadd.xlane.f32.xlu0 %v4753_v55  ;;  %8519 = vrcp.f32 %v9499_v18  ;;  %v10160_v18 = vld [vmem:[#allocation24_spill] sm:$0xff] }
 0x66c   :  { %8521 = vrcp.f32 %v9501_v19 }
 0x66e   :  { %v6917_v57 = vpop.f32.mrb[24].mxu1 }
 0x66f   :  { %v1464_v52 = vadd.f32 %v6917_v57, %v1363_v48  ;;  %v1458_v22 = vpop.f32.mrb[25].mxu1 }
 0x670   :  { %v1459_v5 = vadd.f32 %v1458_v22, %v1363_v48 }
 0x671   :  { %v1498_v23 = vmax.f32 %v1464_v52, 0.0 }
 0x672   :  { %v1497_v53 = vmax.f32 %v1459_v5, 0.0  ;;  %v6920_v43 = vpop.f32.mrb[26].mxu1 }
 0x673   :  { %v1474_v3 = vadd.f32 %v6920_v43, %v1363_v48  ;;  %v1468_v37 = vpop.f32.mrb[27].mxu1 }
 0x674   :  { %v1469_v26 = vadd.f32 %v1468_v37, %v1363_v48  ;;  %6931 = vmatprep.mubr.msk.f32.mxu1 %vm1508_vm11, %v1497_v53 }
 0x675   :  { %6932 = vmatmul.mubr.msk.f32.vlgmr.msra.gmra.mrb[32].mxu1 %vm1508_vm11, %v1498_v23  ;;  %v1500_v16 = vmax.f32 %v1474_v3, 0.0  ;;  %v1751_v3 = vld [vmem:[#allocation7 + $0x20] sm:$0xff] }
 0x676   :  { %v1499_v60 = vmax.f32 %v1469_v26, 0.0  ;;  %v6923_v6 = vpop.f32.mrb[28].mxu1 }
 0x677   :  { %v1484_v55 = vadd.f32 %v6923_v6, %v1363_v48  ;;  %v1478_v7 = vpop.f32.mrb[29].mxu1 }
 0x678   :  { %v1479_v32 = vadd.f32 %v1478_v7, %v1363_v48  ;;  %6934 = vmatprep.mubr.msk.f32.mxu1 %vm1508_vm11, %v1499_v60  ;;  %v1666_v7 = vld [vmem:[#allocation7] sm:$0xff]  ;;  %v1752_v60 = vld [vmem:[#allocation7 + $0x28] sm:$0xff] }
 0x679   :  { %6935 = vmatmul.mubr.msk.f32.gmra.mrb[34].mxu1 %vm1508_vm11, %v1500_v16  ;;  %v1502_v52 = vmax.f32 %v1484_v55, 0.0  ;;  %6959 = vmatprep.mubr.msk.f32.mxu0 %vm884_vm6, %v1666_v7  ;;  %v1749_v16 = vld [vmem:[#allocation7 + $0x10] sm:$0xff]  ;;  %v7735_v6 = vpack.c.bf16 %v1752_v60, %v1751_v3 }
 0x67a   :  { %v1501_v57 = vmax.f32 %v1479_v32, 0.0  ;;  %v6926_v22 = vpop.f32.mrb[30].mxu1  ;;  %v1750_v32 = vld [vmem:[#allocation7 + $0x18] sm:$0xff]  ;;  %v1507_v55 = vld [vmem:[#allocation6 + $0x272] ss:$0 sm:$0xff] }
 0x67b   :  { %v1494_v5 = vadd.f32 %v6926_v22, %v1363_v48  ;;  %v1488_v43 = vpop.f32.mrb[31].mxu1  ;;  %v7731_v26 = vpack.c.bf16 %v1750_v32, %v1749_v16 }
 0x67c   :  { %v1489_v37 = vadd.f32 %v1488_v43, %v1363_v48  ;;  %6937 = vmatprep.mubr.msk.f32.mxu1 %vm1508_vm11, %v1501_v57  ;;  %v1753_v48 = vld [vmem:[#allocation7 + $0x30] sm:$0xff] }
 0x67d   :  { %6938 = vmatmul.mubr.msk.f32.gmra.mrb[36].mxu1 %vm1508_vm11, %v1502_v52  ;;  %v1504_v23 = vmax.f32 %v1494_v5, 0.0  ;;  %7732 = vmatprep.subr.bf16.mxu1 %v7731_v26  ;;  %v1651_v5 = vld [vmem:[#allocation6 + $0x200] sm:$0xff] }
 0x67e   :  { %v1503_v53 = vmax.f32 %v1489_v37, 0.0  ;;  %7734 = vmatpush3.bf16.msra.mxu1 %v7731_v26  ;;  %v1653_v26 = vld [vmem:[#allocation6 + $0x220] sm:$0xff] }
 0x67f   :  { %7736 = vmatprep.subr.bf16.mxu1 %v7735_v6 }
 0x680   :  { %6940 = vmatprep.mubr.msk.f32.mxu1 %vm1508_vm11, %v1503_v53  ;;  %v1650_v53 = vld [vmem:[#allocation6 + $0x1f0] sm:$0xff] }
 0x681   :  { %6941 = vmatmul.mubr.msk.f32.gmra.mrb[38].mxu1 %vm1508_vm11, %v1504_v23 }
 0x682   :  { %7738 = vmatpush3.bf16.msra.mxu1 %v7735_v6  ;;  %v1652_v6 = vld [vmem:[#allocation6 + $0x210] sm:$0xff] }
 0x683   :  { %6970 = vmatprep.subr.mxu1 %v1753_v48 }
 0x686   :  { %6971 = vmatpush3.msra.mxu1 %v1753_v48 }
 0x748   :  { %v6933_v57 = vpop.f32.mrb[32].mxu1 }
 0x749   :  { %v1609_v22 = vadd.f32 %v6933_v57, %v1507_v55  ;;  %v1603_v52 = vpop.f32.mrb[33].mxu1 }
 0x74a   :  { %v1604_v43 = vadd.f32 %v1603_v52, %v1507_v55  ;;  %v1655_v52 = vld [vmem:[#allocation6 + $0x240] sm:$0xff] }
 0x74b   :  { %v1643_v37 = vmax.f32 %v1609_v22, 0.0 }
 0x74c   :  { %v1642_v23 = vmax.f32 %v1604_v43, 0.0  ;;  %v6936_v7 = vpop.f32.mrb[34].mxu1 }
 0x74d   :  { %v1659_v16 = vmul.f32 %v1651_v5, %v1643_v37  ;;  %v1619_v32 = vadd.f32 %v6936_v7, %v1507_v55  ;;  %v1613_v3 = vpop.f32.mrb[35].mxu1 }
 0x74e   :  { %v1658_v60 = vmul.f32 %v1650_v53, %v1642_v23  ;;  %v1614_v56 = vadd.f32 %v1613_v3, %v1507_v55 }
 0x74f   :  { %v1645_v11 = vmax.f32 %v1619_v32, 0.0 }
 0x750   :  { %v1644_v62 = vmax.f32 %v1614_v56, 0.0  ;;  %v6939_v48 = vpop.f32.mrb[36].mxu1  ;;  %v7715_v0 = vpack.c.bf16 %v1659_v16, %v1658_v60  ;;  %v1657_v56 = vld [vmem:[#allocation6 + $0x260] sm:$0xff]  ;;  %v1656_v16 = vld [vmem:[#allocation6 + $0x250] sm:$0xff] }
 0x751   :  { %v1661_v17 = vmul.f32 %v1653_v26, %v1645_v11  ;;  %v1629_v57 = vadd.f32 %v6939_v48, %v1507_v55  ;;  %v1623_v38 = vpop.f32.mrb[37].mxu1  ;;  %v1846_v48 = vld [vmem:[#allocation7 + $0xc8] sm:$0xff] }
 0x752   :  { %v1660_v63 = vmul.f32 %v1652_v6, %v1644_v62  ;;  %v1624_v22 = vadd.f32 %v1623_v38, %v1507_v55  ;;  %7716 = vmatprep.subr.bf16.mxu0 %v7715_v0  ;;  %v1845_v6 = vld [vmem:[#allocation7 + $0xc0] sm:$0xff] }
 0x753   :  { %v1647_v43 = vmax.f32 %v1629_v57, 0.0  ;;  %7718 = vmatpush3.bf16.msra.mxu0 %v7715_v0  ;;  %v7743_v57 = vpack.c.bf16 %v1846_v48, %v1845_v6  ;;  %v1943_v6 = vld [vmem:[#allocation7 + $0x140] sm:$0xff]  ;;  %v1944_v48 = vld [vmem:[#allocation7 + $0x148] sm:$0xff] }
 0x754   :  { %v1646_v5 = vmax.f32 %v1624_v22, 0.0  ;;  %v6942_v37 = vpop.f32.mrb[38].mxu1  ;;  %v7719_v53 = vpack.c.bf16 %v1661_v17, %v1660_v63  ;;  %v1667_v63 = vld [vmem:[#allocation7 + $0x8] sm:$0xff]  ;;  %v1843_v17 = vld [vmem:[#allocation7 + $0xb0] sm:$0xff]  ;;  %v1848_v22 = vld [vmem:[#allocation7 + $0xd8] sm:$0xff] }
 0x755   :  { %v1663_v23 = vmul.f32 %v1655_v52, %v1647_v43  ;;  %v1639_v7 = vadd.f32 %v6942_v37, %v1507_v55  ;;  %v1633_v32 = vpop.f32.mrb[39].mxu1  ;;  %v1847_v52 = vld [vmem:[#allocation7 + $0xd0] sm:$0xff]  ;;  %v1849_v43 = vld [vmem:[#allocation7 + $0xe0] sm:$0xff] }
 0x756   :  { %v1662_v3 = vmul.f32 %v1654_v29, %v1646_v5  ;;  %v1634_v49 = vadd.f32 %v1633_v32, %v1507_v55  ;;  %7720 = vmatprep.subr.bf16.mxu0 %v7719_v53  ;;  %v1844_v29 = vld [vmem:[#allocation7 + $0xb8] sm:$0xff]  ;;  %v1850_v5 = vld [vmem:[#allocation7 + $0xe8] sm:$0xff]  ;;  %v1853_v32 = vld [vmem:[#allocation7 + $0x100] sm:$0xff] }
 0x757   :  { %v1649_v11 = vmax.f32 %v1639_v7, 0.0  ;;  %7722 = vmatpush3.bf16.msra.mxu0 %v7719_v53  ;;  %v7739_v55 = vpack.c.bf16 %v1844_v29, %v1843_v17  ;;  %v7751_v37 = vpack.c.bf16 %v1850_v5, %v1849_v43  ;;  %v1851_v53 = vld [vmem:[#allocation7 + $0xf0] sm:$0xff]  ;;  %v1942_v29 = vld [vmem:[#allocation7 + $0x138] sm:$0xff] }
 0x758   :  { %v1648_v62 = vmax.f32 %v1634_v49, 0.0  ;;  %v7723_v60 = vpack.c.bf16 %v1663_v23, %v1662_v3  ;;  %v7747_v49 = vpack.c.bf16 %v1848_v22, %v1847_v52  ;;  %v1852_v23 = vld [vmem:[#allocation7 + $0xf8] sm:$0xff]  ;;  %v1854_v3 = vld [vmem:[#allocation7 + $0x108] sm:$0xff]  ;;  %v1941_v17 = vld [vmem:[#allocation7 + $0x130] sm:$0xff] }
 0x759   :  { %v1665_v38 = vmul.f32 %v1657_v56, %v1649_v11  ;;  %v7755_v7 = vpack.c.bf16 %v1852_v23, %v1851_v53  ;;  %v7759_v56 = vpack.c.bf16 %v1854_v3, %v1853_v32  ;;  %v1855_v11 = vld [vmem:[#allocation7 + $0x110] sm:$0xff]  ;;  %v1946_v22 = vld [vmem:[#allocation7 + $0x158] sm:$0xff]  ;;  %v1947_v3 = vld [vmem:[#allocation7 + $0x160] sm:$0xff] }
 0x75a   :  { %v1664_v26 = vmul.f32 %v1656_v16, %v1648_v62  ;;  %7724 = vmatprep.subr.bf16.mxu0 %v7723_v60  ;;  %v1856_v16 = vld [vmem:[#allocation7 + $0x118] sm:$0xff]  ;;  %v1945_v52 = vld [vmem:[#allocation7 + $0x150] sm:$0xff] }
 0x75b   :  { %7726 = vmatpush3.bf16.msra.mxu0 %v7723_v60  ;;  %v7763_v62 = vpack.c.bf16 %v1856_v16, %v1855_v11  ;;  %v6104_v43 = vld [vmem:[#allocation7 + $0x190] ss:$0 sm:$0xff] }
 0x75c   :  { %v7727_v0 = vpack.c.bf16 %v1665_v38, %v1664_v26  ;;  %v1857_v26 = vld [vmem:[#allocation7 + $0x120] sm:$0xff]  ;;  %v2037_v16 = vld [vmem:[#allocation7 + $0x170] sm:$0xff] }
 0x75e   :  { %7728 = vmatprep.subr.bf16.mxu0 %v7727_v0 }
 0x75f   :  { %7730 = vmatpush3.bf16.msra.mxu0 %v7727_v0  ;;  %v1858_v0 = vld [vmem:[#allocation7 + $0x128] sm:$0xff] }
 0x760   :  { %7740 = vmatprep.subr.bf16.mxu0 %v7739_v55 }
 0x762   :  { %6960 = vmatmul.mubr.msk.f32.vlgmr.msra.gmra.mrb[32].mxu0 %vm884_vm6, %v1667_v63  ;;  %v7767_v63 = vpack.c.bf16 %v1858_v0, %v1857_v26 }
 0x763   :  { %7742 = vmatpush3.bf16.msra.mxu0 %v7739_v55  ;;  %v7771_v55 = vpack.c.bf16 %v1942_v29, %v1941_v17 }
 0x764   :  { %7744 = vmatprep.subr.bf16.mxu0 %v7743_v57 }
 0x765   :  { %7772 = vmatprep.subr.bf16.mxu1 %v7771_v55 }
 0x767   :  { %7746 = vmatpush3.bf16.msra.mxu0 %v7743_v57  ;;  %v7775_v57 = vpack.c.bf16 %v1944_v48, %v1943_v6  ;;  %v2040_v48 = vld [vmem:[#allocation7 + $0x188] sm:$0xff] }
 0x768   :  { %7748 = vmatprep.subr.bf16.mxu0 %v7747_v49 }
 0x76b   :  { %7750 = vmatpush3.bf16.msra.mxu0 %v7747_v49  ;;  %v7779_v49 = vpack.c.bf16 %v1946_v22, %v1945_v52  ;;  %v2337_v52 = vld [vmem:[#allocation6 + $0x300] sm:$0xff]  ;;  %v2338_v22 = vld [vmem:[#allocation6 + $0x310] sm:$0xff] }
 0x76c   :  { %7752 = vmatprep.subr.bf16.mxu0 %v7751_v37 }
 0x76f   :  { %7754 = vmatpush3.bf16.msra.mxu0 %v7751_v37 }
 0x770   :  { %7756 = vmatprep.subr.bf16.mxu0 %v7755_v7 }
 0x773   :  { %7758 = vmatpush3.bf16.msra.mxu0 %v7755_v7 }
 0x774   :  { %7760 = vmatprep.subr.bf16.mxu0 %v7759_v56 }
 0x777   :  { %7762 = vmatpush3.bf16.msra.mxu0 %v7759_v56  ;;  %v1948_v56 = vld [vmem:[#allocation7 + $0x168] sm:$0xff] }
 0x778   :  { %7764 = vmatprep.subr.bf16.mxu0 %v7763_v62  ;;  %v7783_v11 = vpack.c.bf16 %v1948_v56, %v1947_v3  ;;  %v8498_v3 = vpop.eup %8497 }
 0x779   :  { %v8500_v27 = vpop.eup %8499 }
 0x77a   :  { %v2316_v21 = vmul.f32 %v8500_v27, %v9328_v28 }
 0x77b   :  { %7766 = vmatpush3.bf16.msra.mxu0 %v7763_v62  ;;  %v2038_v62 = vld [vmem:[#allocation7 + $0x178] sm:$0xff] }
 0x77c   :  { %7768 = vmatprep.subr.bf16.mxu0 %v7767_v63 }
 0x77f   :  { %7770 = vmatpush3.bf16.msra.mxu0 %v7767_v63 }
 0x835   :  { %v6961_v60 = vpop.f32.mrb[32].mxu0 }
 0x836   :  { %v1740_v38 = vpop.f32.mrb[33].mxu0 }
 0x837   :  { %6972 = vmatprep.mubr.msk.f32.mxu1 %vm1759_vm12, %v1740_v38  ;;  %v6107_v38 = vld [vmem:[#allocation7 + $0x191] ss:$0 sm:$0xff] }
 0x838   :  { %6973 = vmatmul.mubr.msk.f32.vlgmr.msra.gmra.mrb[40].mxu1 %vm1759_vm12, %v6961_v60  ;;  %v7787_v60 = vpack.c.bf16 %v2038_v62, %v2037_v16  ;;  %v2314_v62 = vmul.f32 %v8498_v3, %v9322_v36  ;;  %v10162_v3 = vld [vmem:[#allocation15_spill] sm:$0xff] }
 0x839   :  { %7774 = vmatpush3.bf16.msra.mxu1 %v7771_v55  ;;  %v2039_v55 = vld [vmem:[#allocation7 + $0x180] sm:$0xff] }
 0x83a   :  { %7776 = vmatprep.subr.bf16.mxu1 %v7775_v57 }
 0x83d   :  { %7778 = vmatpush3.bf16.msra.mxu1 %v7775_v57  ;;  %v7791_v57 = vpack.c.bf16 %v2040_v48, %v2039_v55  ;;  %v8502_v55 = vpop.eup %8501 }
 0x83e   :  { %7780 = vmatprep.subr.bf16.mxu1 %v7779_v49  ;;  %v8504_v48 = vpop.eup %8503  ;;  %v2318_v8 = vmul.f32 %v8502_v55, %v9330_v34  ;;  %v2335_v34 = vld [vmem:[#allocation6 + $0x2e0] sm:$0xff] }
 0x83f   :  { %v2320_v28 = vmul.f32 %v8504_v48, %v9338_v13 }
 0x841   :  { %7782 = vmatpush3.bf16.msra.mxu1 %v7779_v49  ;;  %v7795_v49 = vpack.c.bf16 %v2338_v22, %v2337_v52  ;;  %v8506_v52 = vpop.eup %8505 }
 0x842   :  { %7784 = vmatprep.subr.bf16.mxu1 %v7783_v11  ;;  %v8508_v47 = vpop.eup %8507  ;;  %v2322_v22 = vmul.f32 %v8506_v52, %v9340_v50  ;;  %v2621_v52 = vld [vmem:[#allocation6 + $0x390] sm:$0xff] }
 0x843   :  { %v2324_v35 = vmul.f32 %v8508_v47, %v10157_v39  ;;  %v2623_v47 = vld [vmem:[#allocation6 + $0x3b0] sm:$0xff] }
 0x845   :  { %7786 = vmatpush3.bf16.msra.mxu1 %v7783_v11 }
 0x846   :  { %7788 = vmatprep.subr.bf16.mxu1 %v7787_v60 }
 0x90b   :  { %v6974_v5 = vpop.f32.mrb[40].mxu1 }
 0x90c   :  { %v1838_v37 = vadd.f32 %v6974_v5, %v6104_v43  ;;  %v1832_v53 = vpop.f32.mrb[41].mxu1 }
 0x90d   :  { %v1833_v23 = vadd.f32 %v6104_v43, %v1832_v53  ;;  %v6108_v43 = vld [vmem:[#allocation7 + $0x192] ss:$0 sm:$0xff] }
 0x90e   :  { %v1842_v32 = vmax.f32 %v1838_v37, 0.0 }
 0x90f   :  { %v1841_v7 = vmax.f32 %v1833_v23, 0.0 }
 0x911   :  { %7007 = vmatprep.mubr.f32.mxu0 %v1841_v7  ;;  %v2339_v7 = vld [vmem:[#allocation6 + $0x320] sm:$0xff] }
 0x912   :  { %7008 = vmatmul.mubr.f32.vlgmr.msra.gmra.mrb[34].mxu0 %v1842_v32  ;;  %v2340_v32 = vld [vmem:[#allocation6 + $0x330] sm:$0xff] }
 0x913   :  { %v7799_v16 = vpack.c.bf16 %v2340_v32, %v2339_v7  ;;  %v10161_v7 = vld [vmem:[#allocation14_spill] sm:$0xff] }
 0x9e5   :  { %v7009_v26 = vpop.f32.mrb[34].mxu0 }
 0x9e6   :  { %v1936_v0 = vadd.f32 %v7009_v26, %v6107_v38  ;;  %v1930_v63 = vpop.f32.mrb[35].mxu0  ;;  %v2343_v26 = vld [vmem:[#allocation6 + $0x360] sm:$0xff] }
 0x9e7   :  { %v1931_v17 = vadd.f32 %v6107_v38, %v1930_v63  ;;  %v2342_v38 = vld [vmem:[#allocation6 + $0x350] sm:$0xff]  ;;  %v2329_v63 = vld [vmem:[#allocation6 + $0x280] sm:$0xff] }
 0x9e8   :  { %v1940_v6 = vmax.f32 %v1936_v0, 0.0  ;;  %v2344_v0 = vld [vmem:[#allocation6 + $0x370] sm:$0xff] }
 0x9e9   :  { %v1939_v29 = vmax.f32 %v1931_v17, 0.0  ;;  %v7807_v36 = vpack.c.bf16 %v2344_v0, %v2343_v26  ;;  %v2330_v17 = vld [vmem:[#allocation6 + $0x290] sm:$0xff] }
 0x9ea   :  { %v7811_v30 = vpack.c.bf16 %v2330_v17, %v2329_v63 }
 0x9eb   :  { %7026 = vmatprep.mubr.msk.f32.mxu1 %vm884_vm6, %v1939_v29  ;;  %v2331_v29 = vld [vmem:[#allocation6 + $0x2a0] sm:$0xff] }
 0x9ec   :  { %7027 = vmatmul.mubr.msk.f32.vlgmr.msra.gmra.mrb[42].mxu1 %vm884_vm6, %v1940_v6  ;;  %v2332_v6 = vld [vmem:[#allocation6 + $0x2b0] sm:$0xff] }
 0x9ed   :  { %7790 = vmatpush3.bf16.msra.mxu1 %v7787_v60  ;;  %v2341_v60 = vld [vmem:[#allocation6 + $0x340] sm:$0xff]  ;;  %v7815_v24 = vpack.c.bf16 %v2332_v6, %v2331_v29 }
 0x9ee   :  { %7792 = vmatprep.subr.bf16.mxu1 %v7791_v57  ;;  %v7803_v46 = vpack.c.bf16 %v2342_v38, %v2341_v60  ;;  %v10168_v6 = vld [vmem:[#allocation20_spill] sm:$0xff] }
 0x9f1   :  { %7794 = vmatpush3.bf16.msra.mxu1 %v7791_v57  ;;  %v2333_v57 = vld [vmem:[#allocation6 + $0x2c0] sm:$0xff] }
 0x9f2   :  { %7796 = vmatprep.subr.bf16.mxu1 %v7795_v49  ;;  %v7819_v45 = vpack.c.bf16 %v2334_v54, %v2333_v57  ;;  %v2620_v54 = vld [vmem:[#allocation6 + $0x380] sm:$0xff] }
 0xabf   :  { %v7028_v5 = vpop.f32.mrb[42].mxu1 }
 0xac0   :  { %v2032_v37 = vadd.f32 %v7028_v5, %v6108_v43  ;;  %v2026_v53 = vpop.f32.mrb[43].mxu1 }
 0xac1   :  { %v2027_v23 = vadd.f32 %v6108_v43, %v2026_v53  ;;  %v8510_v43 = vpop.eup %8509 }
 0xac2   :  { %v2036_v11 = vmax.f32 %v2032_v37, 0.0  ;;  %v8512_v5 = vpop.eup %8511  ;;  %v10158_v37 = vld [vmem:[#allocation13_spill] sm:$0xff] }
 0xac3   :  { %v2035_v56 = vmax.f32 %v2027_v23, 0.0  ;;  %v2326_v53 = vmul.f32 %v8510_v43, %v10158_v37  ;;  %v8514_v50 = vpop.eup %8513  ;;  %v10159_v23 = vld [vmem:[#allocation23_spill] sm:$0xff]  ;;  %v2328_v32 = vmul.f32 %v8512_v5, %v10161_v7  ;;  %v2764_v43 = vld [vmem:[#allocation6 + $0x430] sm:$0xff] }
 0xac4   :  { %8523 = vrcp.f32 %v10159_v23  ;;  %v8516_v19 = vpop.eup %8515 }
 0xac5   :  { %7037 = vmatprep.mubr.msk.f32.mxu1 %vm352_vm4, %v2035_v56  ;;  %8525 = vrcp.f32 %v10160_v18  ;;  %v2218_v56 = vmul.f32 %v8514_v50, %v10162_v3  ;;  %v2603_v50 = vld [vmem:[#allocation6 + $0x4f0] ss:$0 sm:$0xff] }
 0xac6   :  { %7038 = vmatmul.mubr.msk.f32.vlgmr.msra.gmra.mrb[44].mxu1 %vm352_vm4, %v2036_v11  ;;  %v8518_v11 = vpop.eup %8517 }
 0xac7   :  { %7798 = vmatpush3.bf16.msra.mxu1 %v7795_v49  ;;  %7056 = vmatprep.mubr.msk.f32.mxu1 %vm884_vm6, %v2314_v62  ;;  %v2336_v49 = vld [vmem:[#allocation6 + $0x2f0] sm:$0xff]  ;;  %v10164_v62 = vld [vmem:[#allocation16_spill] sm:$0xff]  ;;  %v8520_v38 = vpop.eup %8519 }
 0xac8   :  { %7800 = vmatprep.subr.bf16.mxu1 %v7799_v16  ;;  %v7823_v13 = vpack.c.bf16 %v2336_v49, %v2335_v34  ;;  %v2220_v60 = vmul.f32 %v8516_v19, %v10164_v62  ;;  %v8522_v0 = vpop.eup %8521  ;;  %v2624_v34 = vld [vmem:[#allocation6 + $0x3c0] sm:$0xff] }
 0xac9   :  { %v2763_v49 = vld [vmem:[#allocation6 + $0x420] sm:$0xff] }
 0xaca   :  { %v7835_v39 = vpack.c.bf16 %v2764_v43, %v2763_v49 }
 0xacb   :  { %7802 = vmatpush3.bf16.msra.mxu1 %v7799_v16  ;;  %v10163_v16 = vld [vmem:[#allocation25_spill] sm:$0xff] }
 0xacc   :  { %7804 = vmatprep.subr.bf16.mxu1 %v7803_v46  ;;  %8527 = vrcp.f32 %v10163_v16 }
 0xacd   :  { %8529 = vrcp.f32 %v9688_v12 }
 0xace   :  { %v8524_v17 = vpop.eup %8523  ;;  %8531 = vrcp.f32 %v9690_v44 }
 0xacf   :  { %7806 = vmatpush3.bf16.msra.mxu1 %v7803_v46  ;;  %v10165_v46 = vld [vmem:[#allocation17_spill] sm:$0xff]  ;;  %v8526_v29 = vpop.eup %8525  ;;  %v2228_v55 = vmul.f32 %v8524_v17, %v10168_v6  ;;  %8533 = vrcp.f32 %v9692_v58 }
 0xad0   :  { %7808 = vmatprep.subr.bf16.mxu1 %v7807_v36  ;;  %v2222_v26 = vmul.f32 %v8518_v11, %v10165_v46  ;;  %8535 = vrcp.f32 %v9694_v61 }
 0xad1   :  { %8537 = vrcp.f32 %v9696_v42 }
 0xad2   :  { %8539 = vrcp.f32 %v9698_v51 }
 0xad3   :  { %7810 = vmatpush3.bf16.msra.mxu1 %v7807_v36  ;;  %v10166_v36 = vld [vmem:[#allocation18_spill] sm:$0xff]  ;;  %8541 = vrcp.f32 %v9700_v10 }
 0xad4   :  { %7812 = vmatprep.subr.bf16.mxu1 %v7811_v30  ;;  %v2224_v63 = vmul.f32 %v8520_v38, %v10166_v36  ;;  %8543 = vrcp.f32 %v9702_v14  ;;  %v3596_v10 = vld [vmem:[#allocation6 + $0x550] sm:$0xff] }
 0xad5   :  { %8545 = vrcp.f32 %v9704_v1 }
 0xad6   :  { %7057 = vmatmul.mubr.msk.f32.vlgmr.msra.gmra.mrb[46].mxu1 %vm884_vm6, %v2316_v21  ;;  %v8528_v21 = vpop.eup %8527  ;;  %8547 = vrcp.f32 %v9706_v33  ;;  %v10172_v33 = vld [vmem:[#allocation38_spill] sm:$0xff] }
 0xad7   :  { %7059 = vmatprep.mubr.msk.f32.mxu1 %vm884_vm6, %v2318_v8  ;;  %7814 = vmatpush3.bf16.msra.mxu1 %v7811_v30  ;;  %v10167_v30 = vld [vmem:[#allocation19_spill] sm:$0xff]  ;;  %v10170_v8 = vld [vmem:[#allocation22_spill] sm:$0xff]  ;;  %8549 = vrcp.f32 %v9708_v59 }
 0xad8   :  { %7816 = vmatprep.subr.bf16.mxu1 %v7815_v24  ;;  %v2226_v27 = vmul.f32 %v8522_v0, %v10167_v30  ;;  %v2232_v57 = vmul.f32 %v8528_v21, %v10170_v8  ;;  %v10173_v59 = vld [vmem:[#allocation26_spill] sm:$0xff] }
 0xada   :  { %7060 = vmatmul.mubr.msk.f32.gmra.mrb[48].mxu1 %vm884_vm6, %v2320_v28  ;;  %v7827_v28 = vpack.c.bf16 %v2621_v52, %v2620_v54 }
 0xadb   :  { %7062 = vmatprep.mubr.msk.f32.mxu1 %vm884_vm6, %v2322_v22  ;;  %7818 = vmatpush3.bf16.msra.mxu1 %v7815_v24  ;;  %v10169_v24 = vld [vmem:[#allocation21_spill] sm:$0xff] }
 0xadc   :  { %7820 = vmatprep.subr.bf16.mxu1 %v7819_v45  ;;  %v2230_v48 = vmul.f32 %v8526_v29, %v10169_v24  ;;  %7828 = vmatprep.subr.bf16.mxu0 %v7827_v28 }
 0xadd   :  { %7830 = vmatpush3.bf16.msra.mxu0 %v7827_v28 }
 0xade   :  { %7063 = vmatmul.mubr.msk.f32.gmra.mrb[50].mxu1 %vm884_vm6, %v2324_v35  ;;  %v6111_v35 = vld [vmem:[#allocation7 + $0x193] ss:$0 sm:$0xff] }
 0xadf   :  { %7065 = vmatprep.mubr.msk.f32.mxu1 %vm884_vm6, %v2326_v53  ;;  %7822 = vmatpush3.bf16.msra.mxu1 %v7819_v45  ;;  %v2622_v45 = vld [vmem:[#allocation6 + $0x3a0] sm:$0xff] }
 0xae0   :  { %7824 = vmatprep.subr.bf16.mxu1 %v7823_v13  ;;  %v7831_v22 = vpack.c.bf16 %v2623_v47, %v2622_v45 }
 0xae2   :  { %7066 = vmatmul.mubr.msk.f32.gmra.mrb[52].mxu1 %vm884_vm6, %v2328_v32  ;;  %7832 = vmatprep.subr.bf16.mxu0 %v7831_v22 }
 0xae3   :  { %7826 = vmatpush3.bf16.msra.mxu1 %v7823_v13  ;;  %7084 = vmatprep.mubr.msk.f32.mxu1 %vm884_vm6, %v2218_v56 }
 0xae4   :  { %7834 = vmatpush3.bf16.msra.mxu0 %v7831_v22 }
 0xae5   :  { %7104 = vmatprep.subr.mxu0 %v2624_v34 }
 0xae6   :  { %7085 = vmatmul.mubr.msk.f32.vlgmr.msra.gmra.mrb[46].mxu1 %vm884_vm6, %v2220_v60  ;;  %v2765_v60 = vld [vmem:[#allocation6 + $0x440] sm:$0xf] }
 0xae7   :  { %7087 = vmatprep.mubr.msk.f32.mxu1 %vm884_vm6, %v2222_v26 }
 0xae8   :  { %7105 = vmatpush3.msra.mxu0 %v2624_v34 }
 0xae9   :  { %7836 = vmatprep.subr.bf16.mxu0 %v7835_v39 }
 0xaea   :  { %7088 = vmatmul.mubr.msk.f32.gmra.mrb[48].mxu1 %vm884_vm6, %v2224_v63 }
 0xaeb   :  { %7090 = vmatprep.mubr.msk.f32.mxu1 %vm884_vm6, %v2226_v27 }
 0xaee   :  { %7091 = vmatmul.mubr.msk.f32.gmra.mrb[50].mxu1 %vm884_vm6, %v2228_v55 }
 0xaef   :  { %7093 = vmatprep.mubr.msk.f32.mxu1 %vm884_vm6, %v2230_v48  ;;  %v2625_v48 = vld [vmem:[#allocation6 + $0x4f1] ss:$0 sm:$0xff] }
 0xaf2   :  { %7094 = vmatmul.mubr.msk.f32.gmra.mrb[52].mxu1 %vm884_vm6, %v2232_v57 }
 0xb99   :  { %v7039_v13 = vpop.f32.mrb[44].mxu1 }
 0xb9a   :  { %v2124_v5 = vadd.f32 %v7039_v13, %v6111_v35  ;;  %v2118_v37 = vpop.f32.mrb[45].mxu1 }
 0xb9b   :  { %v2119_v53 = vadd.f32 %v6111_v35, %v2118_v37 }
 0xb9c   :  { %2128 = vst [vmem:[%s10078_s5 + $0x8] sm:$0xff] %v2124_v5 }
 0xb9d   :  { %2127 = vst [vmem:[%s10078_s5] sm:$0xff] %v2119_v53 }
 0xbb9   :  { %v7086_v23 = vpop.f32.mrb[46].mxu1 }
 0xbba   :  { %v2605_v18 = vadd.f32 %v7086_v23, %v2603_v50  ;;  %v2564_v7 = vpop.f32.mrb[47].mxu1 }
 0xbbb   :  { %v2604_v32 = vadd.f32 %v2603_v50, %v2564_v7 }
 0xbbc   :  { %v2613_v56 = vmax.f32 %v2605_v18, 0.0 }
 0xbbd   :  { %v2612_v19 = vmax.f32 %v2604_v32, 0.0  ;;  %v7089_v3 = vpop.f32.mrb[48].mxu1 }
 0xbbe   :  { %v2607_v11 = vadd.f32 %v7089_v3, %v2603_v50  ;;  %v2574_v16 = vpop.f32.mrb[49].mxu1 }
 0xbbf   :  { %v2606_v62 = vadd.f32 %v2603_v50, %v2574_v16  ;;  %7106 = vmatprep.mubr.msk.f32.mxu0 %vm1759_vm12, %v2612_v19  ;;  %v3007_v16 = vld [vmem:[#allocation7 + $0x1b0] sm:$0xff] }
 0xbc0   :  { %7107 = vmatmul.mubr.msk.f32.vlgmr.msra.gmra.mrb[36].mxu0 %vm1759_vm12, %v2613_v56  ;;  %v2615_v26 = vmax.f32 %v2607_v11, 0.0  ;;  %v2923_v56 = vld [vmem:[#allocation7 + $0x198] sm:$0xff]  ;;  %v3006_v11 = vld [vmem:[#allocation7 + $0x1a8] sm:$0xff] }
 0xbc1   :  { %v2614_v38 = vmax.f32 %v2606_v62, 0.0  ;;  %v7092_v46 = vpop.f32.mrb[50].mxu1  ;;  %7838 = vmatpush3.bf16.msra.mxu0 %v7835_v39  ;;  %v3008_v62 = vld [vmem:[#allocation7 + $0x1b8] sm:$0xff] }
 0xbc2   :  { %v2609_v0 = vadd.f32 %v7092_v46, %v2603_v50  ;;  %v2584_v36 = vpop.f32.mrb[51].mxu1  ;;  %7122 = vmatprep.subr.msk.mxu0 %vm151_vm0, %v2765_v60 }
 0xbc3   :  { %v2608_v63 = vadd.f32 %v2603_v50, %v2584_v36  ;;  %7109 = vmatprep.mubr.msk.f32.mxu0 %vm1759_vm12, %v2614_v38  ;;  %v3009_v38 = vld [vmem:[#allocation7 + $0x1c0] sm:$0xff] }
 0xbc4   :  { %7110 = vmatmul.mubr.msk.f32.gmra.mrb[38].mxu0 %vm1759_vm12, %v2615_v26  ;;  %v2617_v27 = vmax.f32 %v2609_v0, 0.0  ;;  %v7859_v46 = vpack.c.bf16 %v3009_v38, %v3008_v62  ;;  %v3010_v26 = vld [vmem:[#allocation7 + $0x1c8] sm:$0xff]  ;;  %v3011_v0 = vld [vmem:[#allocation7 + $0x1d0] sm:$0xff] }
 0xbc5   :  { %v2616_v17 = vmax.f32 %v2608_v63, 0.0  ;;  %v7095_v30 = vpop.f32.mrb[52].mxu1  ;;  %7123 = vmatpush3.msk.msra.mxu0 %vm151_vm0, %v2765_v60  ;;  %v7855_v60 = vpack.c.bf16 %v3007_v16, %v3006_v11  ;;  %v7863_v36 = vpack.c.bf16 %v3011_v0, %v3010_v26  ;;  %v3012_v63 = vld [vmem:[#allocation7 + $0x1d8] sm:$0xff]  ;;  %v2914_v0 = vld [vmem:[#allocation6 + $0x4e0] sm:$0xff]  ;;  %vm4062_vm0 = vcmask 1045504  }
 0xbc6   :  { %v2611_v29 = vadd.f32 %v7095_v30, %v2603_v50  ;;  %v2594_v6 = vpop.f32.mrb[53].mxu1  ;;  %vm7986_vm1 = vmpackc.low %vm4062_vm0, %vm8696_vm9 }
 0xbc7   :  { %v2610_v55 = vadd.f32 %v2603_v50, %v2594_v6  ;;  %7112 = vmatprep.mubr.msk.f32.mxu0 %vm1759_vm12, %v2616_v17  ;;  %7856 = vmatprep.subr.bf16.mxu1 %v7855_v60  ;;  %v3013_v17 = vld [vmem:[#allocation7 + $0x1e0] sm:$0xff] }
 0xbc8   :  { %7113 = vmatmul.mubr.msk.f32.gmra.mrb[40].mxu0 %vm1759_vm12, %v2617_v27  ;;  %v2619_v24 = vmax.f32 %v2611_v29, 0.0  ;;  %7858 = vmatpush3.bf16.msra.mxu1 %v7855_v60  ;;  %v7867_v30 = vpack.c.bf16 %v3013_v17, %v3012_v63  ;;  %v3014_v27 = vld [vmem:[#allocation7 + $0x1e8] sm:$0xff]  ;;  %v3015_v29 = vld [vmem:[#allocation7 + $0x1f0] sm:$0xff] }
 0xbc9   :  { %v2618_v21 = vmax.f32 %v2610_v55, 0.0  ;;  %7860 = vmatprep.subr.bf16.mxu1 %v7859_v46  ;;  %v7871_v6 = vpack.c.bf16 %v3015_v29, %v3014_v27  ;;  %v2766_v55 = vld [vmem:[#allocation6 + $0x4f2] ss:$0 sm:$0xff] }
 0xbca   :  { %v2913_v17 = vld [vmem:[#allocation6 + $0x4d0] sm:$0xff] }
 0xbcb   :  { %7115 = vmatprep.mubr.msk.f32.mxu0 %vm1759_vm12, %v2618_v21 }
 0xbcc   :  { %7116 = vmatmul.mubr.msk.f32.gmra.mrb[42].mxu0 %vm1759_vm12, %v2619_v24  ;;  %7862 = vmatpush3.bf16.msra.mxu1 %v7859_v46 }
 0xbcd   :  { %7864 = vmatprep.subr.bf16.mxu1 %v7863_v36 }
 0xbd0   :  { %7866 = vmatpush3.bf16.msra.mxu1 %v7863_v36 }
 0xbd1   :  { %7868 = vmatprep.subr.bf16.mxu1 %v7867_v30 }
 0xbd4   :  { %7870 = vmatpush3.bf16.msra.mxu1 %v7867_v30 }
 0xbd5   :  { %7872 = vmatprep.subr.bf16.mxu1 %v7871_v6 }
 0xbd8   :  { %7874 = vmatpush3.bf16.msra.mxu1 %v7871_v6 }
 0xc93   :  { %v7108_v8 = vpop.f32.mrb[36].mxu0 }
 0xc94   :  { %v2722_v57 = vadd.f32 %v7108_v8, %v2625_v48  ;;  %v2716_v54 = vpop.f32.mrb[37].mxu0  ;;  %v2908_v8 = vld [vmem:[#allocation6 + $0x480] sm:$0xff] }
 0xc95   :  { %v2717_v52 = vadd.f32 %v2716_v54, %v2625_v48 }
 0xc96   :  { %v2756_v47 = vmax.f32 %v2722_v57, 0.0 }
 0xc97   :  { %v2755_v28 = vmax.f32 %v2717_v52, 0.0  ;;  %v7111_v45 = vpop.f32.mrb[38].mxu0  ;;  %v2907_v52 = vld [vmem:[#allocation6 + $0x470] sm:$0xff] }
 0xc98   :  { %v2732_v22 = vadd.f32 %v7111_v45, %v2625_v48  ;;  %v2726_v34 = vpop.f32.mrb[39].mxu0 }
 0xc99   :  { %v2727_v49 = vadd.f32 %v2726_v34, %v2625_v48  ;;  %7124 = vmatprep.mubr.msk.f32.mxu0 %vm1364_vm7, %v2755_v28 }
 0xc9a   :  { %7125 = vmatmul.mubr.msk.f32.vlgmr.msra.gmra.mrb[44].mxu0 %vm1364_vm7, %v2756_v47  ;;  %v2758_v35 = vmax.f32 %v2732_v22, 0.0 }
 0xc9b   :  { %v2757_v43 = vmax.f32 %v2727_v49, 0.0  ;;  %v7114_v39 = vpop.f32.mrb[40].mxu0 }
 0xc9c   :  { %v2742_v13 = vadd.f32 %v7114_v39, %v2625_v48  ;;  %v2736_v5 = vpop.f32.mrb[41].mxu0 }
 0xc9d   :  { %v2737_v37 = vadd.f32 %v2736_v5, %v2625_v48  ;;  %7127 = vmatprep.mubr.msk.f32.mxu0 %vm1364_vm7, %v2757_v43  ;;  %v2910_v43 = vld [vmem:[#allocation6 + $0x4a0] sm:$0xff] }
 0xc9e   :  { %7128 = vmatmul.mubr.msk.f32.gmra.mrb[46].mxu0 %vm1364_vm7, %v2758_v35  ;;  %v2760_v23 = vmax.f32 %v2742_v13, 0.0  ;;  %v2909_v13 = vld [vmem:[#allocation6 + $0x490] sm:$0xff] }
 0xc9f   :  { %v2759_v53 = vmax.f32 %v2737_v37, 0.0  ;;  %v7117_v50 = vpop.f32.mrb[42].mxu0 }
 0xca0   :  { %v2752_v18 = vadd.f32 %v7117_v50, %v2625_v48  ;;  %v2746_v7 = vpop.f32.mrb[43].mxu0 }
 0xca1   :  { %v2747_v32 = vadd.f32 %v2746_v7, %v2625_v48  ;;  %7130 = vmatprep.mubr.msk.f32.mxu0 %vm1364_vm7, %v2759_v53 }
 0xca2   :  { %7131 = vmatmul.mubr.msk.f32.gmra.mrb[48].mxu0 %vm1364_vm7, %v2760_v23  ;;  %v2762_v3 = vmax.f32 %v2752_v18, 0.0 }
 0xca3   :  { %v2761_v19 = vmax.f32 %v2747_v32, 0.0  ;;  %v2912_v32 = vld [vmem:[#allocation6 + $0x4c0] sm:$0xff] }
 0xca5   :  { %7133 = vmatprep.mubr.msk.f32.mxu0 %vm1364_vm7, %v2761_v19 }
 0xca6   :  { %7134 = vmatmul.mubr.msk.f32.gmra.mrb[50].mxu0 %vm1364_vm7, %v2762_v3 }
 0xca7   :  { %7152 = vmatprep.mubr.msk.f32.mxu0 %vm884_vm6, %v2923_v56  ;;  %v2911_v56 = vld [vmem:[#allocation6 + $0x4b0] sm:$0xff] }
 0xd6d   :  { %v7126_v21 = vpop.f32.mrb[44].mxu0 }
 0xd6e   :  { %v2866_v24 = vadd.f32 %v7126_v21, %v2766_v55  ;;  %v2860_v48 = vpop.f32.mrb[45].mxu0 }
 0xd6f   :  { %v2861_v57 = vadd.f32 %v2860_v48, %v2766_v55  ;;  %v3105_v48 = vld [vmem:[#allocation7 + $0x248] sm:$0xff] }
 0xd70   :  { %v2900_v54 = vmax.f32 %v2866_v24, 0.0  ;;  %v2924_v24 = vld [vmem:[#allocation7 + $0x1a0] sm:$0xff] }
 0xd71   :  { %v2899_v28 = vmax.f32 %v2861_v57, 0.0  ;;  %v7129_v45 = vpop.f32.mrb[46].mxu0  ;;  %v3107_v57 = vld [vmem:[#allocation7 + $0x258] sm:$0xff] }
 0xd72   :  { %v2916_v47 = vmul.f32 %v2908_v8, %v2900_v54  ;;  %v2876_v22 = vadd.f32 %v7129_v45, %v2766_v55  ;;  %v2870_v34 = vpop.f32.mrb[47].mxu0  ;;  %v3106_v8 = vld [vmem:[#allocation7 + $0x250] sm:$0xff]  ;;  %v3108_v54 = vld [vmem:[#allocation7 + $0x260] sm:$0xff] }
 0xd73   :  { %v2915_v49 = vmul.f32 %v2907_v52, %v2899_v28  ;;  %v2871_v39 = vadd.f32 %v2870_v34, %v2766_v55  ;;  %v7879_v52 = vpack.c.bf16 %v3108_v54, %v3107_v57  ;;  %v3109_v28 = vld [vmem:[#allocation7 + $0x268] sm:$0xff]  ;;  %v3110_v45 = vld [vmem:[#allocation7 + $0x270] sm:$0xff]  ;;  %v3112_v34 = vld [vmem:[#allocation7 + $0x280] sm:$0xff] }
 0xd74   :  { %v2902_v35 = vmax.f32 %v2876_v22, 0.0  ;;  %v3111_v22 = vld [vmem:[#allocation7 + $0x278] sm:$0xff] }
 0xd75   :  { %v2901_v5 = vmax.f32 %v2871_v39, 0.0  ;;  %v7132_v37 = vpop.f32.mrb[48].mxu0  ;;  %v7839_v53 = vpack.c.bf16 %v2916_v47, %v2915_v49  ;;  %v7883_v47 = vpack.c.bf16 %v3110_v45, %v3109_v28  ;;  %v7887_v49 = vpack.c.bf16 %v3112_v34, %v3111_v22  ;;  %v3114_v39 = vld [vmem:[#allocation7 + $0x290] sm:$0xff]  ;;  %v3603_v28 = vld [vmem:[#allocation6 + $0x5c0] sm:$0xff] }
 0xd76   :  { %v2918_v50 = vmul.f32 %v2910_v43, %v2902_v35  ;;  %v2886_v23 = vadd.f32 %v7132_v37, %v2766_v55  ;;  %v2880_v18 = vpop.f32.mrb[49].mxu0  ;;  %v3113_v43 = vld [vmem:[#allocation7 + $0x288] sm:$0xff]  ;;  %v3604_v45 = vld [vmem:[#allocation6 + $0x5d0] sm:$0xff]  ;;  %v3591_v34 = vld [vmem:[#allocation6 + $0x500] sm:$0xff] }
 0xd77   :  { %v2917_v7 = vmul.f32 %v2909_v13, %v2901_v5  ;;  %v2881_v19 = vadd.f32 %v2880_v18, %v2766_v55  ;;  %7840 = vmatprep.subr.bf16.mxu0 %v7839_v53  ;;  %v7891_v35 = vpack.c.bf16 %v3114_v39, %v3113_v43  ;;  %v3115_v13 = vld [vmem:[#allocation7 + $0x298] sm:$0xff]  ;;  %v3116_v5 = vld [vmem:[#allocation7 + $0x2a0] sm:$0xff]  ;;  %v7939_v12 = vpack.c.bf16 %v3604_v45, %v3603_v28  ;;  %v3606_v22 = vld [vmem:[#allocation6 + $0x5f0] sm:$0xff] }
 0xd78   :  { %v2904_v3 = vmax.f32 %v2886_v23, 0.0  ;;  %7842 = vmatpush3.bf16.msra.mxu0 %v7839_v53  ;;  %v7895_v37 = vpack.c.bf16 %v3116_v5, %v3115_v13  ;;  %v3117_v53 = vld [vmem:[#allocation7 + $0x2a8] sm:$0xff]  ;;  %v3593_v43 = vld [vmem:[#allocation6 + $0x520] sm:$0xff]  ;;  %v3594_v39 = vld [vmem:[#allocation6 + $0x530] sm:$0xff] }
 0xd79   :  { %v2903_v11 = vmax.f32 %v2881_v19, 0.0  ;;  %v7135_v16 = vpop.f32.mrb[50].mxu0  ;;  %v7843_v62 = vpack.c.bf16 %v2918_v50, %v2917_v7  ;;  %v3118_v50 = vld [vmem:[#allocation7 + $0x2b0] sm:$0xff]  ;;  %v3120_v19 = vld [vmem:[#allocation7 + $0x2c0] sm:$0xff]  ;;  %v7951_v42 = vpack.c.bf16 %v3594_v39, %v3593_v43  ;;  %v10185_v28 = vld [vmem:[#allocation35_spill] sm:$0xff] }
 0xd7a   :  { %v2920_v60 = vmul.f32 %v2912_v32, %v2904_v3  ;;  %v2896_v38 = vadd.f32 %v7135_v16, %v2766_v55  ;;  %v2890_v46 = vpop.f32.mrb[51].mxu0  ;;  %v7899_v23 = vpack.c.bf16 %v3118_v50, %v3117_v53  ;;  %v3119_v32 = vld [vmem:[#allocation7 + $0x2b8] sm:$0xff]  ;;  %v3595_v5 = vld [vmem:[#allocation6 + $0x540] sm:$0xff]  ;;  %v3598_v50 = vld [vmem:[#allocation6 + $0x570] sm:$0xff] }
 0xd7b   :  { %v2919_v26 = vmul.f32 %v2911_v56, %v2903_v11  ;;  %v2891_v36 = vadd.f32 %v2890_v46, %v2766_v55  ;;  %7844 = vmatprep.subr.bf16.mxu0 %v7843_v62  ;;  %v7875_v55 = vpack.c.bf16 %v3106_v8, %v3105_v48  ;;  %v7903_v3 = vpack.c.bf16 %v3120_v19, %v3119_v32  ;;  %v3599_v56 = vld [vmem:[#allocation6 + $0x580] sm:$0xff]  ;;  %v3600_v11 = vld [vmem:[#allocation6 + $0x590] sm:$0xff]  ;;  %v8530_v8 = vpop.eup %8529  ;;  %v10174_v19 = vld [vmem:[#allocation27_spill] sm:$0xff] }
 0xd7c   :  { %v2906_v63 = vmax.f32 %v2896_v38, 0.0  ;;  %7846 = vmatpush3.bf16.msra.mxu0 %v7843_v62  ;;  %v7931_v16 = vpack.c.bf16 %v3600_v11, %v3599_v56  ;;  %v3203_v62 = vld [vmem:[#allocation7 + $0x2c8] sm:$0xff]  ;;  %v3205_v38 = vld [vmem:[#allocation7 + $0x2d8] sm:$0xff]  ;;  %v3602_v48 = vld [vmem:[#allocation6 + $0x5b0] sm:$0xff]  ;;  %v8532_v58 = vpop.eup %8531  ;;  %v7955_v14 = vpack.c.bf16 %v3596_v10, %v3595_v5 }
 0xd7d   :  { %v2905_v30 = vmax.f32 %v2891_v36, 0.0  ;;  %v7847_v27 = vpack.c.bf16 %v2920_v60, %v2919_v26  ;;  %v3204_v60 = vld [vmem:[#allocation7 + $0x2d0] sm:$0xff]  ;;  %v3206_v26 = vld [vmem:[#allocation7 + $0x2e0] sm:$0xff]  ;;  %v3207_v36 = vld [vmem:[#allocation7 + $0x2e8] sm:$0xff]  ;;  %v3578_v61 = vmul.f32 %v8532_v58, %v9522_v4 }
 0xd7e   :  { %v2922_v29 = vmul.f32 %v2914_v0, %v2906_v63  ;;  %v7907_v46 = vpack.c.bf16 %v3204_v60, %v3203_v62  ;;  %v7911_v0 = vpack.c.bf16 %v3206_v26, %v3205_v38  ;;  %v3208_v63 = vld [vmem:[#allocation7 + $0x2f0] sm:$0xff]  ;;  %v10175_v56 = vld [vmem:[#allocation39_spill] sm:$0xff]  ;;  %v10176_v11 = vld [vmem:[#allocation40_spill] sm:$0xff] }
 0xd7f   :  { %v2921_v6 = vmul.f32 %v2913_v17, %v2905_v30  ;;  %7848 = vmatprep.subr.bf16.mxu0 %v7847_v27  ;;  %v7915_v17 = vpack.c.bf16 %v3208_v63, %v3207_v36  ;;  %v6149_v30 = vld [vmem:[#allocation7 + $0x328] ss:$0 sm:$0xff]  ;;  %v10180_v36 = vld [vmem:[#allocation30_spill] sm:$0xff]  ;;  %v6152_v43 = vld [vmem:[#allocation7 + $0x329] ss:$0 sm:$0xff] }
 0xd80   :  { %7850 = vmatpush3.bf16.msra.mxu0 %v7847_v27  ;;  %7908 = vmatprep.subr.bf16.mxu1 %v7907_v46  ;;  %v10178_v38 = vld [vmem:[#allocation29_spill] sm:$0xff] }
 0xd81   :  { %v7851_v21 = vpack.c.bf16 %v2922_v29, %v2921_v6 }
 0xd83   :  { %7852 = vmatprep.subr.bf16.mxu0 %v7851_v21 }
 0xd84   :  { %7854 = vmatpush3.bf16.msra.mxu0 %v7851_v21 }
 0xd85   :  { %7876 = vmatprep.subr.bf16.mxu0 %v7875_v55 }
 0xd87   :  { %7153 = vmatmul.mubr.msk.f32.vlgmr.msra.gmra.mrb[52].mxu0 %vm884_vm6, %v2924_v24  ;;  %v3601_v24 = vld [vmem:[#allocation6 + $0x5a0] sm:$0xff] }
 0xd88   :  { %7878 = vmatpush3.bf16.msra.mxu0 %v7875_v55  ;;  %v7935_v54 = vpack.c.bf16 %v3602_v48, %v3601_v24  ;;  %v10183_v48 = vld [vmem:[#allocation33_spill] sm:$0xff] }
 0xd89   :  { %7880 = vmatprep.subr.bf16.mxu0 %v7879_v52 }
 0xd8c   :  { %7882 = vmatpush3.bf16.msra.mxu0 %v7879_v52  ;;  %v3576_v52 = vmul.f32 %v8530_v8, %v9516_v31 }
 0xd8d   :  { %7884 = vmatprep.subr.bf16.mxu0 %v7883_v47 }
 0xd90   :  { %7886 = vmatpush3.bf16.msra.mxu0 %v7883_v47  ;;  %v3605_v47 = vld [vmem:[#allocation6 + $0x5e0] sm:$0xff] }
 0xd91   :  { %7888 = vmatprep.subr.bf16.mxu0 %v7887_v49  ;;  %v7943_v31 = vpack.c.bf16 %v3606_v22, %v3605_v47  ;;  %v3209_v22 = vld [vmem:[#allocation7 + $0x2f8] sm:$0xff] }
 0xd94   :  { %7890 = vmatpush3.bf16.msra.mxu0 %v7887_v49  ;;  %v3592_v49 = vld [vmem:[#allocation6 + $0x510] sm:$0xff] }
 0xd95   :  { %7892 = vmatprep.subr.bf16.mxu0 %v7891_v35  ;;  %v7947_v44 = vpack.c.bf16 %v3592_v49, %v3591_v34  ;;  %v3299_v49 = vld [vmem:[#allocation7 + $0x308] sm:$0xff] }
 0xd98   :  { %7894 = vmatpush3.bf16.msra.mxu0 %v7891_v35  ;;  %v8534_v35 = vpop.eup %8533 }
 0xd99   :  { %7896 = vmatprep.subr.bf16.mxu0 %v7895_v37  ;;  %v8536_v13 = vpop.eup %8535  ;;  %v3580_v51 = vmul.f32 %v8534_v35, %v9524_v15  ;;  %v3597_v15 = vld [vmem:[#allocation6 + $0x560] sm:$0xff] }
 0xd9a   :  { %v3582_v4 = vmul.f32 %v8536_v13, %v9534_v41  ;;  %v7959_v41 = vpack.c.bf16 %v3598_v50, %v3597_v15  ;;  %v3301_v50 = vld [vmem:[#allocation7 + $0x318] sm:$0xff] }
 0xd9c   :  { %7898 = vmatpush3.bf16.msra.mxu0 %v7895_v37  ;;  %v8538_v37 = vpop.eup %8537 }
 0xd9d   :  { %7900 = vmatprep.subr.bf16.mxu0 %v7899_v23  ;;  %v8540_v1 = vpop.eup %8539  ;;  %v3584_v53 = vmul.f32 %v8538_v37, %v9536_v40 }
 0xda0   :  { %7902 = vmatpush3.bf16.msra.mxu0 %v7899_v23  ;;  %v8542_v23 = vpop.eup %8541 }
 0xda1   :  { %7904 = vmatprep.subr.bf16.mxu0 %v7903_v3  ;;  %v8544_v32 = vpop.eup %8543 }
 0xda2   :  { %v8546_v40 = vpop.eup %8545 }
 0xda3   :  { %v8548_v60 = vpop.eup %8547 }
 0xda4   :  { %7906 = vmatpush3.bf16.msra.mxu0 %v7903_v3  ;;  %v3588_v3 = vmul.f32 %v8542_v23, %v10174_v19  ;;  %v8550_v26 = vpop.eup %8549  ;;  %v3482_v63 = vmul.f32 %v8548_v60, %v10180_v36  ;;  %v3302_v23 = vld [vmem:[#allocation7 + $0x320] sm:$0xff]  ;;  %v3887_v36 = vld [vmem:[#allocation6 + $0x650] sm:$0xff] }
 0xda5   :  { %7932 = vmatprep.subr.bf16.mxu0 %v7931_v16 }
 0xe5a   :  { %v7154_v18 = vpop.f32.mrb[52].mxu0 }
 0xe5b   :  { %v2997_v7 = vpop.f32.mrb[53].mxu0 }
 0xe5c   :  { %7175 = vmatprep.mubr.msk.f32.mxu1 %vm3021_vm13, %v2997_v7  ;;  %v3586_v7 = vmul.f32 %v8540_v1, %v10173_v59  ;;  %v3883_v59 = vld [vmem:[#allocation6 + $0x610] sm:$0xff] }
 0xe5d   :  { %7176 = vmatmul.mubr.msk.f32.vlgmr.msra.gmra.mrb[54].mxu1 %vm3021_vm13, %v7154_v18  ;;  %v10171_v18 = vld [vmem:[#allocation37_spill] sm:$0xff] }
 0xe5e   :  { %7910 = vmatpush3.bf16.msra.mxu1 %v7907_v46  ;;  %8551 = vrcp.f32 %v10171_v18  ;;  %v3480_v46 = vmul.f32 %v8546_v40, %v10178_v38  ;;  %v7927_v18 = vpack.c.bf16 %v3302_v23, %v3301_v50 }
 0xe5f   :  { %7912 = vmatprep.subr.bf16.mxu1 %v7911_v0  ;;  %8553 = vrcp.f32 %v10172_v33  ;;  %v3882_v33 = vld [vmem:[#allocation6 + $0x600] sm:$0xff] }
 0xe60   :  { %8555 = vrcp.f32 %v10175_v56 }
 0xe61   :  { %8557 = vrcp.f32 %v10176_v11 }
 0xe62   :  { %7914 = vmatpush3.bf16.msra.mxu1 %v7911_v0  ;;  %v10179_v0 = vld [vmem:[#allocation41_spill] sm:$0xff] }
 0xe63   :  { %7916 = vmatprep.subr.bf16.mxu1 %v7915_v17  ;;  %8559 = vrcp.f32 %v10179_v0  ;;  %v3886_v0 = vld [vmem:[#allocation6 + $0x640] sm:$0xff] }
 0xe66   :  { %7918 = vmatpush3.bf16.msra.mxu1 %v7915_v17 }
 0xe68   :  { %v8552_v17 = vpop.eup %8551 }
 0xf30   :  { %v7177_v27 = vpop.f32.mrb[54].mxu1 }
 0xf31   :  { %v3100_v29 = vadd.f32 %v7177_v27, %v6149_v30  ;;  %v3094_v6 = vpop.f32.mrb[55].mxu1 }
 0xf32   :  { %v3095_v21 = vadd.f32 %v6149_v30, %v3094_v6  ;;  %v10181_v30 = vld [vmem:[#allocation31_spill] sm:$0xff]  ;;  %v10182_v6 = vld [vmem:[#allocation32_spill] sm:$0xff] }
 0xf33   :  { %v3104_v55 = vmax.f32 %v3100_v29, 0.0  ;;  %v3484_v27 = vmul.f32 %v8550_v26, %v10181_v30  ;;  %v8554_v29 = vpop.eup %8553  ;;  %v3889_v30 = vld [vmem:[#allocation6 + $0x670] sm:$0xf] }
 0xf34   :  { %v3103_v57 = vmax.f32 %v3095_v21, 0.0  ;;  %v3486_v21 = vmul.f32 %v8552_v17, %v10182_v6  ;;  %v8556_v24 = vpop.eup %8555  ;;  %v3488_v8 = vmul.f32 %v8554_v29, %v10183_v48  ;;  %v3888_v17 = vld [vmem:[#allocation6 + $0x660] sm:$0xff] }
 0xf36   :  { %7210 = vmatprep.mubr.f32.mxu0 %v3103_v57  ;;  %v8558_v57 = vpop.eup %8557 }
 0xf37   :  { %7211 = vmatmul.mubr.f32.vlgmr.msra.gmra.mrb[54].mxu0 %v3104_v55  ;;  %v10184_v55 = vld [vmem:[#allocation34_spill] sm:$0xff]  ;;  %v3492_v45 = vmul.f32 %v8558_v57, %v10185_v28 }
 0xf38   :  { %7934 = vmatpush3.bf16.msra.mxu0 %v7931_v16  ;;  %7259 = vmatprep.mubr.msk.f32.mxu0 %vm884_vm6, %v3576_v52  ;;  %v10177_v16 = vld [vmem:[#allocation28_spill] sm:$0xff]  ;;  %v8560_v52 = vpop.eup %8559 }
 0xf39   :  { %7936 = vmatprep.subr.bf16.mxu0 %v7935_v54  ;;  %v3590_v62 = vmul.f32 %v8544_v32, %v10177_v16  ;;  %v3865_v32 = vld [vmem:[#allocation6 + $0x770] ss:$0 sm:$0xff]  ;;  %v3884_v16 = vld [vmem:[#allocation6 + $0x620] sm:$0xff] }
 0xf3c   :  { %7938 = vmatpush3.bf16.msra.mxu0 %v7935_v54  ;;  %v3490_v54 = vmul.f32 %v8556_v24, %v10184_v55 }
 0xf3d   :  { %7940 = vmatprep.subr.bf16.mxu0 %v7939_v12 }
 0xf40   :  { %7942 = vmatpush3.bf16.msra.mxu0 %v7939_v12  ;;  %v10186_v12 = vld [vmem:[#allocation36_spill] sm:$0xff] }
 0xf41   :  { %7944 = vmatprep.subr.bf16.mxu0 %v7943_v31  ;;  %v3494_v47 = vmul.f32 %v8560_v52, %v10186_v12 }
 0xf44   :  { %7946 = vmatpush3.bf16.msra.mxu0 %v7943_v31  ;;  %v3210_v31 = vld [vmem:[#allocation7 + $0x300] sm:$0xff] }
 0xf45   :  { %7948 = vmatprep.subr.bf16.mxu0 %v7947_v44  ;;  %v7919_v34 = vpack.c.bf16 %v3210_v31, %v3209_v22  ;;  %v4032_v22 = vld [vmem:[#allocation6 + $0x6a0] sm:$0xff]  ;;  %v4033_v31 = vld [vmem:[#allocation6 + $0x6b0] sm:$0xff] }
 0xf47   :  { %7260 = vmatmul.mubr.msk.f32.vlgmr.msra.gmra.mrb[56].mxu0 %vm884_vm6, %v3578_v61  ;;  %7920 = vmatprep.subr.bf16.mxu1 %v7919_v34 }
 0xf48   :  { %7262 = vmatprep.mubr.msk.f32.mxu0 %vm884_vm6, %v3580_v51  ;;  %7950 = vmatpush3.bf16.msra.mxu0 %v7947_v44  ;;  %v3300_v44 = vld [vmem:[#allocation7 + $0x310] sm:$0xff] }
 0xf49   :  { %7952 = vmatprep.subr.bf16.mxu0 %v7951_v42  ;;  %7922 = vmatpush3.bf16.msra.mxu1 %v7919_v34  ;;  %v7923_v58 = vpack.c.bf16 %v3300_v44, %v3299_v49  ;;  %v4034_v34 = vld [vmem:[#allocation6 + $0x6c0] sm:$0xff]  ;;  %v7981_v49 = vpack.c.bf16 %v4033_v31, %v4032_v22  ;;  %v4035_v44 = vld [vmem:[#allocation6 + $0x6d0] sm:$0x3f] }
 0xf4b   :  { %7263 = vmatmul.mubr.msk.f32.gmra.mrb[58].mxu0 %vm884_vm6, %v3582_v4  ;;  %7924 = vmatprep.subr.bf16.mxu1 %v7923_v58 }
 0xf4c   :  { %7265 = vmatprep.mubr.msk.f32.mxu0 %vm884_vm6, %v3584_v53  ;;  %7954 = vmatpush3.bf16.msra.mxu0 %v7951_v42 }
 0xf4d   :  { %7956 = vmatprep.subr.bf16.mxu0 %v7955_v14 }
 0xf4f   :  { %7266 = vmatmul.mubr.msk.f32.gmra.mrb[60].mxu0 %vm884_vm6, %v3586_v7  ;;  %v7963_v7 = vpack.c.bf16 %v3883_v59, %v3882_v33 }
 0xf50   :  { %7268 = vmatprep.mubr.msk.f32.mxu0 %vm884_vm6, %v3588_v3  ;;  %7958 = vmatpush3.bf16.msra.mxu0 %v7955_v14 }
 0xf51   :  { %7960 = vmatprep.subr.bf16.mxu0 %v7959_v41 }
 0xf53   :  { %7269 = vmatmul.mubr.msk.f32.gmra.mrb[62].mxu0 %vm884_vm6, %v3590_v62  ;;  %v3885_v62 = vld [vmem:[#allocation6 + $0x630] sm:$0xff] }
 0xf54   :  { %7962 = vmatpush3.bf16.msra.mxu0 %v7959_v41  ;;  %7287 = vmatprep.mubr.msk.f32.mxu0 %vm884_vm6, %v3480_v46  ;;  %v6153_v41 = vld [vmem:[#allocation7 + $0x32a] ss:$0 sm:$0xff]  ;;  %v7967_v46 = vpack.c.bf16 %v3885_v62, %v3884_v16 }
 0xf57   :  { %7288 = vmatmul.mubr.msk.f32.vlgmr.msra.gmra.mrb[56].mxu0 %vm884_vm6, %v3482_v63  ;;  %v7971_v63 = vpack.c.bf16 %v3887_v36, %v3886_v0  ;;  %v4281_v36 = vld [vmem:[#allocation7 + $0x358] sm:$0xff] }
 0xf58   :  { %7290 = vmatprep.mubr.msk.f32.mxu0 %vm884_vm6, %v3484_v27  ;;  %v7975_v27 = vpack.c.bf16 %v3889_v30, %v3888_v17  ;;  %v4282_v17 = vld [vmem:[#allocation7 + $0x360] sm:$0xff]  ;;  %v4283_v30 = vld [vmem:[#allocation7 + $0x368] sm:$0xff] }
 0xf5b   :  { %7291 = vmatmul.mubr.msk.f32.gmra.mrb[58].mxu0 %vm884_vm6, %v3486_v21 }
 0xf5c   :  { %7293 = vmatprep.mubr.msk.f32.mxu0 %vm884_vm6, %v3488_v8 }
 0xf5f   :  { %7294 = vmatmul.mubr.msk.f32.gmra.mrb[60].mxu0 %vm884_vm6, %v3490_v54 }
 0xf60   :  { %7296 = vmatprep.mubr.msk.f32.mxu0 %vm884_vm6, %v3492_v45 }
 0xf63   :  { %7297 = vmatmul.mubr.msk.f32.gmra.mrb[62].mxu0 %vm884_vm6, %v3494_v47 }
0x100a   :  { %v7212_v39 = vpop.f32.mrb[54].mxu0 }
0x100b   :  { %v3198_v35 = vadd.f32 %v7212_v39, %v6152_v43  ;;  %v3192_v61 = vpop.f32.mrb[55].mxu0 }
0x100c   :  { %v3193_v42 = vadd.f32 %v6152_v43, %v3192_v61  ;;  %v6156_v43 = vld [vmem:[#allocation7 + $0x32b] ss:$0 sm:$0xff] }
0x100d   :  { %v3202_v51 = vmax.f32 %v3198_v35, 0.0 }
0x100e   :  { %v3201_v13 = vmax.f32 %v3193_v42, 0.0 }
0x1010   :  { %7229 = vmatprep.mubr.msk.f32.mxu1 %vm884_vm6, %v3201_v13  ;;  %v3890_v13 = vld [vmem:[#allocation6 + $0x771] ss:$0 sm:$0xff] }
0x1011   :  { %7230 = vmatmul.mubr.msk.f32.vlgmr.msra.gmra.mrb[56].mxu1 %vm884_vm6, %v3202_v51 }
0x1012   :  { %7926 = vmatpush3.bf16.msra.mxu1 %v7923_v58  ;;  %v7985_v58 = vpack.c.bf16 %v4035_v44, %v4034_v34  ;;  %v4180_v34 = vld [vmem:[#allocation6 + $0x700] sm:$0xff] }
0x1013   :  { %7928 = vmatprep.subr.bf16.mxu1 %v7927_v18 }
0x1016   :  { %7930 = vmatpush3.bf16.msra.mxu1 %v7927_v18 }
0x1017   :  { %7964 = vmatprep.subr.bf16.mxu1 %v7963_v7 }
0x102a   :  { %v7289_v5 = vpop.f32.mrb[56].mxu0 }
0x102b   :  { %v3826_v10 = vpop.f32.mrb[57].mxu0  ;;  %v3867_v29 = vadd.f32 %v7289_v5, %v3865_v32 }
0x102c   :  { %v3866_v56 = vadd.f32 %v3865_v32, %v3826_v10 }
0x102d   :  { %v3875_v21 = vmax.f32 %v3867_v29, 0.0  ;;  %v4284_v29 = vld [vmem:[#allocation7 + $0x370] sm:$0xff] }
0x102e   :  { %v7292_v37 = vpop.f32.mrb[58].mxu0  ;;  %v3874_v26 = vmax.f32 %v3866_v56, 0.0 }
0x102f   :  { %v3836_v4 = vpop.f32.mrb[59].mxu0  ;;  %v3869_v24 = vadd.f32 %v7292_v37, %v3865_v32 }
0x1030   :  { %v3868_v6 = vadd.f32 %v3865_v32, %v3836_v4 }
0x1031   :  { %v3877_v57 = vmax.f32 %v3869_v24, 0.0  ;;  %v4286_v24 = vld [vmem:[#allocation7 + $0x380] sm:$0xff] }
0x1032   :  { %v7295_v14 = vpop.f32.mrb[60].mxu0  ;;  %v3876_v48 = vmax.f32 %v3868_v6, 0.0  ;;  %v4285_v6 = vld [vmem:[#allocation7 + $0x378] sm:$0xff] }
0x1033   :  { %v3846_v1 = vpop.f32.mrb[61].mxu0  ;;  %v3871_v55 = vadd.f32 %v7295_v14, %v3865_v32 }
0x1034   :  { %v3870_v8 = vadd.f32 %v3865_v32, %v3846_v1 }
0x1035   :  { %v3879_v28 = vmax.f32 %v3871_v55, 0.0  ;;  %v4289_v55 = vld [vmem:[#allocation7 + $0x398] sm:$0xff] }
0x1036   :  { %v7298_v53 = vpop.f32.mrb[62].mxu0  ;;  %v3878_v54 = vmax.f32 %v3870_v8, 0.0 }
0x1037   :  { %v3856_v15 = vpop.f32.mrb[63].mxu0  ;;  %v3873_v45 = vadd.f32 %v7298_v53, %v3865_v32 }
0x1038   :  { %v3872_v52 = vadd.f32 %v3865_v32, %v3856_v15 }
0x1039   :  { %v3881_v47 = vmax.f32 %v3873_v45, 0.0 }
0x103a   :  { %v3880_v12 = vmax.f32 %v3872_v52, 0.0  ;;  %v4290_v52 = vld [vmem:[#allocation7 + $0x3a0] sm:$0xff] }
0x10e4   :  { %v7231_v19 = vpop.f32.mrb[56].mxu1 }
0x10e5   :  { %v3294_v3 = vadd.f32 %v7231_v19, %v6153_v41  ;;  %v3288_v40 = vpop.f32.mrb[57].mxu1 }
0x10e6   :  { %v3289_v11 = vadd.f32 %v6153_v41, %v3288_v40 }
0x10e7   :  { %v3298_v38 = vmax.f32 %v3294_v3, 0.0 }
0x10e8   :  { %v3297_v60 = vmax.f32 %v3289_v11, 0.0 }
0x10ea   :  { %7240 = vmatprep.mubr.msk.f32.mxu1 %vm352_vm4, %v3297_v60  ;;  %v4195_v60 = vld [vmem:[#allocation7 + $0x330] sm:$0xff] }
0x10eb   :  { %7241 = vmatmul.mubr.msk.f32.vlgmr.msra.gmra.mrb[58].mxu1 %vm352_vm4, %v3298_v38  ;;  %7363 = vmatprep.mubr.msk.f32.mxu0 %vm884_vm6, %v4195_v60  ;;  %v4278_v38 = vld [vmem:[#allocation7 + $0x340] sm:$0xff] }
0x10ec   :  { %7966 = vmatpush3.bf16.msra.mxu1 %v7963_v7  ;;  %7315 = vmatprep.mubr.msk.f32.mxu1 %vm3891_vm14, %v3874_v26  ;;  %v4280_v26 = vld [vmem:[#allocation7 + $0x350] sm:$0xff] }
0x10ed   :  { %7968 = vmatprep.subr.bf16.mxu1 %v7967_v46 }
0x10f0   :  { %7970 = vmatpush3.bf16.msra.mxu1 %v7967_v46  ;;  %v4279_v46 = vld [vmem:[#allocation7 + $0x348] sm:$0xff] }
0x10f1   :  { %7972 = vmatprep.subr.bf16.mxu1 %v7971_v63  ;;  %v8007_v0 = vpack.c.bf16 %v4279_v46, %v4278_v38  ;;  %v4185_v38 = vld [vmem:[#allocation6 + $0x750] sm:$0xff] }
0x10f4   :  { %7974 = vmatpush3.bf16.msra.mxu1 %v7971_v63  ;;  %v8011_v63 = vpack.c.bf16 %v4281_v36, %v4280_v26 }
0x10f5   :  { %7977 = vmatprep.subr.msk.bf16.mxu1 %vm7976_vm15, %v7975_v27 }
0x10f8   :  { %7980 = vmatpush3.bf16.msk.msra.mxu1 %vm7976_vm15, %v7975_v27  ;;  %v8015_v27 = vpack.c.bf16 %v4283_v30, %v4282_v17  ;;  %v4196_v17 = vld [vmem:[#allocation7 + $0x338] sm:$0xff]  ;;  %v4292_v30 = vld [vmem:[#allocation7 + $0x3b0] sm:$0xff] }
0x10f9   :  { %7982 = vmatprep.subr.bf16.mxu1 %v7981_v49 }
0x10fb   :  { %7316 = vmatmul.mubr.msk.f32.vlgmr.msra.gmra.mrb[60].mxu1 %vm3891_vm14, %v3875_v21  ;;  %v8019_v21 = vpack.c.bf16 %v4285_v6, %v4284_v29  ;;  %v4383_v29 = vld [vmem:[#allocation7 + $0x3e8] sm:$0xff]  ;;  %v4384_v6 = vld [vmem:[#allocation7 + $0x3f0] sm:$0xff] }
0x10fc   :  { %7318 = vmatprep.mubr.msk.f32.mxu1 %vm3891_vm14, %v3876_v48  ;;  %7984 = vmatpush3.bf16.msra.mxu1 %v7981_v49  ;;  %v4287_v48 = vld [vmem:[#allocation7 + $0x388] sm:$0xff] }
0x10fd   :  { %7987 = vmatprep.subr.msk.bf16.mxu1 %vm7986_vm1, %v7985_v58  ;;  %v8023_v8 = vpack.c.bf16 %v4287_v48, %v4286_v24  ;;  %v4385_v24 = vld [vmem:[#allocation7 + $0x3f8] sm:$0xff] }
0x10fe   :  { %v8039_v48 = vpack.c.bf16 %v4385_v24, %v4384_v6  ;;  %v4883_v6 = vld [vmem:[#allocation6 + $0x870] sm:$0xff] }
0x10ff   :  { %7319 = vmatmul.mubr.msk.f32.gmra.mrb[62].mxu1 %vm3891_vm14, %v3877_v57  ;;  %v4288_v57 = vld [vmem:[#allocation7 + $0x390] sm:$0xff] }
0x1100   :  { %7321 = vmatprep.mubr.msk.f32.mxu1 %vm3891_vm14, %v3878_v54  ;;  %7990 = vmatpush3.bf16.msk.msra.mxu1 %vm7986_vm1, %v7985_v58  ;;  %v8027_v54 = vpack.c.bf16 %v4289_v55, %v4288_v57  ;;  %v4179_v58 = vld [vmem:[#allocation6 + $0x6f0] sm:$0xff]  ;;  %v4387_v57 = vld [vmem:[#allocation7 + $0x408] sm:$0xff] }
0x1101   :  { %8008 = vmatprep.subr.bf16.mxu1 %v8007_v0 }
0x1103   :  { %7322 = vmatmul.mubr.msk.f32.gmra.mrb[64].mxu1 %vm3891_vm14, %v3879_v28  ;;  %v4291_v28 = vld [vmem:[#allocation7 + $0x3a8] sm:$0xff] }
0x1104   :  { %7324 = vmatprep.mubr.msk.f32.mxu1 %vm3891_vm14, %v3880_v12  ;;  %v8031_v45 = vpack.c.bf16 %v4291_v28, %v4290_v52  ;;  %v4036_v12 = vld [vmem:[#allocation6 + $0x772] ss:$0 sm:$0xff]  ;;  %v4389_v52 = vld [vmem:[#allocation7 + $0x418] sm:$0xff] }
0x1107   :  { %7325 = vmatmul.mubr.msk.f32.gmra.mrb[66].mxu1 %vm3891_vm14, %v3881_v47 }
0x11be   :  { %v7242_v39 = vpop.f32.mrb[58].mxu1 }
0x11bf   :  { %v3386_v35 = vadd.f32 %v7242_v39, %v6156_v43  ;;  %v3380_v61 = vpop.f32.mrb[59].mxu1 }
0x11c0   :  { %v3381_v42 = vadd.f32 %v6156_v43, %v3380_v61 }
0x11c1   :  { %3390 = vst [vmem:[%s10078_s5 + $0x18] sm:$0xff] %v3386_v35 }
0x11c2   :  { %3389 = vst [vmem:[%s10078_s5 + $0x10] sm:$0xff] %v3381_v42 }
0x11ce   :  { %v7317_v51 = vpop.f32.mrb[60].mxu1 }
0x11cf   :  { %v3991_v5 = vadd.f32 %v7317_v51, %v3890_v13  ;;  %v3985_v10 = vpop.f32.mrb[61].mxu1  ;;  %v4182_v51 = vld [vmem:[#allocation6 + $0x720] sm:$0xff] }
0x11d0   :  { %v3986_v37 = vadd.f32 %v3985_v10, %v3890_v13 }
0x11d1   :  { %v4025_v1 = vmax.f32 %v3991_v5, 0.0 }
0x11d2   :  { %v4024_v4 = vmax.f32 %v3986_v37, 0.0  ;;  %v7320_v14 = vpop.f32.mrb[62].mxu1  ;;  %v4181_v37 = vld [vmem:[#allocation6 + $0x710] sm:$0xff] }
0x11d3   :  { %v4001_v53 = vadd.f32 %v7320_v14, %v3890_v13  ;;  %v3995_v15 = vpop.f32.mrb[63].mxu1 }
0x11d4   :  { %v3996_v50 = vadd.f32 %v3995_v15, %v3890_v13  ;;  %7335 = vmatprep.mubr.msk.f32.mxu1 %vm4037_vm2, %v4024_v4 }
0x11d5   :  { %7336 = vmatmul.mubr.msk.f32.vlgmr.msra.gmra.mrb[68].mxu1 %vm4037_vm2, %v4025_v1  ;;  %v4027_v33 = vmax.f32 %v4001_v53, 0.0 }
0x11d6   :  { %v4026_v23 = vmax.f32 %v3996_v50, 0.0  ;;  %v7323_v18 = vpop.f32.mrb[64].mxu1  ;;  %8010 = vmatpush3.bf16.msra.mxu1 %v8007_v0 }
0x11d7   :  { %v4011_v59 = vadd.f32 %v7323_v18, %v3890_v13  ;;  %v4005_v7 = vpop.f32.mrb[65].mxu1  ;;  %8012 = vmatprep.subr.bf16.mxu1 %v8011_v63  ;;  %v4184_v18 = vld [vmem:[#allocation6 + $0x740] sm:$0xff] }
0x11d8   :  { %v4006_v41 = vadd.f32 %v4005_v7, %v3890_v13  ;;  %7338 = vmatprep.mubr.msk.f32.mxu1 %vm4037_vm2, %v4026_v23  ;;  %v4183_v7 = vld [vmem:[#allocation6 + $0x730] sm:$0xff] }
0x11d9   :  { %7339 = vmatmul.mubr.msk.f32.gmra.mrb[70].mxu1 %vm4037_vm2, %v4027_v33  ;;  %v4029_v3 = vmax.f32 %v4011_v59, 0.0 }
0x11da   :  { %v4028_v32 = vmax.f32 %v4006_v41, 0.0  ;;  %v7326_v19 = vpop.f32.mrb[66].mxu1  ;;  %8014 = vmatpush3.bf16.msra.mxu1 %v8011_v63 }
0x11db   :  { %v4021_v40 = vadd.f32 %v7326_v19, %v3890_v13  ;;  %v4015_v56 = vpop.f32.mrb[67].mxu1  ;;  %8016 = vmatprep.subr.bf16.mxu1 %v8015_v27 }
0x11dc   :  { %v4016_v11 = vadd.f32 %v4015_v56, %v3890_v13  ;;  %7341 = vmatprep.mubr.msk.f32.mxu1 %vm4037_vm2, %v4028_v32 }
0x11dd   :  { %7342 = vmatmul.mubr.msk.f32.gmra.mrb[72].mxu1 %vm4037_vm2, %v4029_v3  ;;  %v4031_v62 = vmax.f32 %v4021_v40, 0.0 }
0x11de   :  { %v4030_v16 = vmax.f32 %v4016_v11, 0.0  ;;  %8018 = vmatpush3.bf16.msra.mxu1 %v8015_v27  ;;  %v4382_v27 = vld [vmem:[#allocation7 + $0x3e0] sm:$0xff] }
0x11df   :  { %8020 = vmatprep.subr.bf16.mxu1 %v8019_v21 }
0x11e0   :  { %7344 = vmatprep.mubr.msk.f32.mxu1 %vm4037_vm2, %v4030_v16  ;;  %v4186_v16 = vld [vmem:[#allocation6 + $0x760] sm:$0xff] }
0x11e1   :  { %7345 = vmatmul.mubr.msk.f32.gmra.mrb[74].mxu1 %vm4037_vm2, %v4031_v62 }
0x11e2   :  { %8022 = vmatpush3.bf16.msra.mxu1 %v8019_v21  ;;  %v8035_v21 = vpack.c.bf16 %v4383_v29, %v4382_v27  ;;  %v4882_v29 = vld [vmem:[#allocation6 + $0x860] sm:$0xff] }
0x11e3   :  { %8024 = vmatprep.subr.bf16.mxu1 %v8023_v8  ;;  %v8103_v24 = vpack.c.bf16 %v4883_v6, %v4882_v29  ;;  %v4486_v6 = vld [vmem:[#allocation7 + $0x490] sm:$0xff] }
0x11e6   :  { %8026 = vmatpush3.bf16.msra.mxu1 %v8023_v8  ;;  %v4386_v8 = vld [vmem:[#allocation7 + $0x400] sm:$0xff] }
0x11e7   :  { %8028 = vmatprep.subr.bf16.mxu1 %v8027_v54  ;;  %v8043_v55 = vpack.c.bf16 %v4387_v57, %v4386_v8 }
0x11ea   :  { %8030 = vmatpush3.bf16.msra.mxu1 %v8027_v54  ;;  %v4388_v54 = vld [vmem:[#allocation7 + $0x410] sm:$0xff] }
0x11eb   :  { %8032 = vmatprep.subr.bf16.mxu1 %v8031_v45  ;;  %v8047_v28 = vpack.c.bf16 %v4389_v52, %v4388_v54  ;;  %v4870_v52 = vld [vmem:[#allocation6 + $0x7a0] sm:$0xff] }
0x11ee   :  { %8034 = vmatpush3.bf16.msra.mxu1 %v8031_v45  ;;  %v4390_v45 = vld [vmem:[#allocation7 + $0x420] sm:$0xff] }
0x11ef   :  { %7394 = vmatprep.subr.mxu1 %v4292_v30 }
0x11f2   :  { %7395 = vmatpush3.msra.mxu1 %v4292_v30 }
0x12a8   :  { %v7337_v47 = vpop.f32.mrb[68].mxu1 }
0x12a9   :  { %v4138_v22 = vadd.f32 %v7337_v47, %v4036_v12  ;;  %v4132_v31 = vpop.f32.mrb[69].mxu1 }
0x12aa   :  { %v4133_v49 = vadd.f32 %v4132_v31, %v4036_v12  ;;  %v4393_v31 = vld [vmem:[#allocation7 + $0x438] sm:$0xff] }
0x12ab   :  { %v4172_v44 = vmax.f32 %v4138_v22, 0.0  ;;  %v4392_v22 = vld [vmem:[#allocation7 + $0x430] sm:$0xff] }
0x12ac   :  { %v4171_v43 = vmax.f32 %v4133_v49, 0.0  ;;  %v7340_v39 = vpop.f32.mrb[70].mxu1  ;;  %v4394_v49 = vld [vmem:[#allocation7 + $0x440] sm:$0xff] }
0x12ad   :  { %v4188_v35 = vmul.f32 %v4180_v34, %v4172_v44  ;;  %v4148_v61 = vadd.f32 %v7340_v39, %v4036_v12  ;;  %v4142_v42 = vpop.f32.mrb[71].mxu1  ;;  %v8055_v34 = vpack.c.bf16 %v4393_v31, %v4392_v22  ;;  %v4395_v44 = vld [vmem:[#allocation7 + $0x448] sm:$0xff] }
0x12ae   :  { %v4187_v13 = vmul.f32 %v4179_v58, %v4171_v43  ;;  %v4143_v5 = vadd.f32 %v4142_v42, %v4036_v12  ;;  %v8059_v58 = vpack.c.bf16 %v4395_v44, %v4394_v49  ;;  %v4872_v49 = vld [vmem:[#allocation6 + $0x7c0] sm:$0xff]  ;;  %v4873_v44 = vld [vmem:[#allocation6 + $0x7d0] sm:$0xff] }
0x12af   :  { %v4174_v10 = vmax.f32 %v4148_v61, 0.0  ;;  %v4397_v61 = vld [vmem:[#allocation7 + $0x458] sm:$0xff] }
0x12b0   :  { %v4173_v4 = vmax.f32 %v4143_v5, 0.0  ;;  %v7343_v14 = vpop.f32.mrb[72].mxu1  ;;  %v7991_v1 = vpack.c.bf16 %v4188_v35, %v4187_v13  ;;  %v4396_v35 = vld [vmem:[#allocation7 + $0x450] sm:$0xff]  ;;  %v4876_v13 = vld [vmem:[#allocation6 + $0x800] sm:$0xff] }
0x12b1   :  { %v4190_v53 = vmul.f32 %v4182_v51, %v4174_v10  ;;  %v4158_v15 = vadd.f32 %v7343_v14, %v4036_v12  ;;  %v4152_v50 = vpop.f32.mrb[73].mxu1  ;;  %v8063_v42 = vpack.c.bf16 %v4397_v61, %v4396_v35  ;;  %v4877_v51 = vld [vmem:[#allocation6 + $0x810] sm:$0xff]  ;;  %v4480_v10 = vld [vmem:[#allocation7 + $0x460] sm:$0xff] }
0x12b2   :  { %v4189_v23 = vmul.f32 %v4181_v37, %v4173_v4  ;;  %v4153_v33 = vadd.f32 %v4152_v50, %v4036_v12  ;;  %7992 = vmatprep.subr.bf16.mxu0 %v7991_v1  ;;  %v8091_v5 = vpack.c.bf16 %v4877_v51, %v4876_v13  ;;  %v4481_v37 = vld [vmem:[#allocation7 + $0x468] sm:$0xff]  ;;  %v4482_v4 = vld [vmem:[#allocation7 + $0x470] sm:$0xff]  ;;  %v4874_v13 = vld [vmem:[#allocation6 + $0x7e0] sm:$0xff] }
0x12b3   :  { %v4176_v59 = vmax.f32 %v4158_v15, 0.0  ;;  %7994 = vmatpush3.bf16.msra.mxu0 %v7991_v1  ;;  %v8067_v14 = vpack.c.bf16 %v4481_v37, %v4480_v10  ;;  %v4483_v1 = vld [vmem:[#allocation7 + $0x478] sm:$0xff]  ;;  %v4484_v15 = vld [vmem:[#allocation7 + $0x480] sm:$0xff]  ;;  %v4485_v50 = vld [vmem:[#allocation7 + $0x488] sm:$0xff] }
0x12b4   :  { %v4175_v41 = vmax.f32 %v4153_v33, 0.0  ;;  %v7346_v32 = vpop.f32.mrb[74].mxu1  ;;  %v7995_v19 = vpack.c.bf16 %v4190_v53, %v4189_v23  ;;  %v8071_v53 = vpack.c.bf16 %v4483_v1, %v4482_v4  ;;  %v8075_v23 = vpack.c.bf16 %v4485_v50, %v4484_v15  ;;  %v4833_v33 = vpop.xlane.xlu0 %4832  ;;  %v10187_v61 = vld [vmem:[#allocation42_spill] sm:$0xff]  ;;  %v10188_v10 = vld [vmem:[#allocation43_spill] sm:$0xff]  ;;  %v10189_v1 = vld [vmem:[#allocation44_spill] sm:$0xff] }
0x12b5   :  { %v4192_v3 = vmul.f32 %v4184_v18, %v4176_v59  ;;  %v4168_v40 = vadd.f32 %v7346_v32, %v4036_v12  ;;  %v4162_v56 = vpop.f32.mrb[75].mxu1  ;;  %8068 = vmatprep.subr.bf16.mxu1 %v8067_v14  ;;  %v4830_v18 = vpop.xlane.xlu1 %4829 }
0x12b6   :  { %v4191_v11 = vmul.f32 %v4183_v7, %v4175_v41  ;;  %v4163_v62 = vadd.f32 %v4162_v56, %v4036_v12  ;;  %7996 = vmatprep.subr.bf16.mxu0 %v7995_v19  ;;  %v4391_v12 = vld [vmem:[#allocation7 + $0x428] sm:$0xff]  ;;  %8561 = vrcp.f32 %v4830_v18  ;;  %v6195_v41 = vld [vmem:[#allocation7 + $0x4c0] ss:$0 sm:$0xff] }
0x12b7   :  { %v4178_v60 = vmax.f32 %v4168_v40, 0.0  ;;  %7998 = vmatpush3.bf16.msra.mxu0 %v7995_v19  ;;  %v8051_v47 = vpack.c.bf16 %v4391_v12, %v4390_v45  ;;  %8563 = vrcp.f32 %v4833_v33 }
0x12b8   :  { %v4177_v46 = vmax.f32 %v4163_v62, 0.0  ;;  %v7999_v26 = vpack.c.bf16 %v4192_v3, %v4191_v11  ;;  %v4839_v7 = vpop.xlane.xlu0 %4838  ;;  %v4878_v11 = vld [vmem:[#allocation6 + $0x820] sm:$0xff] }
0x12b9   :  { %v4194_v0 = vmul.f32 %v4186_v16, %v4178_v60  ;;  %v4836_v59 = vpop.xlane.xlu1 %4835  ;;  %v4879_v16 = vld [vmem:[#allocation6 + $0x830] sm:$0xff] }
0x12ba   :  { %v4193_v36 = vmul.f32 %v4185_v38, %v4177_v46  ;;  %8000 = vmatprep.subr.bf16.mxu0 %v7999_v26  ;;  %8565 = vrcp.f32 %v4836_v59  ;;  %v10191_v59 = vld [vmem:[#allocation46_spill] sm:$0xff] }
0x12bb   :  { %8002 = vmatpush3.bf16.msra.mxu0 %v7999_v26  ;;  %v8095_v26 = vpack.c.bf16 %v4879_v16, %v4878_v11  ;;  %8567 = vrcp.f32 %v4839_v7  ;;  %v10194_v16 = vld [vmem:[#allocation49_spill] sm:$0xff] }
0x12bc   :  { %v8003_v63 = vpack.c.bf16 %v4194_v0, %v4193_v36  ;;  %v4845_v60 = vpop.xlane.xlu0 %4844 }
0x12bd   :  { %v4842_v32 = vpop.xlane.xlu1 %4841 }
0x12be   :  { %8004 = vmatprep.subr.bf16.mxu0 %v8003_v63  ;;  %8569 = vrcp.f32 %v4842_v32  ;;  %v10192_v32 = vld [vmem:[#allocation47_spill] sm:$0xff] }
0x12bf   :  { %8006 = vmatpush3.bf16.msra.mxu0 %v8003_v63  ;;  %v4880_v63 = vld [vmem:[#allocation6 + $0x840] sm:$0xff]  ;;  %8571 = vrcp.f32 %v4845_v60 }
0x12c0   :  { %8036 = vmatprep.subr.bf16.mxu0 %v8035_v21  ;;  %v8562_v62 = vpop.eup %8561  ;;  %v4851_v30 = vpop.xlane.xlu0 %4850 }
0x12c1   :  { %v4848_v0 = vpop.xlane.xlu1 %4847  ;;  %v4853_v36 = vmul.f32 %v8562_v62, %v9727_v2  ;;  %v4868_v2 = vld [vmem:[#allocation6 + $0x780] sm:$0xff] }
0x12c2   :  { %7364 = vmatmul.mubr.msk.f32.vlgmr.msra.gmra.mrb[64].mxu0 %vm884_vm6, %v4196_v17  ;;  %v4881_v17 = vld [vmem:[#allocation6 + $0x850] sm:$0xff]  ;;  %8573 = vrcp.f32 %v4848_v0  ;;  %v10196_v0 = vld [vmem:[#allocation51_spill] sm:$0xff] }
0x12c3   :  { %8038 = vmatpush3.bf16.msra.mxu0 %v8035_v21  ;;  %v8099_v27 = vpack.c.bf16 %v4881_v17, %v4880_v63  ;;  %8575 = vrcp.f32 %v4851_v30  ;;  %v10197_v17 = vld [vmem:[#allocation52_spill] sm:$0xff] }
0x12c4   :  { %8040 = vmatprep.subr.bf16.mxu0 %v8039_v48  ;;  %v4737_v8 = vpop.xlane.xlu0 %4736 }
0x12c5   :  { %v4734_v21 = vpop.xlane.xlu1 %4733 }
0x12c6   :  { %8577 = vrcp.f32 %v4734_v21  ;;  %v4487_v21 = vld [vmem:[#allocation7 + $0x498] sm:$0xff] }
0x12c7   :  { %8042 = vmatpush3.bf16.msra.mxu0 %v8039_v48  ;;  %v4869_v48 = vld [vmem:[#allocation6 + $0x790] sm:$0xff]  ;;  %8579 = vrcp.f32 %v4737_v8 }
0x12c8   :  { %8044 = vmatprep.subr.bf16.mxu0 %v8043_v55  ;;  %v8107_v57 = vpack.c.bf16 %v4869_v48, %v4868_v2  ;;  %v4576_v2 = vld [vmem:[#allocation7 + $0x4a0] sm:$0xff]  ;;  %v4577_v48 = vld [vmem:[#allocation7 + $0x4a8] sm:$0xff] }
0x12c9   :  { %v4740_v54 = vpop.xlane.xlu1 %4739  ;;  %v8083_v8 = vpack.c.bf16 %v4577_v48, %v4576_v2  ;;  %v5309_v2 = vld [vmem:[#allocation6 + $0x930] sm:$0xff]  ;;  %v5312_v48 = vld [vmem:[#allocation6 + $0x948] sm:$0xff] }
0x12ca   :  { %8581 = vrcp.f32 %v4740_v54 }
0x12cb   :  { %8046 = vmatpush3.bf16.msra.mxu0 %v8043_v55  ;;  %v8564_v55 = vpop.eup %8563 }
0x12cc   :  { %8048 = vmatprep.subr.bf16.mxu0 %v8047_v28  ;;  %v8566_v45 = vpop.eup %8565  ;;  %v4855_v12 = vmul.f32 %v8564_v55, %v9733_v25 }
0x12cd   :  { %v8568_v31 = vpop.eup %8567 }
0x12ce   :  { %v4859_v25 = vmul.f32 %v8568_v31, %v9743_v9 }
0x12cf   :  { %8050 = vmatpush3.bf16.msra.mxu0 %v8047_v28  ;;  %v4871_v28 = vld [vmem:[#allocation6 + $0x7b0] sm:$0xff] }
0x12d0   :  { %8052 = vmatprep.subr.bf16.mxu0 %v8051_v47  ;;  %v8111_v22 = vpack.c.bf16 %v4871_v28, %v4870_v52 }
0x12d3   :  { %8054 = vmatpush3.bf16.msra.mxu0 %v8051_v47  ;;  %v4743_v47 = vpop.xlane.xlu0 %4742 }
0x12d4   :  { %8056 = vmatprep.subr.bf16.mxu0 %v8055_v34  ;;  %8583 = vrcp.f32 %v4743_v47 }
0x12d7   :  { %8058 = vmatpush3.bf16.msra.mxu0 %v8055_v34  ;;  %v4857_v34 = vmul.f32 %v8566_v45, %v9735_v20  ;;  %v4875_v20 = vld [vmem:[#allocation6 + $0x7f0] sm:$0xff] }
0x12d8   :  { %8060 = vmatprep.subr.bf16.mxu0 %v8059_v58  ;;  %v8119_v9 = vpack.c.bf16 %v4875_v20, %v4874_v13  ;;  %v6199_v20 = vld [vmem:[#allocation7 + $0x4c2] ss:$0 sm:$0xff] }
0x12db   :  { %8062 = vmatpush3.bf16.msra.mxu0 %v8059_v58  ;;  %v8570_v58 = vpop.eup %8569 }
0x12dc   :  { %8064 = vmatprep.subr.bf16.mxu0 %v8063_v42  ;;  %v8572_v35 = vpop.eup %8571 }
0x12dd   :  { %v8574_v51 = vpop.eup %8573  ;;  %v4863_v37 = vmul.f32 %v8572_v35, %v10188_v10 }
0x12de   :  { %v8576_v4 = vpop.eup %8575 }
0x12df   :  { %8066 = vmatpush3.bf16.msra.mxu0 %v8063_v42  ;;  %v4861_v42 = vmul.f32 %v8570_v58, %v10187_v61  ;;  %v8578_v15 = vpop.eup %8577  ;;  %v5159_v61 = vld [vmem:[#allocation6 + $0x880] sm:$0xff] }
0x12e0   :  { %8092 = vmatprep.subr.bf16.mxu0 %v8091_v5  ;;  %v8580_v33 = vpop.eup %8579  ;;  %v4757_v7 = vmul.f32 %v8578_v15, %v10191_v59 }
0x1395   :  { %v7365_v43 = vpop.f32.mrb[64].mxu0 }
0x1396   :  { %v4269_v39 = vpop.f32.mrb[65].mxu0 }
0x1397   :  { %7396 = vmatprep.mubr.msk.f32.mxu1 %vm4298_vm3, %v4269_v39  ;;  %v8115_v39 = vpack.c.bf16 %v4873_v44, %v4872_v49 }
0x1398   :  { %7397 = vmatmul.mubr.msk.f32.vlgmr.msra.gmra.mrb[76].mxu1 %vm4298_vm3, %v7365_v43  ;;  %v4746_v43 = vpop.xlane.xlu1 %4745 }
0x1399   :  { %8070 = vmatpush3.bf16.msra.mxu1 %v8067_v14  ;;  %8585 = vrcp.f32 %v4746_v43 }
0x139a   :  { %8072 = vmatprep.subr.bf16.mxu1 %v8071_v53 }
0x139c   :  { %v4752_v14 = vpop.xlane.xlu1 %4751 }
0x139d   :  { %8074 = vmatpush3.bf16.msra.mxu1 %v8071_v53  ;;  %v4865_v53 = vmul.f32 %v8574_v51, %v10189_v1  ;;  %v5142_v51 = vld [vmem:[#allocation6 + $0x9f0] ss:$0 sm:$0xff] }
0x139e   :  { %8076 = vmatprep.subr.bf16.mxu1 %v8075_v23  ;;  %v5162_v1 = vld [vmem:[#allocation6 + $0x8b0] sm:$0xff] }
0x13a1   :  { %8078 = vmatpush3.bf16.msra.mxu1 %v8075_v23  ;;  %v10190_v23 = vld [vmem:[#allocation45_spill] sm:$0xff] }
0x13a2   :  { %v4867_v18 = vmul.f32 %v8576_v4, %v10190_v23 }
0x146b   :  { %v7398_v19 = vpop.f32.mrb[76].mxu1 }
0x146c   :  { %v4377_v3 = vadd.f32 %v7398_v19, %v6195_v41  ;;  %v4371_v40 = vpop.f32.mrb[77].mxu1  ;;  %v4759_v19 = vmul.f32 %v8580_v33, %v10192_v32  ;;  %v5164_v33 = vld [vmem:[#allocation6 + $0x8d0] sm:$0xff] }
0x146d   :  { %v4372_v56 = vadd.f32 %v6195_v41, %v4371_v40  ;;  %v8582_v41 = vpop.eup %8581  ;;  %v10193_v40 = vld [vmem:[#allocation48_spill] sm:$0xff] }
0x146e   :  { %v4381_v46 = vmax.f32 %v4377_v3, 0.0  ;;  %v8584_v3 = vpop.eup %8583 }
0x146f   :  { %v4380_v38 = vmax.f32 %v4372_v56, 0.0  ;;  %v4761_v56 = vmul.f32 %v8582_v41, %v10193_v40  ;;  %v8586_v11 = vpop.eup %8585  ;;  %v4763_v62 = vmul.f32 %v8584_v3, %v10194_v16  ;;  %v5166_v41 = vld [vmem:[#allocation6 + $0x8f0] sm:$0xff] }
0x1470   :  { %v5168_v3 = vld [vmem:[#allocation6 + $0x910] sm:$0xff] }
0x1471   :  { %7431 = vmatprep.mubr.f32.mxu0 %v4380_v38  ;;  %v10195_v38 = vld [vmem:[#allocation50_spill] sm:$0xff] }
0x1472   :  { %7432 = vmatmul.mubr.f32.vlgmr.msra.gmra.mrb[66].mxu0 %v4381_v46  ;;  %v4765_v46 = vmul.f32 %v8586_v11, %v10195_v38 }
0x1473   :  { %8094 = vmatpush3.bf16.msra.mxu0 %v8091_v5  ;;  %7480 = vmatprep.mubr.msk.f32.mxu0 %vm884_vm6, %v4853_v36  ;;  %v4749_v5 = vpop.xlane.xlu0 %4748 }
0x1474   :  { %8096 = vmatprep.subr.bf16.mxu0 %v8095_v26  ;;  %8587 = vrcp.f32 %v4749_v5 }
0x1475   :  { %8589 = vrcp.f32 %v4752_v14  ;;  %v5161_v14 = vld [vmem:[#allocation6 + $0x8a0] sm:$0xff] }
0x1477   :  { %8098 = vmatpush3.bf16.msra.mxu0 %v8095_v26  ;;  %v4755_v50 = vpop.xlane.xlu0 %4754 }
0x1478   :  { %8100 = vmatprep.subr.bf16.mxu0 %v8099_v27  ;;  %8591 = vrcp.f32 %v4755_v50  ;;  %v8127_v50 = vpack.c.bf16 %v5162_v1, %v5161_v14 }
0x147b   :  { %8102 = vmatpush3.bf16.msra.mxu0 %v8099_v27  ;;  %v10198_v27 = vld [vmem:[#allocation53_spill] sm:$0xff] }
0x147c   :  { %8104 = vmatprep.subr.bf16.mxu0 %v8103_v24 }
0x147e   :  { %v8588_v60 = vpop.eup %8587 }
0x147f   :  { %8106 = vmatpush3.bf16.msra.mxu0 %v8103_v24  ;;  %v8590_v26 = vpop.eup %8589  ;;  %v4767_v36 = vmul.f32 %v8588_v60, %v10196_v0  ;;  %v8079_v24 = vpack.c.bf16 %v4487_v21, %v4486_v6  ;;  %v5310_v6 = vld [vmem:[#allocation6 + $0x938] sm:$0xff]  ;;  %v5307_v21 = vld [vmem:[#allocation6 + $0x920] sm:$0xff] }
0x1480   :  { %8108 = vmatprep.subr.bf16.mxu0 %v8107_v57  ;;  %v4769_v30 = vmul.f32 %v8590_v26, %v10197_v17 }
0x1481   :  { %8080 = vmatprep.subr.bf16.mxu1 %v8079_v24 }
0x1482   :  { %7481 = vmatmul.mubr.msk.f32.vlgmr.msra.gmra.mrb[68].mxu0 %vm884_vm6, %v4855_v12  ;;  %v8592_v63 = vpop.eup %8591  ;;  %8082 = vmatpush3.bf16.msra.mxu1 %v8079_v24 }
0x1483   :  { %7483 = vmatprep.mubr.msk.f32.mxu0 %vm884_vm6, %v4857_v34  ;;  %8110 = vmatpush3.bf16.msra.mxu0 %v8107_v57  ;;  %v4771_v29 = vmul.f32 %v8592_v63, %v10198_v27  ;;  %v6198_v57 = vld [vmem:[#allocation7 + $0x4c1] ss:$0 sm:$0xff] }
0x1484   :  { %8112 = vmatprep.subr.bf16.mxu0 %v8111_v22  ;;  %8084 = vmatprep.subr.bf16.mxu1 %v8083_v8 }
0x1486   :  { %7484 = vmatmul.mubr.msk.f32.gmra.mrb[70].mxu0 %vm884_vm6, %v4859_v25  ;;  %v4578_v25 = vld [vmem:[#allocation7 + $0x4b0] sm:$0xff] }
0x1487   :  { %7486 = vmatprep.mubr.msk.f32.mxu0 %vm884_vm6, %v4861_v42  ;;  %8114 = vmatpush3.bf16.msra.mxu0 %v8111_v22  ;;  %v5160_v42 = vld [vmem:[#allocation6 + $0x890] sm:$0xff] }
0x1488   :  { %8116 = vmatprep.subr.bf16.mxu0 %v8115_v39  ;;  %v8123_v13 = vpack.c.bf16 %v5160_v42, %v5159_v61 }
0x148a   :  { %7487 = vmatmul.mubr.msk.f32.gmra.mrb[72].mxu0 %vm884_vm6, %v4863_v37 }
0x148b   :  { %7489 = vmatprep.mubr.msk.f32.mxu0 %vm884_vm6, %v4865_v53  ;;  %8118 = vmatpush3.bf16.msra.mxu0 %v8115_v39  ;;  %v4579_v39 = vld [vmem:[#allocation7 + $0x4b8] sm:$0xff] }
0x148c   :  { %8120 = vmatprep.subr.bf16.mxu0 %v8119_v9  ;;  %v8087_v35 = vpack.c.bf16 %v4579_v39, %v4578_v25 }
0x148e   :  { %7490 = vmatmul.mubr.msk.f32.gmra.mrb[74].mxu0 %vm884_vm6, %v4867_v18  ;;  %v5163_v18 = vld [vmem:[#allocation6 + $0x8c0] sm:$0xff] }
0x148f   :  { %8122 = vmatpush3.bf16.msra.mxu0 %v8119_v9  ;;  %7508 = vmatprep.mubr.msk.f32.mxu0 %vm884_vm6, %v4757_v7  ;;  %v8131_v59 = vpack.c.bf16 %v5164_v33, %v5163_v18  ;;  %v5165_v7 = vld [vmem:[#allocation6 + $0x8e0] sm:$0xff] }
0x1490   :  { %v8135_v32 = vpack.c.bf16 %v5166_v41, %v5165_v7  ;;  %v5600_v41 = vld [vmem:[#allocation7 + $0x4d8] sm:$0xff] }
0x1492   :  { %7509 = vmatmul.mubr.msk.f32.vlgmr.msra.gmra.mrb[68].mxu0 %vm884_vm6, %v4759_v19  ;;  %v5167_v19 = vld [vmem:[#allocation6 + $0x900] sm:$0xff] }
0x1493   :  { %7511 = vmatprep.mubr.msk.f32.mxu0 %vm884_vm6, %v4761_v56  ;;  %v8139_v40 = vpack.c.bf16 %v5168_v3, %v5167_v19  ;;  %v5602_v19 = vld [vmem:[#allocation7 + $0x4e8] sm:$0xff]  ;;  %v8698_v3 = vmov 0.0|0.0  }
0x1496   :  { %7512 = vmatmul.mubr.msk.f32.gmra.mrb[70].mxu0 %vm884_vm6, %v4763_v62 }
0x1497   :  { %7514 = vmatprep.mubr.msk.f32.mxu0 %vm884_vm6, %v4765_v46 }
0x149a   :  { %7515 = vmatmul.mubr.msk.f32.gmra.mrb[72].mxu0 %vm884_vm6, %v4767_v36 }
0x149b   :  { %7517 = vmatprep.mubr.msk.f32.mxu0 %vm884_vm6, %v4769_v30 }
0x149e   :  { %7518 = vmatmul.mubr.msk.f32.gmra.mrb[74].mxu0 %vm884_vm6, %v4771_v29  ;;  %v5308_v29 = vld [vmem:[#allocation6 + $0x928] sm:$0xff] }
0x149f   :  { %v8143_v24 = vpack.c.bf16 %v5310_v6, %v5308_v29  ;;  %v5612_v29 = vld [vmem:[#allocation7 + $0x538] sm:$0xff]  ;;  %v5613_v6 = vld [vmem:[#allocation7 + $0x540] sm:$0xff] }
0x1545   :  { %v7433_v55 = vpop.f32.mrb[66].mxu0 }
0x1546   :  { %v4475_v54 = vadd.f32 %v7433_v55, %v6198_v57  ;;  %v4469_v52 = vpop.f32.mrb[67].mxu0 }
0x1547   :  { %v4470_v28 = vadd.f32 %v6198_v57, %v4469_v52  ;;  %v8145_v57 = vpack.c.bf16 %v5309_v2, %v5307_v21  ;;  %v5313_v52 = vld [vmem:[#allocation6 + $0x950] sm:$0xff]  ;;  %v8186_v21 = vpack.c.bf16 %v5613_v6, %v5612_v29 }
0x1548   :  { %v4479_v12 = vmax.f32 %v4475_v54, 0.0  ;;  %v5311_v54 = vld [vmem:[#allocation6 + $0x940] sm:$0xff]  ;;  %v5615_v2 = vld [vmem:[#allocation7 + $0x550] sm:$0xff] }
0x1549   :  { %v4478_v45 = vmax.f32 %v4470_v28, 0.0  ;;  %v8149_v28 = vpack.c.bf16 %v5313_v52, %v5311_v54  ;;  %v5320_v54 = vlaneseq }
0x154b   :  { %7450 = vmatprep.mubr.msk.f32.mxu1 %vm884_vm6, %v4478_v45  ;;  %v5316_v45 = vld [vmem:[#allocation6 + $0x968] sm:$0xff]  ;;  %v5321_v52 = vshrl.u32 %v5320_v54, 7  ;;  %v5492_v54 = vld [vmem:[#allocation6 + $0x9b8] sm:$0xff] }
0x154c   :  { %7451 = vmatmul.mubr.msk.f32.vlgmr.msra.gmra.mrb[78].mxu1 %vm884_vm6, %v4479_v12  ;;  %v5315_v12 = vld [vmem:[#allocation6 + $0x960] sm:$0xff] }
0x154d   :  { %8086 = vmatpush3.bf16.msra.mxu1 %v8083_v8  ;;  %v5314_v8 = vld [vmem:[#allocation6 + $0x958] sm:$0xff] }
0x154e   :  { %8088 = vmatprep.subr.bf16.mxu1 %v8087_v35  ;;  %v8147_v55 = vpack.c.bf16 %v5314_v8, %v5312_v48  ;;  %v5616_v8 = vld [vmem:[#allocation7 + $0x558] sm:$0xff] }
0x1551   :  { %8090 = vmatpush3.bf16.msra.mxu1 %v8087_v35 }
0x1552   :  { %8124 = vmatprep.subr.bf16.mxu1 %v8123_v13 }
0x1565   :  { %v7510_v47 = vpop.f32.mrb[68].mxu0 }
0x1566   :  { %v5103_v22 = vpop.f32.mrb[69].mxu0  ;;  %v5144_v56 = vadd.f32 %v7510_v47, %v5142_v51  ;;  %v8697_v47 = vmov 0.0  }
0x1567   :  { %v5143_v9 = vadd.f32 %v5142_v51, %v5103_v22  ;;  %5587 = vmatprep.mubr.f32.mxu0 %v8697_v47  ;;  %v6202_v22 = vld [vmem:[#allocation7 + $0x4c3] ss:$0 sm:$0xff] }
0x1568   :  { %v5152_v16 = vmax.f32 %v5144_v56, 0.0  ;;  %v5603_v56 = vld [vmem:[#allocation7 + $0x4f0] sm:$0xff] }
0x1569   :  { %v7513_v31 = vpop.f32.mrb[70].mxu0  ;;  %v5151_v23 = vmax.f32 %v5143_v9, 0.0 }
0x156a   :  { %v5113_v34 = vpop.f32.mrb[71].mxu0  ;;  %v5146_v62 = vadd.f32 %v7513_v31, %v5142_v51 }
0x156b   :  { %v5145_v11 = vadd.f32 %v5142_v51, %v5113_v34 }
0x156c   :  { %v5154_v46 = vmax.f32 %v5146_v62, 0.0  ;;  %v5605_v62 = vld [vmem:[#allocation7 + $0x500] sm:$0xff] }
0x156d   :  { %v7516_v49 = vpop.f32.mrb[72].mxu0  ;;  %v5153_v60 = vmax.f32 %v5145_v11, 0.0  ;;  %v8171_v11 = vpack.c.bf16 %v5603_v56, %v5602_v19  ;;  %v5487_v19 = vld [vmem:[#allocation6 + $0x990] sm:$0xff] }
0x156e   :  { %v5123_v44 = vpop.f32.mrb[73].mxu0  ;;  %v5148_v26 = vadd.f32 %v7516_v49, %v5142_v51 }
0x156f   :  { %v5147_v38 = vadd.f32 %v5142_v51, %v5123_v44 }
0x1570   :  { %v5156_v63 = vmax.f32 %v5148_v26, 0.0 }
0x1571   :  { %v7519_v58 = vpop.f32.mrb[74].mxu0  ;;  %v5155_v0 = vmax.f32 %v5147_v38, 0.0  ;;  %v5606_v38 = vld [vmem:[#allocation7 + $0x508] sm:$0xff] }
0x1572   :  { %v5133_v43 = vpop.f32.mrb[75].mxu0  ;;  %v5150_v17 = vadd.f32 %v7519_v58, %v5142_v51  ;;  %v5169_v58 = vld [vmem:[#allocation6 + $0x9f1] ss:$0 sm:$0xff] }
0x1573   :  { %v5149_v36 = vadd.f32 %v5142_v51, %v5133_v43 }
0x1574   :  { %v5158_v27 = vmax.f32 %v5150_v17, 0.0  ;;  %v5610_v17 = vld [vmem:[#allocation7 + $0x528] sm:$0xff] }
0x1575   :  { %v5157_v30 = vmax.f32 %v5149_v36, 0.0  ;;  %v5609_v36 = vld [vmem:[#allocation7 + $0x520] sm:$0xff] }
0x161f   :  { %v7452_v5 = vpop.f32.mrb[78].mxu1 }
0x1620   :  { %v4571_v10 = vadd.f32 %v7452_v5, %v6199_v20  ;;  %v4565_v37 = vpop.f32.mrb[79].mxu1 }
0x1621   :  { %v4566_v4 = vadd.f32 %v6199_v20, %v4565_v37 }
0x1622   :  { %v4575_v15 = vmax.f32 %v4571_v10, 0.0 }
0x1623   :  { %v4574_v53 = vmax.f32 %v4566_v4, 0.0 }
0x1625   :  { %7461 = vmatprep.mubr.msk.f32.mxu1 %vm352_vm4, %v4574_v53 }
0x1626   :  { %7462 = vmatmul.mubr.msk.f32.vlgmr.msra.gmra.mrb[80].mxu1 %vm352_vm4, %v4575_v15 }
0x1627   :  { %8126 = vmatpush3.bf16.msra.mxu1 %v8123_v13  ;;  %7540 = vmatprep.mubr.msk.f32.mxu1 %vm3021_vm13, %v5151_v23 }
0x1628   :  { %8128 = vmatprep.subr.bf16.mxu1 %v8127_v50 }
0x162b   :  { %8130 = vmatpush3.bf16.msra.mxu1 %v8127_v50 }
0x162c   :  { %8132 = vmatprep.subr.bf16.mxu1 %v8131_v59 }
0x162f   :  { %8134 = vmatpush3.bf16.msra.mxu1 %v8131_v59 }
0x1630   :  { %8136 = vmatprep.subr.bf16.mxu1 %v8135_v32 }
0x1633   :  { %8138 = vmatpush3.bf16.msra.mxu1 %v8135_v32  ;;  %v5601_v32 = vld [vmem:[#allocation7 + $0x4e0] sm:$0xff] }
0x1634   :  { %8140 = vmatprep.subr.bf16.mxu1 %v8139_v40 }
0x1637   :  { %8142 = vmatpush3.bf16.msra.mxu1 %v8139_v40  ;;  %v8168_v40 = vpack.c.bf16 %v5601_v32, %v5600_v41 }
0x1638   :  { %8144 = vmatprep.subr.bf16.mxu1 %v8143_v24  ;;  %v5614_v24 = vld [vmem:[#allocation7 + $0x548] sm:$0xff] }
0x1639   :  { %v8189_v48 = vpack.c.bf16 %v5615_v2, %v5614_v24 }
0x163a   :  { %7541 = vmatmul.mubr.msk.f32.vlgmr.msra.gmra.mrb[82].mxu1 %vm3021_vm13, %v5152_v16  ;;  %v5604_v16 = vld [vmem:[#allocation7 + $0x4f8] sm:$0xff] }
0x163b   :  { %7543 = vmatprep.mubr.msk.f32.mxu1 %vm3021_vm13, %v5153_v60  ;;  %8146 = vmatpush1.bf16.msra.mxu1 %v8145_v57  ;;  %v8174_v60 = vpack.c.bf16 %v5605_v62, %v5604_v16  ;;  %v5617_v57 = vld [vmem:[#allocation7 + $0x560] sm:$0xff]  ;;  %v5490_v62 = vld [vmem:[#allocation6 + $0x9a8] sm:$0xff] }
0x163c   :  { %8148 = vmatprep.subr.bf16.mxu1 %v8147_v55  ;;  %v8192_v55 = vpack.c.bf16 %v5617_v57, %v5616_v8  ;;  %v5493_v57 = vld [vmem:[#allocation6 + $0x9c0] sm:$0xff] }
0x163e   :  { %7544 = vmatmul.mubr.msk.f32.gmra.mrb[84].mxu1 %vm3021_vm13, %v5154_v46  ;;  %v5607_v46 = vld [vmem:[#allocation7 + $0x510] sm:$0xff] }
0x163f   :  { %7546 = vmatprep.mubr.msk.f32.mxu1 %vm3021_vm13, %v5155_v0  ;;  %8150 = vmatpush1.bf16.msra.mxu1 %v8149_v28  ;;  %v8177_v26 = vpack.c.bf16 %v5607_v46, %v5606_v38  ;;  %v5608_v0 = vld [vmem:[#allocation7 + $0x518] sm:$0xff]  ;;  %v5322_v28 = vsub.s32 0, %v5321_v52 }
0x1640   :  { %5362 = vmatprep.subr.mxu1 %v5316_v45  ;;  %v5318_v45 = vld [vmem:[#allocation6 + $0x9f2] ss:$8 sm:$0x3] }
0x1642   :  { %7547 = vmatmul.mubr.msk.f32.gmra.mrb[86].mxu1 %vm3021_vm13, %v5156_v63  ;;  %v8180_v63 = vpack.c.bf16 %v5609_v36, %v5608_v0 }
0x1643   :  { %7549 = vmatprep.mubr.msk.f32.mxu1 %vm3021_vm13, %v5157_v30  ;;  %5363 = vmatpush1.msra.mxu1 %v5315_v12  ;;  %v5611_v30 = vld [vmem:[#allocation7 + $0x530] sm:$0xff]  ;;  %v5326_v12 = vsub.s32 1, %v5321_v52 }
0x1644   :  { %8167 = vmatprep.subr.bf16.mxu1 %v8698_v3 }
0x1646   :  { %7550 = vmatmul.mubr.msk.f32.gmra.mrb[88].mxu1 %vm3021_vm13, %v5158_v27  ;;  %v8183_v27 = vpack.c.bf16 %v5611_v30, %v5610_v17 }
0x1647   :  { %5418 = vmatprep.mubr.f32.mxu1 %v8697_v47 }
0x16f9   :  { %v7463_v31 = vpop.f32.mrb[80].mxu1 }
0x16fa   :  { %v4663_v34 = vadd.f32 %v7463_v31, %v6202_v22  ;;  %v4657_v49 = vpop.f32.mrb[81].mxu1  ;;  %v10040_v31 = vrot.slane %v5318_v45, %v5326_v12 }
0x16fb   :  { %v4658_v44 = vadd.f32 %v6202_v22, %v4657_v49  ;;  %v10038_v22 = vrot.slane %v5318_v45, %v5322_v28  ;;  %v5494_v28 = vld [vmem:[#allocation6 + $0x9c8] sm:$0xff] }
0x16fc   :  { %4667 = vst [vmem:[%s10078_s5 + $0x28] sm:$0xff] %v4663_v34 }
0x16fd   :  { %4666 = vst [vmem:[%s10078_s5 + $0x20] sm:$0xff] %v4658_v44 }
0x170d   :  { %v7542_v43 = vpop.f32.mrb[82].mxu1 }
0x170e   :  { %v5260_v25 = vpop.f32.mrb[83].mxu1  ;;  %v5266_v35 = vadd.f32 %v7542_v43, %v5169_v58 }
0x170f   :  { %v5261_v39 = vadd.f32 %v5260_v25, %v5169_v58 }
0x1710   :  { %v5300_v20 = vmax.f32 %v5266_v35, 0.0 }
0x1711   :  { %v5299_v61 = vmax.f32 %v5261_v39, 0.0  ;;  %v7545_v42 = vpop.f32.mrb[84].mxu1 }
0x1712   :  { %v5270_v13 = vpop.f32.mrb[85].mxu1  ;;  %v5276_v37 = vadd.f32 %v7545_v42, %v5169_v58 }
0x1713   :  { %6229 = vmatmul.mubr.msk.f32.vlgmr.msra.gmra.mrb[90].mxu1 %vm1759_vm12, %v5299_v61  ;;  %v5271_v51 = vadd.f32 %v5270_v13, %v5169_v58  ;;  %v5483_v61 = vld [vmem:[#allocation6 + $0x970] sm:$0xff]  ;;  %v5485_v13 = vld [vmem:[#allocation6 + $0x980] sm:$0xff] }
0x1714   :  { %5424 = vmatprep.mubr.f32.mxu1 %v8697_v47  ;;  %v5302_v1 = vmax.f32 %v5276_v37, 0.0  ;;  %8169 = vmatpush1.bf16.msra.mxu1 %v8168_v40  ;;  %v5489_v40 = vld [vmem:[#allocation6 + $0x9a0] sm:$0xff] }
0x1715   :  { %v7548_v5 = vpop.f32.mrb[86].mxu1  ;;  %v5301_v9 = vmax.f32 %v5271_v51, 0.0  ;;  %8170 = vmatprep.subr.bf16.mxu1 %v8698_v3  ;;  %v5484_v51 = vld [vmem:[#allocation6 + $0x978] sm:$0xff] }
0x1716   :  { %v5280_v10 = vpop.f32.mrb[87].mxu1  ;;  %v5286_v15 = vadd.f32 %v7548_v5, %v5169_v58 }
0x1717   :  { %6230 = vmatmul.mubr.msk.f32.gmra.mrb[92].mxu1 %vm1759_vm12, %v5300_v20  ;;  %v5281_v53 = vadd.f32 %v5280_v10, %v5169_v58  ;;  %v5486_v10 = vld [vmem:[#allocation6 + $0x988] sm:$0xff] }
0x1718   :  { %5430 = vmatprep.mubr.f32.mxu1 %v8697_v47  ;;  %v5304_v23 = vmax.f32 %v5286_v15, 0.0  ;;  %8172 = vmatpush1.bf16.msra.mxu1 %v8171_v11  ;;  %v5488_v11 = vld [vmem:[#allocation6 + $0x998] sm:$0xff] }
0x1719   :  { %v7551_v4 = vpop.f32.mrb[88].mxu1  ;;  %v5303_v50 = vmax.f32 %v5281_v53, 0.0  ;;  %8173 = vmatprep.subr.bf16.mxu1 %v8698_v3 }
0x171a   :  { %v5290_v14 = vpop.f32.mrb[89].mxu1  ;;  %v5296_v33 = vadd.f32 %v7551_v4, %v5169_v58 }
0x171b   :  { %6231 = vmatmul.mubr.msk.f32.gmra.mrb[94].mxu1 %vm1759_vm12, %v5301_v9  ;;  %v5291_v18 = vadd.f32 %v5290_v14, %v5169_v58 }
0x171c   :  { %5436 = vmatprep.mubr.f32.mxu1 %v8697_v47  ;;  %v5306_v7 = vmax.f32 %v5296_v33, 0.0  ;;  %8175 = vmatpush1.bf16.msra.mxu1 %v8174_v60 }
0x171d   :  { %v5305_v59 = vmax.f32 %v5291_v18, 0.0  ;;  %8176 = vmatprep.subr.bf16.mxu1 %v8698_v3 }
0x171f   :  { %6232 = vmatmul.mubr.msk.f32.gmra.mrb[96].mxu1 %vm1759_vm12, %v5302_v1 }
0x1720   :  { %5442 = vmatprep.mubr.f32.mxu1 %v8697_v47  ;;  %8178 = vmatpush1.bf16.msra.mxu1 %v8177_v26 }
0x1721   :  { %8179 = vmatprep.subr.bf16.mxu1 %v8698_v3 }
0x1723   :  { %6233 = vmatmul.mubr.msk.f32.gmra.mrb[98].mxu1 %vm1759_vm12, %v5303_v50 }
0x1724   :  { %5448 = vmatprep.mubr.f32.mxu1 %v8697_v47  ;;  %8181 = vmatpush1.bf16.msra.mxu1 %v8180_v63 }
0x1725   :  { %8182 = vmatprep.subr.bf16.mxu1 %v8698_v3 }
0x1727   :  { %6234 = vmatmul.mubr.msk.f32.gmra.mrb[100].mxu1 %vm1759_vm12, %v5304_v23 }
0x1728   :  { %5454 = vmatprep.mubr.f32.mxu1 %v8697_v47  ;;  %8184 = vmatpush1.bf16.msra.mxu1 %v8183_v27 }
0x1729   :  { %8185 = vmatprep.subr.bf16.mxu1 %v8698_v3 }
0x172b   :  { %6235 = vmatmul.mubr.msk.f32.gmra.mrb[102].mxu1 %vm1759_vm12, %v5305_v59 }
0x172c   :  { %5460 = vmatprep.mubr.f32.mxu1 %v8697_v47  ;;  %8187 = vmatpush1.bf16.msra.mxu1 %v8186_v21 }
0x172d   :  { %8188 = vmatprep.subr.bf16.mxu1 %v8698_v3 }
0x172f   :  { %6236 = vmatmul.mubr.msk.f32.gmra.mrb[104].mxu1 %vm1759_vm12, %v5306_v7 }
0x1730   :  { %8190 = vmatpush1.bf16.msra.mxu1 %v8189_v48  ;;  %v5491_v48 = vld [vmem:[#allocation6 + $0x9b0] sm:$0xff] }
0x1731   :  { %8191 = vmatprep.subr.bf16.mxu1 %v8698_v3 }
0x1734   :  { %8193 = vmatpush1.bf16.msra.mxu1 %v8192_v55 }
0x1735   :  { %8194 = vmatprep.subr.bf16.mxu1 %v8698_v3 }
0x17e6   :  { %v5420_v34 = vpop.f32.mrb[90].mxu1 }
0x17e7   :  { %v5421_v49 = vadd.f32 %v5420_v34, %v10038_v22  ;;  %v5422_v44 = vpop.f32.mrb[91].mxu1 }
0x17e8   :  { %v5423_v58 = vadd.f32 %v5422_v44, %v10040_v31 }
0x17e9   :  { %v5467_v25 = vmax.f32 %v5421_v49, 0.0 }
0x17ea   :  { %v5426_v43 = vpop.f32.mrb[92].mxu1  ;;  %v5468_v42 = vmax.f32 %v5423_v58, 0.0 }
0x17eb   :  { %v5427_v39 = vadd.f32 %v5426_v43, %v10038_v22  ;;  %v5428_v35 = vpop.f32.mrb[93].mxu1  ;;  %v5499_v4 = vmul.f32 %v5483_v61, %v5467_v25 }
0x17ec   :  { %v5429_v20 = vadd.f32 %v5428_v35, %v10040_v31  ;;  %v5500_v15 = vmul.f32 %v5484_v51, %v5468_v42 }
0x17ed   :  { %v5469_v5 = vmax.f32 %v5427_v39, 0.0 }
0x17ee   :  { %v5470_v37 = vmax.f32 %v5429_v20, 0.0  ;;  %v5432_v9 = vpop.f32.mrb[94].mxu1 }
0x17ef   :  { %v5501_v14 = vmul.f32 %v5485_v13, %v5469_v5  ;;  %v5433_v1 = vadd.f32 %v5432_v9, %v10038_v22  ;;  %v5434_v53 = vpop.f32.mrb[95].mxu1  ;;  %v5495_v5 = vld [vmem:[#allocation6 + $0x9d0] sm:$0xff] }
0x17f0   :  { %v5502_v50 = vmul.f32 %v5486_v10, %v5470_v37  ;;  %v5435_v23 = vadd.f32 %v5434_v53, %v10040_v31  ;;  %v5497_v37 = vld [vmem:[#allocation6 + $0x9e0] sm:$0xff] }
0x17f1   :  { %v8153_v18 = vpack.c.bf16 %v5501_v14, %v5499_v4  ;;  %v5471_v7 = vmax.f32 %v5433_v1, 0.0  ;;  %v5496_v4 = vld [vmem:[#allocation6 + $0x9d8] sm:$0xff]  ;;  %v5498_v1 = vld [vmem:[#allocation6 + $0x9e8] sm:$0xff] }
0x17f2   :  { %v5438_v33 = vpop.f32.mrb[96].mxu1  ;;  %v8151_v59 = vpack.c.bf16 %v5502_v50, %v5500_v15  ;;  %v5472_v3 = vmax.f32 %v5435_v23, 0.0 }
0x17f3   :  { %v5439_v41 = vadd.f32 %v5438_v33, %v10038_v22  ;;  %v5440_v32 = vpop.f32.mrb[97].mxu1  ;;  %v5503_v46 = vmul.f32 %v5487_v19, %v5471_v7  ;;  %v5618_v7 = vld [vmem:[#allocation7 + $0x568] sm:$0xff]  ;;  %v5708_v19 = vld [vmem:[#allocation7 + $0x578] sm:$0xff] }
0x17f4   :  { %v5441_v56 = vadd.f32 %v5440_v32, %v10040_v31  ;;  %8152 = vmatprep.subr.bf16.mxu0 %v8151_v59  ;;  %v5504_v63 = vmul.f32 %v5488_v11, %v5472_v3  ;;  %v5709_v3 = vld [vmem:[#allocation7 + $0x580] sm:$0xff]  ;;  %v5711_v11 = vld [vmem:[#allocation7 + $0x590] sm:$0xff] }
0x17f5   :  { %v5473_v16 = vmax.f32 %v5439_v41, 0.0  ;;  %8154 = vmatpush1.bf16.msra.mxu0 %v8153_v18  ;;  %v5619_v41 = vld [vmem:[#allocation7 + $0x570] sm:$0xff] }
0x17f6   :  { %v5474_v60 = vmax.f32 %v5441_v56, 0.0  ;;  %v5444_v38 = vpop.f32.mrb[98].mxu1  ;;  %v8195_v32 = vpack.c.bf16 %v5619_v41, %v5618_v7  ;;  %v8197_v56 = vpack.c.bf16 %v5709_v3, %v5708_v19  ;;  %v6243_v41 = vld [vmem:[#allocation7 + $0x65a] ss:$0 sm:$0xff] }
0x17f7   :  { %v5505_v26 = vmul.f32 %v5489_v40, %v5473_v16  ;;  %v5445_v0 = vadd.f32 %v5444_v38, %v10038_v22  ;;  %v5446_v36 = vpop.f32.mrb[99].mxu1  ;;  %v5710_v40 = vld [vmem:[#allocation7 + $0x588] sm:$0xff] }
0x17f8   :  { %v5506_v17 = vmul.f32 %v5490_v62, %v5474_v60  ;;  %v5447_v30 = vadd.f32 %v5446_v36, %v10040_v31  ;;  %8196 = vmatpush1.bf16.msra.mxu1 %v8195_v32  ;;  %v8201_v16 = vpack.c.bf16 %v5711_v11, %v5710_v40  ;;  %v5712_v62 = vld [vmem:[#allocation7 + $0x598] sm:$0xff]  ;;  %v5713_v60 = vld [vmem:[#allocation7 + $0x5a0] sm:$0xff] }
0x17f9   :  { %v8157_v27 = vpack.c.bf16 %v5505_v26, %v5503_v46  ;;  %v5475_v21 = vmax.f32 %v5445_v0, 0.0  ;;  %v8205_v38 = vpack.c.bf16 %v5713_v60, %v5712_v62  ;;  %v5715_v46 = vld [vmem:[#allocation7 + $0x5b0] sm:$0xff]  ;;  %v5716_v0 = vld [vmem:[#allocation7 + $0x5b8] sm:$0xff]  ;;  %v5717_v36 = vld [vmem:[#allocation7 + $0x5c0] sm:$0xff] }
0x17fa   :  { %v5450_v29 = vpop.f32.mrb[100].mxu1  ;;  %v8155_v6 = vpack.c.bf16 %v5506_v17, %v5504_v63  ;;  %v5476_v8 = vmax.f32 %v5447_v30, 0.0  ;;  %v8213_v63 = vpack.c.bf16 %v5717_v36, %v5716_v0  ;;  %v5718_v17 = vld [vmem:[#allocation7 + $0x5c8] sm:$0xff]  ;;  %v5719_v30 = vld [vmem:[#allocation7 + $0x5d0] sm:$0xff] }
0x17fb   :  { %v5451_v24 = vadd.f32 %v5450_v29, %v10038_v22  ;;  %v5452_v2 = vpop.f32.mrb[101].mxu1  ;;  %v5507_v34 = vmul.f32 %v5491_v48, %v5475_v21  ;;  %v5721_v48 = vld [vmem:[#allocation7 + $0x5e0] sm:$0xff] }
0x17fc   :  { %v5453_v55 = vadd.f32 %v5452_v2, %v10040_v31  ;;  %8156 = vmatprep.subr.bf16.mxu0 %v8155_v6  ;;  %v5508_v43 = vmul.f32 %v5492_v54, %v5476_v8  ;;  %v5720_v2 = vld [vmem:[#allocation7 + $0x5d8] sm:$0xff] }
0x17fd   :  { %v5477_v52 = vmax.f32 %v5451_v24, 0.0  ;;  %8158 = vmatpush1.bf16.msra.mxu0 %v8157_v27  ;;  %v8217_v27 = vpack.c.bf16 %v5719_v30, %v5718_v17  ;;  %v8221_v8 = vpack.c.bf16 %v5721_v48, %v5720_v2 }
0x17fe   :  { %v5478_v45 = vmax.f32 %v5453_v55, 0.0  ;;  %v5456_v12 = vpop.f32.mrb[102].mxu1  ;;  %v5723_v55 = vld [vmem:[#allocation7 + $0x5f0] sm:$0xff] }
0x17ff   :  { %v5509_v49 = vmul.f32 %v5493_v57, %v5477_v52  ;;  %v5457_v44 = vadd.f32 %v5456_v12, %v10038_v22  ;;  %v5458_v58 = vpop.f32.mrb[103].mxu1  ;;  %v5722_v57 = vld [vmem:[#allocation7 + $0x5e8] sm:$0xff]  ;;  %v5806_v52 = vld [vmem:[#allocation7 + $0x5f8] sm:$0xff] }
0x1800   :  { %v5510_v25 = vmul.f32 %v5494_v28, %v5478_v45  ;;  %v5459_v39 = vadd.f32 %v5458_v58, %v10040_v31  ;;  %v8225_v54 = vpack.c.bf16 %v5723_v55, %v5722_v57  ;;  %v5807_v28 = vld [vmem:[#allocation7 + $0x600] sm:$0xff]  ;;  %v6239_v12 = vld [vmem:[#allocation7 + $0x658] ss:$0 sm:$0xff] }
0x1801   :  { %v8161_v35 = vpack.c.bf16 %v5509_v49, %v5507_v34  ;;  %v5479_v13 = vmax.f32 %v5457_v44, 0.0  ;;  %v8229_v45 = vpack.c.bf16 %v5807_v28, %v5806_v52 }
0x1802   :  { %v5462_v61 = vpop.f32.mrb[104].mxu1  ;;  %v8159_v42 = vpack.c.bf16 %v5510_v25, %v5508_v43  ;;  %v5480_v10 = vmax.f32 %v5459_v39, 0.0  ;;  %v5808_v25 = vld [vmem:[#allocation7 + $0x608] sm:$0xff]  ;;  %v5809_v39 = vld [vmem:[#allocation7 + $0x610] sm:$0xff] }
0x1803   :  { %v5463_v20 = vadd.f32 %v5462_v61, %v10038_v22  ;;  %v5464_v51 = vpop.f32.mrb[105].mxu1  ;;  %v5511_v15 = vmul.f32 %v5495_v5, %v5479_v13  ;;  %v5515_v22 = vld [vmem:[#allocation7 + $0x4c8] sm:$0xff]  ;;  %v8233_v13 = vpack.c.bf16 %v5809_v39, %v5808_v25 }
0x1804   :  { %v5465_v9 = vadd.f32 %v5464_v51, %v10040_v31  ;;  %8160 = vmatprep.subr.bf16.mxu0 %v8159_v42  ;;  %v5512_v23 = vmul.f32 %v5496_v4, %v5480_v10  ;;  %v5516_v31 = vld [vmem:[#allocation7 + $0x4d0] sm:$0xff]  ;;  %v5811_v51 = vld [vmem:[#allocation7 + $0x620] sm:$0xff]  ;;  %v5812_v10 = vld [vmem:[#allocation7 + $0x628] sm:$0xff] }
0x1805   :  { %v5481_v14 = vmax.f32 %v5463_v20, 0.0  ;;  %8162 = vmatpush1.bf16.msra.mxu0 %v8161_v35  ;;  %v5810_v20 = vld [vmem:[#allocation7 + $0x618] sm:$0xff] }
0x1806   :  { %v5482_v53 = vmax.f32 %v5465_v9, 0.0  ;;  %v8237_v5 = vpack.c.bf16 %v5811_v51, %v5810_v20  ;;  %v5902_v4 = vld [vmem:[#allocation7 + $0x638] sm:$0xff] }
0x1807   :  { %v5513_v50 = vmul.f32 %v5497_v37, %v5481_v14  ;;  %v5813_v37 = vld [vmem:[#allocation7 + $0x630] sm:$0xff]  ;;  %v5903_v14 = vld [vmem:[#allocation7 + $0x640] sm:$0xff] }
0x1808   :  { %v5514_v18 = vmul.f32 %v5498_v1, %v5482_v53  ;;  %v8241_v9 = vpack.c.bf16 %v5813_v37, %v5812_v10  ;;  %v8245_v1 = vpack.c.bf16 %v5903_v14, %v5902_v4  ;;  %v6242_v53 = vld [vmem:[#allocation7 + $0x659] ss:$0 sm:$0xff] }
0x1809   :  { %v8165_v33 = vpack.c.bf16 %v5513_v50, %v5511_v15 }
0x180a   :  { %v8163_v59 = vpack.c.bf16 %v5514_v18, %v5512_v23  ;;  %8246 = vmatprep.subr.bf16.mxu1 %v8245_v1 }
0x180c   :  { %8164 = vmatprep.subr.bf16.mxu0 %v8163_v59 }
0x180d   :  { %8166 = vmatpush1.bf16.msra.mxu0 %v8165_v33 }
0x180e   :  { %8198 = vmatprep.subr.bf16.mxu0 %v8197_v56 }
0x1810   :  { %6237 = vmatmul.mubr.msk.f32.vlgmr.msra.gmra.mrb[76].mxu0 %vm884_vm6, %v5515_v22  ;;  %v5904_v22 = vld [vmem:[#allocation7 + $0x648] sm:$0xff] }
0x1811   :  { %5593 = vmatprep.mubr.f32.mxu0 %v8697_v47  ;;  %8200 = vmatpush3.bf16.msra.mxu0 %v8197_v56  ;;  %v5714_v47 = vld [vmem:[#allocation7 + $0x5a8] sm:$0xff] }
0x1812   :  { %8202 = vmatprep.subr.bf16.mxu0 %v8201_v16  ;;  %v8209_v26 = vpack.c.bf16 %v5715_v46, %v5714_v47 }
0x1814   :  { %6238 = vmatmul.mubr.msk.f32.gmra.mrb[78].mxu0 %vm884_vm6, %v5516_v31  ;;  %v5905_v31 = vld [vmem:[#allocation7 + $0x650] sm:$0xff] }
0x1815   :  { %8204 = vmatpush3.bf16.msra.mxu0 %v8201_v16  ;;  %v8249_v7 = vpack.c.bf16 %v5905_v31, %v5904_v22  ;;  %v6246_v16 = vld [vmem:[#allocation7 + $0x65b] ss:$0 sm:$0xff] }
0x1816   :  { %8206 = vmatprep.subr.bf16.mxu0 %v8205_v38 }
0x1819   :  { %8208 = vmatpush3.bf16.msra.mxu0 %v8205_v38 }
0x181a   :  { %8210 = vmatprep.subr.bf16.mxu0 %v8209_v26 }
0x181d   :  { %8212 = vmatpush3.bf16.msra.mxu0 %v8209_v26 }
0x181e   :  { %8214 = vmatprep.subr.bf16.mxu0 %v8213_v63 }
0x1821   :  { %8216 = vmatpush3.bf16.msra.mxu0 %v8213_v63 }
0x1822   :  { %8218 = vmatprep.subr.bf16.mxu0 %v8217_v27 }
0x1825   :  { %8220 = vmatpush3.bf16.msra.mxu0 %v8217_v27 }
0x1826   :  { %8222 = vmatprep.subr.bf16.mxu0 %v8221_v8 }
0x1829   :  { %8224 = vmatpush3.bf16.msra.mxu0 %v8221_v8 }
0x182a   :  { %8226 = vmatprep.subr.bf16.mxu0 %v8225_v54 }
0x182d   :  { %8228 = vmatpush3.bf16.msra.mxu0 %v8225_v54 }
0x182e   :  { %8230 = vmatprep.subr.bf16.mxu0 %v8229_v45 }
0x18e3   :  { %v5589_v29 = vpop.f32.mrb[76].mxu0 }
0x18e4   :  { %v5591_v6 = vpop.f32.mrb[77].mxu0 }
0x18e5   :  { %6240 = vmatprep.mubr.msk.f32.mxu1 %vm352_vm4, %v5591_v6 }
0x18e6   :  { %5696 = vmatmul.mubr.f32.vlgmr.msra.gmra.mrb[106].mxu1 %v5589_v29 }
0x18e7   :  { %v5595_v21 = vpop.f32.mrb[78].mxu0  ;;  %8248 = vmatpush3.bf16.msra.mxu1 %v8245_v1 }
0x18e8   :  { %v5597_v24 = vpop.f32.mrb[79].mxu0  ;;  %8250 = vmatprep.subr.bf16.mxu1 %v8249_v7 }
0x18e9   :  { %6241 = vmatprep.mubr.msk.f32.mxu1 %vm352_vm4, %v5597_v24 }
0x18ea   :  { %5701 = vmatmul.mubr.f32.gmra.mrb[108].mxu1 %v5595_v21 }
0x18eb   :  { %8252 = vmatpush3.bf16.msra.mxu1 %v8249_v7 }
0x19b9   :  { %v5697_v34 = vpop.f32.mrb[106].mxu1 }
0x19ba   :  { %v5698_v49 = vadd.f32 %v6239_v12, %v5697_v34  ;;  %v5699_v44 = vpop.f32.mrb[107].mxu1 }
0x19bc   :  { %v5706_v58 = vmax.f32 %v5698_v49, 0.0 }
0x19bd   :  { %v5702_v43 = vpop.f32.mrb[108].mxu1 }
0x19be   :  { %v5703_v35 = vadd.f32 %v6239_v12, %v5702_v43  ;;  %v5704_v61 = vpop.f32.mrb[109].mxu1  ;;  %7584 = vmatprep.mubr.f32.mxu0 %v5706_v58 }
0x19c0   :  { %v5707_v42 = vmax.f32 %v5703_v35, 0.0 }
0x19c2   :  { %7585 = vmatmul.mubr.f32.vlgmr.msra.gmra.mrb[80].mxu0 %v5707_v42 }
0x19c3   :  { %8232 = vmatpush3.bf16.msra.mxu0 %v8229_v45 }
0x19c4   :  { %8234 = vmatprep.subr.bf16.mxu0 %v8233_v13 }
0x19c7   :  { %8236 = vmatpush3.bf16.msra.mxu0 %v8233_v13 }
0x19c8   :  { %8238 = vmatprep.subr.bf16.mxu0 %v8237_v5 }
0x19cb   :  { %8240 = vmatpush3.bf16.msra.mxu0 %v8237_v5 }
0x19cc   :  { %8242 = vmatprep.subr.bf16.mxu0 %v8241_v9 }
0x19cf   :  { %8244 = vmatpush3.bf16.msra.mxu0 %v8241_v9 }
0x1a95   :  { %v7586_v15 = vpop.f32.mrb[80].mxu0 }
0x1a96   :  { %v5801_v50 = vadd.f32 %v7586_v15, %v6242_v53  ;;  %v5795_v23 = vpop.f32.mrb[81].mxu0 }
0x1a97   :  { %v5796_v18 = vadd.f32 %v6242_v53, %v5795_v23 }
0x1a98   :  { %v5805_v59 = vmax.f32 %v5801_v50, 0.0 }
0x1a99   :  { %v5804_v33 = vmax.f32 %v5796_v18, 0.0 }
0x1a9b   :  { %7603 = vmatprep.mubr.msk.f32.mxu0 %vm884_vm6, %v5804_v33 }
0x1a9c   :  { %7604 = vmatmul.mubr.msk.f32.vlgmr.msra.gmra.mrb[82].mxu0 %vm884_vm6, %v5805_v59 }
0x1b6f   :  { %v7605_v32 = vpop.f32.mrb[82].mxu0 }
0x1b70   :  { %v5897_v19 = vadd.f32 %v7605_v32, %v6243_v41  ;;  %v5891_v3 = vpop.f32.mrb[83].mxu0 }
0x1b71   :  { %v5892_v40 = vadd.f32 %v6243_v41, %v5891_v3 }
0x1b72   :  { %v5901_v11 = vmax.f32 %v5897_v19, 0.0 }
0x1b73   :  { %v5900_v56 = vmax.f32 %v5892_v40, 0.0 }
0x1b75   :  { %7614 = vmatprep.mubr.msk.f32.mxu1 %vm352_vm4, %v5900_v56 }
0x1b76   :  { %7615 = vmatmul.mubr.msk.f32.vlgmr.msra.gmra.mrb[110].mxu1 %vm352_vm4, %v5901_v11 }
0x1c49   :  { %v7616_v62 = vpop.f32.mrb[110].mxu1 }
0x1c4a   :  { %v5989_v60 = vadd.f32 %v7616_v62, %v6246_v16  ;;  %v5983_v38 = vpop.f32.mrb[111].mxu1 }
0x1c4b   :  { %v5984_v47 = vadd.f32 %v6246_v16, %v5983_v38 }
0x1c4c   :  { %5993 = vst [vmem:[%s10078_s5 + $0x38] sm:$0xff] %v5989_v60 }
0x1c4d   :  { %5992 = vst [vmem:[%s10078_s5 + $0x30] sm:$0xff] %v5984_v47 }
0x1c4e   :  { %5998 = vsyncpa [#allocation3], 1 }
0x1c4f   :  { %5999 = vsyncpa [#allocation5], 1 }
0x1c50   :  { %6000 = vsyncpa [#allocation8], 1 }

</bundles_post_ra>
